<compile_context>
chip_gen: v7x
topology: tpu7x:2x2x1
jax: 0.10.0
libtpu: 0.0.40
codegen_flags: <defaults>
</compile_context>

<pallas_src>
import functools

import jax
import jax.numpy as jnp
from jax.experimental import pallas as pl
from jax.experimental.pallas import tpu as pltpu

MIN_NORM = 1e-15
BALL_EPS = 4e-3                      # PoincareBall eps for float32 (hgcn convention)
VMEM_LIMIT = 48 * 1024 * 1024        # safe on v7x; raise to 64-96 MiB on v5e/v6e
RESIDENT_XT_BUDGET = 12 * 1024 * 1024  # budget for the (double-buffered) resident xt


# ---------------- Poincare-ball math (pure jnp; usable in and out of kernels) --------
def _artanh(x):
    # hgcn clamps to (-1+1e-15, 1-1e-15); float32-safe clamp. Never binds for points
    # already projected onto the ball (norm <= (1-4e-3)/sqrt(c)).
    x = jnp.clip(x, -1.0 + 1e-7, 1.0 - 1e-7)
    return 0.5 * (jnp.log1p(x) - jnp.log1p(-x))


def _norm(x):
    return jnp.sqrt(jnp.sum(x * x, axis=-1, keepdims=True))


def _proj(x, c):
    norm = jnp.maximum(_norm(x), MIN_NORM)
    maxnorm = (1.0 - BALL_EPS) / jnp.sqrt(c)
    projected = x / norm * maxnorm
    return jnp.where(norm > maxnorm, projected, x)


def _expmap0(u, c):
    sqrt_c = jnp.sqrt(c)
    u_norm = jnp.maximum(_norm(u), MIN_NORM)
    return jnp.tanh(sqrt_c * u_norm) * u / (sqrt_c * u_norm)


def _logmap0(p, c):
    sqrt_c = jnp.sqrt(c)
    p_norm = jnp.maximum(_norm(p), MIN_NORM)
    return (1.0 / sqrt_c) * _artanh(sqrt_c * p_norm) * p / p_norm


def _mobius_add(x, y, c):
    x2 = jnp.sum(x * x, axis=-1, keepdims=True)
    y2 = jnp.sum(y * y, axis=-1, keepdims=True)
    xy = jnp.sum(x * y, axis=-1, keepdims=True)
    num = (1.0 + 2.0 * c * xy + c * y2) * x + (1.0 - c * x2) * y
    denom = 1.0 + 2.0 * c * xy + c * c * x2 * y2
    return num / jnp.maximum(denom, MIN_NORM)


def _mobius_matvec_t(wt, x, c):
    """mobius_matvec with a pre-transposed weight wt of shape (Fin, Fout)."""
    sqrt_c = jnp.sqrt(c)
    x_norm = jnp.maximum(_norm(x), MIN_NORM)
    mx = jnp.dot(x, wt, preferred_element_type=jnp.float32)
    mx_norm = jnp.maximum(_norm(mx), MIN_NORM)
    res_c = jnp.tanh(mx_norm / x_norm * _artanh(sqrt_c * x_norm)) * mx / (mx_norm * sqrt_c)
    all_zero = jnp.sum(jnp.abs(mx), axis=-1, keepdims=True) == 0.0
    return jnp.where(all_zero, 0.0, res_c)


def _hyp_tail(xt, c_in, c_out):
    """End of HypAgg (expmap0/proj at c_in) + HypAct (relu/expmap0/proj at c_out)."""
    h = _proj(_expmap0(xt, c_in), c_in)
    t = jnp.maximum(_logmap0(h, c_in), 0.0)     # act = ReLU; proj_tan0 is identity
    return _proj(_expmap0(t, c_out), c_out)


# ---------------- plain-JAX reference of the full forward ---------------------------
def _hgc_forward_ref(x, adj, weight, bias, c_in, c_out, num_gcn_layers):
    mv = _mobius_matvec_t(weight.T, x, c_in)
    res = _proj(mv, c_in)
    hyp_bias = _proj(_expmap0(bias.reshape(1, -1), c_in), c_in)
    res = _proj(_mobius_add(res, hyp_bias, c_in), c_in)
    xt = _logmap0(res, c_in)
    for _ in range(num_gcn_layers):
        xt = jnp.dot(adj, xt, preferred_element_type=jnp.float32)
    return _hyp_tail(xt, c_in, c_out)


# ---------------- Pallas kernels -----------------------------------------------------
def _linear_logmap_kernel(x_ref, wt_ref, hb_ref, o_ref, *, c_in):
    """HypLinear (dropout=0) followed by logmap0 (start of HypAgg), per row tile."""
    x = x_ref[...]            # (TM, Fin_p)        f32
    wt = wt_ref[...]          # (Fin_p, Fout_p)    f32, pre-transposed in the wrapper
    hyp_bias = hb_ref[...]    # (1, Fout_p)        f32, hoisted loop-invariant
    mv = _mobius_matvec_t(wt, x, c_in)
    res = _proj(mv, c_in)
    res = _proj(_mobius_add(res, hyp_bias, c_in), c_in)
    # Emit directly in agg_dtype (bf16 by default): halves the aggregation's xt traffic.
    o_ref[...] = _logmap0(res, c_in).astype(o_ref.dtype)


def _xt_panel(xt_ref, k, tk, resident):
    """K-panel of xt: dynamic slice of the resident full block, or the streamed tile."""
    if resident:
        off = pl.multiple_of(k * tk, tk)
        return xt_ref[pl.ds(off, tk), :]
    return xt_ref[...]


def _agg_inter_kernel(adj_ref, xt_ref, o_ref, acc_ref, *, tk, resident):
    """Intermediate plainGCN layer: out = adj @ xt (P3 accumulator, agg_dtype output)."""
    k = pl.program_id(1)

    @pl.when(k == 0)
    def _():
        acc_ref[...] = jnp.zeros_like(acc_ref)

    acc_ref[...] += jnp.dot(adj_ref[...], _xt_panel(xt_ref, k, tk, resident),
                            preferred_element_type=jnp.float32)

    @pl.when(k == pl.num_programs(1) - 1)
    def _():
        o_ref[...] = acc_ref[...].astype(o_ref.dtype)


def _agg_final_kernel(adj_ref, xt_ref, o_ref, *, c_in, c_out, tk, resident):
    """Last plainGCN layer, accumulating directly into the resident f32 output block,
    with the HypAgg tail + HypAct fused into the finalize branch (no Stage-3 kernel)."""
    k = pl.program_id(1)

    @pl.when(k == 0)
    def _():
        o_ref[...] = jnp.zeros_like(o_ref)

    o_ref[...] += jnp.dot(adj_ref[...], _xt_panel(xt_ref, k, tk, resident),
                          preferred_element_type=jnp.float32)

    @pl.when(k == pl.num_programs(1) - 1)
    def _():
        o_ref[...] = _hyp_tail(o_ref[...], c_in, c_out)


def _act_kernel(xt_ref, o_ref, *, c_in, c_out):
    """Standalone tail; only used for the degenerate num_gcn_layers == 0 case."""
    o_ref[...] = _hyp_tail(xt_ref[...], c_in, c_out)


# ---------------- wrapper -------------------------------------------------------------
def _round_up(x, m):
    return (x + m - 1) // m * m


def _pick_tile(npad, target, min_tiles=1):
    """Largest multiple of 128 <= target that divides npad and (when possible) leaves
    at least `min_tiles` grid steps along this axis (so v7x's 2 TCs both get work)."""
    cap = npad
    if min_tiles > 1 and npad >= 128 * min_tiles:
        cap = (npad // min_tiles) // 128 * 128
    t = min(max(128, target // 128 * 128), cap)
    while npad % t:
        t -= 128
    return t


def hyperbolic_graph_conv(x, adj, weight, bias, *, c_in, c_out, num_gcn_layers,
                          tm=512, tk=1024, agg_dtype=jnp.bfloat16, resident_xt=None):
    N, Fin = x.shape
    Fout = weight.shape[0]

    Npad = _round_up(N, 128)
    Fin_p = _round_up(Fin, 128)
    Fout_p = _round_up(Fout, 128)
    tm = _pick_tile(Npad, tm, min_tiles=2)   # >=2 row tiles when possible (v7x megacore)
    tk = _pick_tile(Npad, tk)

    f32b = jnp.dtype(jnp.float32).itemsize
    aggb = jnp.dtype(agg_dtype).itemsize
    n_row_tiles = Npad // tm
    n_k_tiles = Npad // tk

    # Zero-pad: lane-dense compute / unmasked stores; zeros are exact no-ops in every
    # norm / mobius op and in the matmuls, so results are unchanged after slicing back.
    #
    # CORRECTNESS GUARD (padded rows): after stage 1, rows N..Npad-1 of xt are NOT
    # zero -- mobius_add(0, hyp_bias) = hyp_bias carries the bias tangent into padded
    # rows. Results remain correct only because (a) adj's padded rows/columns are
    # exactly zero, so padded rows never feed real rows, and (b) the output is sliced
    # back to [:N, :Fout]. Do not switch to identity adj padding or drop the slice.
    x_p = jnp.zeros((Npad, Fin_p), jnp.float32).at[:N, :Fin].set(x.astype(jnp.float32))
    w_t = jnp.zeros((Fin_p, Fout_p), jnp.float32).at[:Fin, :Fout].set(
        weight.T.astype(jnp.float32))
    b_p = jnp.zeros((1, Fout_p), jnp.float32).at[0, :Fout].set(bias.astype(jnp.float32))
    # adj padded directly in agg_dtype (no f32 Npad^2 intermediate, no extra cast pass).
    adj_p = jnp.zeros((Npad, Npad), agg_dtype).at[:N, :N].set(adj.astype(agg_dtype))

    # Hoisted loop-invariant bias term (HypLinear): proj(expmap0(proj_tan0(bias))).
    hyp_bias = _proj(_expmap0(b_p, c_in), c_in)

    # ---- Stage 1: HypLinear + logmap0, tiled over node rows -------------------------
    xt_dtype = agg_dtype if num_gcn_layers >= 1 else jnp.float32
    xt = pl.pallas_call(
        functools.partial(_linear_logmap_kernel, c_in=c_in),
        out_shape=jax.ShapeDtypeStruct((Npad, Fout_p), xt_dtype),
        grid=(n_row_tiles,),
        in_specs=[
            pl.BlockSpec((tm, Fin_p), lambda i: (i, 0)),
            pl.BlockSpec((Fin_p, Fout_p), lambda i: (0, 0)),
            pl.BlockSpec((1, Fout_p), lambda i: (0, 0)),
        ],
        out_specs=pl.BlockSpec((tm, Fout_p), lambda i: (i, 0)),
        compiler_params=pltpu.CompilerParams(
            dimension_semantics=("parallel",),
            vmem_limit_bytes=VMEM_LIMIT),
        cost_estimate=pl.CostEstimate(
            flops=2 * Npad * Fin_p * Fout_p + 40 * Npad * Fout_p,
            transcendentals=8 * Npad,
            bytes_accessed=f32b * (Npad * Fin_p + Fin_p * Fout_p + Fout_p)
                           + jnp.dtype(xt_dtype).itemsize * Npad * Fout_p),
    )(x_p, w_t, hyp_bias)

    if num_gcn_layers == 0:
        # Degenerate case: plainGCN with 0 layers returns x_tangent itself.
        h = pl.pallas_call(
            functools.partial(_act_kernel, c_in=c_in, c_out=c_out),
            out_shape=jax.ShapeDtypeStruct((Npad, Fout_p), jnp.float32),
            grid=(n_row_tiles,),
            in_specs=[pl.BlockSpec((tm, Fout_p), lambda i: (i, 0))],
            out_specs=pl.BlockSpec((tm, Fout_p), lambda i: (i, 0)),
            compiler_params=pltpu.CompilerParams(
                dimension_semantics=("parallel",),
                vmem_limit_bytes=VMEM_LIMIT),
        )(xt)
        return h[:N, :Fout]

    # ---- Stage 2: plainGCN aggregation, one tiled matmul per GCN layer --------------
    if resident_xt is None:
        resident_xt = 2 * Npad * Fout_p * aggb <= RESIDENT_XT_BUDGET
    adj_spec = pl.BlockSpec((tm, tk), lambda i, k: (i, k))
    if resident_xt:
        # Constant-index full-extent block: fetched once, kept resident in VMEM, the
        # kernel slices K-panels in place -> adj is the only per-layer HBM stream.
        xt_spec = pl.BlockSpec((Npad, Fout_p), lambda i, k: (0, 0))
        xt_bytes = Npad * Fout_p * aggb
    else:
        xt_spec = pl.BlockSpec((tk, Fout_p), lambda i, k: (k, 0))
        xt_bytes = n_row_tiles * Npad * Fout_p * aggb
    out_spec = pl.BlockSpec((tm, Fout_p), lambda i, k: (i, 0))
    agg_params = pltpu.CompilerParams(
        dimension_semantics=("parallel", "arbitrary"),
        vmem_limit_bytes=VMEM_LIMIT)
    adj_bytes = Npad * Npad * aggb
    agg_flops = 2 * Npad * Npad * Fout_p

    inter_call = None
    if num_gcn_layers > 1:
        inter_call = pl.pallas_call(
            functools.partial(_agg_inter_kernel, tk=tk, resident=resident_xt),
            out_shape=jax.ShapeDtypeStruct((Npad, Fout_p), agg_dtype),
            grid=(n_row_tiles, n_k_tiles),
            in_specs=[adj_spec, xt_spec],
            out_specs=out_spec,
            scratch_shapes=[pltpu.VMEM((tm, Fout_p), jnp.float32)],
            compiler_params=agg_params,
            cost_estimate=pl.CostEstimate(
                flops=agg_flops, transcendentals=0,
                bytes_accessed=adj_bytes + xt_bytes + Npad * Fout_p * aggb),
        )

    final_call = pl.pallas_call(
        functools.partial(_agg_final_kernel, c_in=c_in, c_out=c_out,
                          tk=tk, resident=resident_xt),
        out_shape=jax.ShapeDtypeStruct((Npad, Fout_p), jnp.float32),
        grid=(n_row_tiles, n_k_tiles),
        in_specs=[adj_spec, xt_spec],
        out_specs=out_spec,
        compiler_params=agg_params,
        cost_estimate=pl.CostEstimate(
            flops=agg_flops + 40 * Npad * Fout_p,
            transcendentals=8 * Npad,
            bytes_accessed=adj_bytes + xt_bytes + Npad * Fout_p * f32b),
    )

    for _ in range(num_gcn_layers - 1):
        xt = inter_call(adj_p, xt)          # agg_dtype in, agg_dtype out (in-kernel cast)
    h = final_call(adj_p, xt)               # fused tail -> f32 result
    return h[:N, :Fout]


# ---------------- driver -------------------------------------------------------------
if __name__ == "__main__":
    N, F_IN, F_OUT = 200, 48, 80
    C_IN, C_OUT = 1.0, 0.7
    NUM_GCN_LAYERS = 2           # tangent_agg_layers, tangent_agg='plainGCN'

    key = jax.random.PRNGKey(0)
    kx, kadj, kw, kb = jax.random.split(key, 4)

    # Input points: map random tangent vectors onto the Poincare ball (glue, plain JAX).
    u = 0.2 * jax.random.normal(kx, (N, F_IN), dtype=jnp.float32)
    x = _proj(_expmap0(u, C_IN), C_IN)

    # Dense row-normalized adjacency (stands in for torch.spmm's sparse adj).
    a = jnp.abs(jax.random.normal(kadj, (N, N), dtype=jnp.float32)) \
        + jnp.eye(N, dtype=jnp.float32)
    adj = a / jnp.sum(a, axis=-1, keepdims=True)

    # HypLinear params: xavier_uniform_(gain=sqrt(2)) weight; small random bias to
    # exercise the mobius_add bias path (module init is zeros, but semantics identical).
    gain = jnp.sqrt(2.0)
    bound = gain * jnp.sqrt(6.0 / (F_IN + F_OUT))
    weight = jax.random.uniform(kw, (F_OUT, F_IN), dtype=jnp.float32,
                                minval=-bound, maxval=bound)
    bias = 0.05 * jax.random.normal(kb, (F_OUT,), dtype=jnp.float32)

    ref = _hgc_forward_ref(x, adj, weight, bias, C_IN, C_OUT, NUM_GCN_LAYERS)

    # 1) f32 aggregation, resident-xt path (small tiles -> multi-tile row/K grids).
    out = hyperbolic_graph_conv(x, adj, weight, bias,
                                c_in=C_IN, c_out=C_OUT,
                                num_gcn_layers=NUM_GCN_LAYERS,
                                tm=128, tk=128, agg_dtype=jnp.float32)
    out = jax.block_until_ready(out)
    assert out.shape == (N, F_OUT)
    assert bool(jnp.all(jnp.isfinite(out)))
    assert jnp.allclose(out, ref, atol=1e-4, rtol=1e-4), "f32 resident-xt kernel mismatch"

    # 2) f32 aggregation, streamed-xt fallback path.
    out_s = hyperbolic_graph_conv(x, adj, weight, bias,
                                  c_in=C_IN, c_out=C_OUT,
                                  num_gcn_layers=NUM_GCN_LAYERS,
                                  tm=128, tk=128, agg_dtype=jnp.float32,
                                  resident_xt=False)
    out_s = jax.block_until_ready(out_s)
    assert jnp.allclose(out_s, ref, atol=1e-4, rtol=1e-4), "f32 streamed-xt kernel mismatch"

    # 3) Default production path: bf16 adj/xt (f32 accumulation), looser tolerance.
    out_bf16 = hyperbolic_graph_conv(x, adj, weight, bias,
                                     c_in=C_IN, c_out=C_OUT,
                                     num_gcn_layers=NUM_GCN_LAYERS)
    out_bf16 = jax.block_until_ready(out_bf16)
    assert bool(jnp.all(jnp.isfinite(out_bf16)))
    assert float(jnp.max(jnp.abs(out_bf16 - ref))) < 5e-2, "bf16 agg path diverged"

    # TODO(synk): dropout on weight/tangent features omitted (eval-mode semantics);
    # training parity would need pltpu.prng_seed/prng_random_bits per tile.
    print("KERNEL_OK")
</pallas_src>

<mosaic_0001>
module attributes {stable_mosaic.version = 11 : i64} {
  func.func @_linear_logmap_kernel(%arg0: i32, %arg1: memref<128x128xf32, #tpu.memory_space<vmem>>, %arg2: memref<128x128xf32, #tpu.memory_space<vmem>>, %arg3: memref<1x128xf32, #tpu.memory_space<vmem>>, %arg4: memref<128x128xf32, #tpu.memory_space<vmem>>) attributes {dimension_semantics = [#tpu.dimension_semantics<parallel>], iteration_bounds = array<i64: 2>, scalar_prefetch = 0 : i64, scratch_operands = 0 : i64, tpu.core_type = #tpu.core_type<tc>, window_params = [{transform_indices = @transform_0, window_bounds = array<i64: 128, 128>}, {pipeline_mode = #tpu.pipeline_mode<synchronous>, transform_indices = @transform_1, window_bounds = array<i64: 128, 128>}, {pipeline_mode = #tpu.pipeline_mode<synchronous>, transform_indices = @transform_2, window_bounds = array<i64: 1, 128>}, {transform_indices = @transform_3, window_bounds = array<i64: 128, 128>}]} {
    %c0 = arith.constant 0 : index
    %c0_0 = arith.constant 0 : index
    %0 = vector.load %arg1[%c0, %c0_0] : memref<128x128xf32, #tpu.memory_space<vmem>>, vector<128x128xf32>
    %c0_1 = arith.constant 0 : index
    %c0_2 = arith.constant 0 : index
    %1 = vector.load %arg2[%c0_1, %c0_2] : memref<128x128xf32, #tpu.memory_space<vmem>>, vector<128x128xf32>
    %c0_3 = arith.constant 0 : index
    %c0_4 = arith.constant 0 : index
    %2 = vector.load %arg3[%c0_3, %c0_4] : memref<1x128xf32, #tpu.memory_space<vmem>>, vector<1x128xf32>
    %cst = arith.constant 1.000000e+00 : f32
    %3 = math.sqrt %cst : f32
    %4 = arith.mulf %0, %0 : vector<128x128xf32>
    %cst_5 = arith.constant dense<0.000000e+00> : vector<128xf32>
    %5 = vector.multi_reduction <add>, %4, %cst_5 [1] : vector<128x128xf32> to vector<128xf32>
    %6 = vector.shape_cast %5 : vector<128xf32> to vector<128x1xf32>
    %7 = math.sqrt %6 : vector<128x1xf32>
    %cst_6 = arith.constant 1.000000e-15 : f32
    %8 = vector.broadcast %cst_6 : f32 to vector<128x1xf32>
    %9 = arith.maximumf %7, %8 : vector<128x1xf32>
    %cst_7 = arith.constant dense<0.000000e+00> : vector<128x128xf32>
    %10 = tpu.matmul %0, %1, %cst_7 {dimension_numbers = #tpu.dot_dimension_numbers<[1], [0], [0], [1], [0, 0, 1, 1], [], []>} : vector<128x128xf32>, vector<128x128xf32>, vector<128x128xf32> -> vector<128x128xf32>
    %11 = arith.mulf %10, %10 : vector<128x128xf32>
    %cst_8 = arith.constant dense<0.000000e+00> : vector<128xf32>
    %12 = vector.multi_reduction <add>, %11, %cst_8 [1] : vector<128x128xf32> to vector<128xf32>
    %13 = vector.shape_cast %12 : vector<128xf32> to vector<128x1xf32>
    %14 = math.sqrt %13 : vector<128x1xf32>
    %cst_9 = arith.constant 1.000000e-15 : f32
    %15 = vector.broadcast %cst_9 : f32 to vector<128x1xf32>
    %16 = arith.maximumf %14, %15 : vector<128x1xf32>
    %17 = arith.divf %16, %9 : vector<128x1xf32>
    %18 = vector.broadcast %3 : f32 to vector<128x1xf32>
    %19 = arith.mulf %18, %9 : vector<128x1xf32>
    %cst_10 = arith.constant -0.99999988 : f32
    %cst_11 = arith.constant 0.99999988 : f32
    %20 = vector.broadcast %cst_10 : f32 to vector<128x1xf32>
    %21 = arith.maximumf %20, %19 : vector<128x1xf32>
    %22 = vector.broadcast %cst_11 : f32 to vector<128x1xf32>
    %23 = arith.minimumf %22, %21 : vector<128x1xf32>
    %24 = math.log1p %23 : vector<128x1xf32>
    %cst_12 = arith.constant 0.000000e+00 : f32
    %25 = vector.broadcast %cst_12 : f32 to vector<128x1xf32>
    %26 = arith.subf %25, %23 : vector<128x1xf32>
    %27 = math.log1p %26 : vector<128x1xf32>
    %28 = arith.subf %24, %27 : vector<128x1xf32>
    %cst_13 = arith.constant 5.000000e-01 : f32
    %29 = vector.broadcast %cst_13 : f32 to vector<128x1xf32>
    %30 = arith.mulf %29, %28 : vector<128x1xf32>
    %31 = arith.mulf %17, %30 : vector<128x1xf32>
    %32 = math.tanh %31 : vector<128x1xf32>
    %33 = vector.broadcast %32 : vector<128x1xf32> to vector<128x128xf32>
    %34 = arith.mulf %33, %10 : vector<128x128xf32>
    %35 = vector.broadcast %3 : f32 to vector<128x1xf32>
    %36 = arith.mulf %16, %35 : vector<128x1xf32>
    %37 = vector.broadcast %36 : vector<128x1xf32> to vector<128x128xf32>
    %38 = arith.divf %34, %37 : vector<128x128xf32>
    %39 = math.absf %10 : vector<128x128xf32>
    %cst_14 = arith.constant dense<0.000000e+00> : vector<128xf32>
    %40 = vector.multi_reduction <add>, %39, %cst_14 [1] : vector<128x128xf32> to vector<128xf32>
    %41 = vector.shape_cast %40 : vector<128xf32> to vector<128x1xf32>
    %cst_15 = arith.constant 0.000000e+00 : f32
    %42 = vector.broadcast %cst_15 : f32 to vector<128x1xf32>
    %43 = arith.cmpf oeq, %41, %42 : vector<128x1xf32>
    %cst_16 = arith.constant 0.000000e+00 : f32
    %44 = vector.shape_cast %43 : vector<128x1xi1> to vector<128x1xi1>
    %45 = vector.broadcast %44 : vector<128x1xi1> to vector<128x128xi1>
    %46 = vector.broadcast %cst_16 : f32 to vector<128x128xf32>
    %47 = arith.select %45, %46, %38 : vector<128x128xi1>, vector<128x128xf32>
    %48 = arith.mulf %47, %47 : vector<128x128xf32>
    %cst_17 = arith.constant dense<0.000000e+00> : vector<128xf32>
    %49 = vector.multi_reduction <add>, %48, %cst_17 [1] : vector<128x128xf32> to vector<128xf32>
    %50 = vector.shape_cast %49 : vector<128xf32> to vector<128x1xf32>
    %51 = math.sqrt %50 : vector<128x1xf32>
    %cst_18 = arith.constant 1.000000e-15 : f32
    %52 = vector.broadcast %cst_18 : f32 to vector<128x1xf32>
    %53 = arith.maximumf %51, %52 : vector<128x1xf32>
    %cst_19 = arith.constant 1.000000e+00 : f32
    %54 = math.sqrt %cst_19 : f32
    %cst_20 = arith.constant 0.995999991 : f32
    %55 = arith.divf %cst_20, %54 : f32
    %56 = vector.broadcast %53 : vector<128x1xf32> to vector<128x128xf32>
    %57 = arith.divf %47, %56 : vector<128x128xf32>
    %58 = vector.broadcast %55 : f32 to vector<128x128xf32>
    %59 = arith.mulf %57, %58 : vector<128x128xf32>
    %60 = vector.broadcast %55 : f32 to vector<128x1xf32>
    %61 = arith.cmpf ogt, %53, %60 : vector<128x1xf32>
    %62 = vector.shape_cast %61 : vector<128x1xi1> to vector<128x1xi1>
    %63 = vector.broadcast %62 : vector<128x1xi1> to vector<128x128xi1>
    %64 = arith.select %63, %59, %47 : vector<128x128xi1>, vector<128x128xf32>
    %65 = arith.mulf %64, %64 : vector<128x128xf32>
    %cst_21 = arith.constant dense<0.000000e+00> : vector<128xf32>
    %66 = vector.multi_reduction <add>, %65, %cst_21 [1] : vector<128x128xf32> to vector<128xf32>
    %67 = vector.shape_cast %66 : vector<128xf32> to vector<128x1xf32>
    %68 = arith.mulf %2, %2 : vector<1x128xf32>
    %cst_22 = arith.constant dense<0.000000e+00> : vector<1xf32>
    %69 = vector.multi_reduction <add>, %68, %cst_22 [1] : vector<1x128xf32> to vector<1xf32>
    %70 = vector.shape_cast %69 : vector<1xf32> to vector<1x1xf32>
    %71 = vector.broadcast %2 : vector<1x128xf32> to vector<128x128xf32>
    %72 = arith.mulf %64, %71 : vector<128x128xf32>
    %cst_23 = arith.constant dense<0.000000e+00> : vector<128xf32>
    %73 = vector.multi_reduction <add>, %72, %cst_23 [1] : vector<128x128xf32> to vector<128xf32>
    %74 = vector.shape_cast %73 : vector<128xf32> to vector<128x1xf32>
    %cst_24 = arith.constant 2.000000e+00 : f32
    %75 = vector.broadcast %cst_24 : f32 to vector<128x1xf32>
    %76 = arith.mulf %75, %74 : vector<128x1xf32>
    %cst_25 = arith.constant 1.000000e+00 : f32
    %77 = vector.broadcast %cst_25 : f32 to vector<128x1xf32>
    %78 = arith.addf %77, %76 : vector<128x1xf32>
    %cst_26 = arith.constant 1.000000e+00 : f32
    %79 = vector.broadcast %cst_26 : f32 to vector<1x1xf32>
    %80 = arith.mulf %79, %70 : vector<1x1xf32>
    %81 = vector.broadcast %80 : vector<1x1xf32> to vector<128x1xf32>
    %82 = arith.addf %78, %81 : vector<128x1xf32>
    %83 = vector.broadcast %82 : vector<128x1xf32> to vector<128x128xf32>
    %84 = arith.mulf %83, %64 : vector<128x128xf32>
    %cst_27 = arith.constant 1.000000e+00 : f32
    %85 = vector.broadcast %cst_27 : f32 to vector<128x1xf32>
    %86 = arith.mulf %85, %67 : vector<128x1xf32>
    %cst_28 = arith.constant 1.000000e+00 : f32
    %87 = vector.broadcast %cst_28 : f32 to vector<128x1xf32>
    %88 = arith.subf %87, %86 : vector<128x1xf32>
    %89 = vector.broadcast %88 : vector<128x1xf32> to vector<128x128xf32>
    %90 = vector.broadcast %2 : vector<1x128xf32> to vector<128x128xf32>
    %91 = arith.mulf %89, %90 : vector<128x128xf32>
    %92 = arith.addf %84, %91 : vector<128x128xf32>
    %cst_29 = arith.constant 2.000000e+00 : f32
    %93 = vector.broadcast %cst_29 : f32 to vector<128x1xf32>
    %94 = arith.mulf %93, %74 : vector<128x1xf32>
    %cst_30 = arith.constant 1.000000e+00 : f32
    %95 = vector.broadcast %cst_30 : f32 to vector<128x1xf32>
    %96 = arith.addf %95, %94 : vector<128x1xf32>
    %cst_31 = arith.constant 1.000000e+00 : f32
    %97 = vector.broadcast %cst_31 : f32 to vector<128x1xf32>
    %98 = arith.mulf %97, %67 : vector<128x1xf32>
    %99 = vector.broadcast %70 : vector<1x1xf32> to vector<128x1xf32>
    %100 = arith.mulf %98, %99 : vector<128x1xf32>
    %101 = arith.addf %96, %100 : vector<128x1xf32>
    %cst_32 = arith.constant 1.000000e-15 : f32
    %102 = vector.broadcast %cst_32 : f32 to vector<128x1xf32>
    %103 = arith.maximumf %101, %102 : vector<128x1xf32>
    %104 = vector.broadcast %103 : vector<128x1xf32> to vector<128x128xf32>
    %105 = arith.divf %92, %104 : vector<128x128xf32>
    %106 = arith.mulf %105, %105 : vector<128x128xf32>
    %cst_33 = arith.constant dense<0.000000e+00> : vector<128xf32>
    %107 = vector.multi_reduction <add>, %106, %cst_33 [1] : vector<128x128xf32> to vector<128xf32>
    %108 = vector.shape_cast %107 : vector<128xf32> to vector<128x1xf32>
    %109 = math.sqrt %108 : vector<128x1xf32>
    %cst_34 = arith.constant 1.000000e-15 : f32
    %110 = vector.broadcast %cst_34 : f32 to vector<128x1xf32>
    %111 = arith.maximumf %109, %110 : vector<128x1xf32>
    %cst_35 = arith.constant 1.000000e+00 : f32
    %112 = math.sqrt %cst_35 : f32
    %cst_36 = arith.constant 0.995999991 : f32
    %113 = arith.divf %cst_36, %112 : f32
    %114 = vector.broadcast %111 : vector<128x1xf32> to vector<128x128xf32>
    %115 = arith.divf %105, %114 : vector<128x128xf32>
    %116 = vector.broadcast %113 : f32 to vector<128x128xf32>
    %117 = arith.mulf %115, %116 : vector<128x128xf32>
    %118 = vector.broadcast %113 : f32 to vector<128x1xf32>
    %119 = arith.cmpf ogt, %111, %118 : vector<128x1xf32>
    %120 = vector.shape_cast %119 : vector<128x1xi1> to vector<128x1xi1>
    %121 = vector.broadcast %120 : vector<128x1xi1> to vector<128x128xi1>
    %122 = arith.select %121, %117, %105 : vector<128x128xi1>, vector<128x128xf32>
    %cst_37 = arith.constant 1.000000e+00 : f32
    %123 = math.sqrt %cst_37 : f32
    %124 = arith.mulf %122, %122 : vector<128x128xf32>
    %cst_38 = arith.constant dense<0.000000e+00> : vector<128xf32>
    %125 = vector.multi_reduction <add>, %124, %cst_38 [1] : vector<128x128xf32> to vector<128xf32>
    %126 = vector.shape_cast %125 : vector<128xf32> to vector<128x1xf32>
    %127 = math.sqrt %126 : vector<128x1xf32>
    %cst_39 = arith.constant 1.000000e-15 : f32
    %128 = vector.broadcast %cst_39 : f32 to vector<128x1xf32>
    %129 = arith.maximumf %127, %128 : vector<128x1xf32>
    %cst_40 = arith.constant 1.000000e+00 : f32
    %130 = arith.divf %cst_40, %123 : f32
    %131 = vector.broadcast %123 : f32 to vector<128x1xf32>
    %132 = arith.mulf %131, %129 : vector<128x1xf32>
    %cst_41 = arith.constant -0.99999988 : f32
    %cst_42 = arith.constant 0.99999988 : f32
    %133 = vector.broadcast %cst_41 : f32 to vector<128x1xf32>
    %134 = arith.maximumf %133, %132 : vector<128x1xf32>
    %135 = vector.broadcast %cst_42 : f32 to vector<128x1xf32>
    %136 = arith.minimumf %135, %134 : vector<128x1xf32>
    %137 = math.log1p %136 : vector<128x1xf32>
    %cst_43 = arith.constant 0.000000e+00 : f32
    %138 = vector.broadcast %cst_43 : f32 to vector<128x1xf32>
    %139 = arith.subf %138, %136 : vector<128x1xf32>
    %140 = math.log1p %139 : vector<128x1xf32>
    %141 = arith.subf %137, %140 : vector<128x1xf32>
    %cst_44 = arith.constant 5.000000e-01 : f32
    %142 = vector.broadcast %cst_44 : f32 to vector<128x1xf32>
    %143 = arith.mulf %142, %141 : vector<128x1xf32>
    %144 = vector.broadcast %130 : f32 to vector<128x1xf32>
    %145 = arith.mulf %144, %143 : vector<128x1xf32>
    %146 = vector.broadcast %145 : vector<128x1xf32> to vector<128x128xf32>
    %147 = arith.mulf %146, %122 : vector<128x128xf32>
    %148 = vector.broadcast %129 : vector<128x1xf32> to vector<128x128xf32>
    %149 = arith.divf %147, %148 : vector<128x128xf32>
    %c0_45 = arith.constant 0 : index
    %c0_46 = arith.constant 0 : index
    %150 = vector.load %arg4[%c0_45, %c0_46] : memref<128x128xf32, #tpu.memory_space<vmem>>, vector<128x128xf32>
    tpu.vector_store %arg4[%c0_45, %c0_46], %149 {strides = array<i32>} : memref<128x128xf32, #tpu.memory_space<vmem>>, vector<128x128xf32>,
    return
  }
  func.func @transform_0(%arg0: i32) -> (i32, i32) {
    %c0_i32 = arith.constant 0 : i32
    %c0_i32_0 = arith.constant 0 : i32
    return %arg0, %c0_i32 : i32, i32
  }
  func.func @transform_1(%arg0: i32) -> (i32, i32) {
    %c0_i32 = arith.constant 0 : i32
    %c0_i32_0 = arith.constant 0 : i32
    %c0_i32_1 = arith.constant 0 : i32
    return %c0_i32, %c0_i32_0 : i32, i32
  }
  func.func @transform_2(%arg0: i32) -> (i32, i32) {
    %c0_i32 = arith.constant 0 : i32
    %c0_i32_0 = arith.constant 0 : i32
    %c0_i32_1 = arith.constant 0 : i32
    return %c0_i32, %c0_i32_0 : i32, i32
  }
  func.func @transform_3(%arg0: i32) -> (i32, i32) {
    %c0_i32 = arith.constant 0 : i32
    %c0_i32_0 = arith.constant 0 : i32
    return %arg0, %c0_i32 : i32, i32
  }
}

</mosaic_0001>

<bundles_post_ra>
// kernel: tpu_custom_call.1
= control target key start
LH: loop header
LB: loop body
LE: loop exit
PB: predicated region body
PF: predicated region fallthrough
CT: control target
= control target key end

     0   :  { %8 = vsyncpa [#allocation3], 0  ;;  %s6471_s0 = inlined_call_operand.hbm [shape: f32[256,128], index: 0, kind: input, shape index: {}]   ;;  %s6472_s1 = inlined_call_operand.hbm [shape: f32[128,128], index: 1, kind: input, shape index: {}]   ;;  %s6473_s2 = inlined_call_operand.vmem [shape: f32[1,128], index: 2, kind: input, shape index: {}]   ;;  %s6474_s3 = inlined_call_operand.hbm [shape: f32[256,128], index: 3, kind: output, shape index: {}]  }
   0x1   :  { %10 = vsyncpa [#allocation3 + $0x1], 0 }
   0x2   :  { %11 = vsyncpa [#allocation6], 0 }
   0x3   :  { %12 = vsyncpa [#allocation4], 0 }
   0x4   :  { %14 = vsyncpa [#allocation4 + $0x1], 0  ;;  %s3828_s12 = smov 0   ;;  %s3830_s13 = smov 0  }
   0x5   :  { %s3832_s14 = smov 0   ;;  %s3834_s15 = smov 0  }
   0x6 LB: > { %s3849_s16 = sadd.s32 4294967295, %s3799_s15   ;;  %s2912_s17 = sadd.s32 4294967294, %s3799_s15   ;;  %s3799_s15 = sphi %s3834_s15, %s6655_s15   ;;  %s3795_s14 = sphi %s3832_s14, %s6654_s14   ;;  %s3791_s13 = sphi %s3830_s13, %s6653_s13   ;;  %s3787_s12 = sphi %s3828_s12, %s6652_s12  }
   0x7   : > { %p40_p0 = scmp.ne.s32.totalorder %s3791_s13, %s3787_s12  ;;  %p6475_p1 = scmp.eq.s32.totalorder %s3849_s16, 0 }
   0x8   : > { %p112_p3 = scmp.eq.s32.totalorder %s2912_s17, 1  ;;  %p2913_p5 = scmp.ge.s32.totalorder %s3799_s15, 1 }
   0x9   : > { %p3858_p4 = por %p6475_p1, %p40_p0  ;;  %p119_p7 = scmp.lt.s32.totalorder %s3799_s15, 3 }
   0xa   : > { %p3863_p6 = por %p112_p3, %p40_p0  ;;  %s3801_s21 = smov [#allocation5]  }
   0xb   : > { %s6492_s18 = scalar_select %p3858_p4, 1, 0 }
   0xc   : > { %s6493_s19 = scalar_select %p3863_p6, 1, 0 }
   0xd   : > { %p3868_p8 = pnand %p2913_p5, %p119_p7  ;;  %s131_s22 = sshll.u32 %s3801_s21, 4  ;;  %s3872_s22 = int_to_ptr.vmem [resolvable:$true] %s131_s22 }
   0xe   : > { %s3884_s24 = sadd.s32 1, %s3799_s15   ;;  %s27_s25 = sadd.s32 1, %s3795_s14 }
   0xf   : > { %s6494_s20 = scalar_select %p3868_p8, 1, 0 }
  0x10   : > { %p3106_p9 = pneg %p3868_p8  ;;  %s24_s26 = ssub.s32 %s3799_s15, %s3884_s24 }
  0x11   : > { %s3671_s29 = scalar_lea.hbm %s6472_s1, 2048 }
  0x12   : > { %p3879_p11 = pnand %p3106_p9, %p6475_p1  ;;  %p3672_p12 = scmp.ne.s32.totalorder %s6472_s1, %s3671_s29 }
  0x13   : > { %p3678_p5 = scmp.lt.u32.totalorder %s3671_s29, %s6472_s1 }
  0x14   : > { %p3673_p13 = pneg %p3879_p11 }
  0x16   : > { %p3674_p0 = pnand %p3673_p13, %p3672_p12 }
  0x18   : > { %p3675_p3 = pneg %p3674_p0 }
  0x1a   : > { %p3680_p7 = pnand %p3678_p5, %p3675_p3 }
  0x1c   : > { %3683 = shalt.err (!%p3680_p7)
}
  0x1d   : > { %s3684_s7 = scalar_lea.vmem %s3872_s22, 2048  ;;  %p3692_p2 = scmp.lt.s32.totalorder %s3872_s22, %s3872_s22 }
  0x1e   : > { %p3685_p9 = scmp.ne.s32.totalorder %s3872_s22, %s3684_s7  ;;  %p3693_p6 = scmp.lt.s32.totalorder %s3684_s7, %s3684_s7 }
  0x20   : > { %p3687_p10 = pnand %p3685_p9, %p3673_p13  ;;  %p3694_p4 = por %p3693_p6, %p3692_p2 }
  0x22   : > { %p3688_p1 = pneg %p3687_p10 }
  0x24   : > { %p3695_p8 = pnand %p3694_p4, %p3688_p1 }
  0x26   : > { %3698 = shalt.err (!%p3695_p8)
}
  0x27   : > { %s3802_s8 = smov 128   ;;  %s3803_s9 = smov 8  }
  0x28   : > { %3109 = dma.hbm_to_vmem [thread:$0]  (!%p3879_p11), %s6472_s1, 2048, %s3872_s22, [#allocation6], %s3802_s8, %s3802_s8, %s3803_s9  }
  0x29   : > { %p25_p1 = scmp.eq.s32.totalorder %s24_s26, 0  ;;  %p34_p2 = scmp.ne.s32.totalorder %s3795_s14, %s3791_s13 }
  0x2a   : > { %p35_p4 = scmp.eq.s32.totalorder %s3799_s15, 0  ;;  %p3119_p6 = scmp.lt.s32.totalorder %s3799_s15, 2 }
  0x2b   : > { %s3918_s17 = scalar_select %p25_p1, %s3795_s14, %s27_s25  }
  0x2c   : > { %p36_p8 = por %p35_p4, %p34_p2  ;;  %p6496_p10 = scmp.eq.s32.totalorder %s3849_s16, 1 }
  0x2d   : > { %s148_s23 = sand.u32 1, %s3795_s14   ;;  %s2960_s27 = sshll.u32 %s3799_s15, 11 }
  0x2e   : > { %p3922_p12 = por %p6496_p10, %p34_p2  ;;  %s2916_s28 = sshll.u32 %s148_s23, 7 }
  0x2f   : > { %s3931_s4 = scalar_lea.hbm %s6471_s0, %s2960_s27  ;;  %s152_s22 = scalar_lea.vmem [#allocation2], %s2916_s28 }
  0x30   : > { %s159_s25 = sshll.u32 %s152_s22, 4  ;;  %p3933_p11 = pnand %p3119_p6, %p36_p8  ;;  %s3937_s25 = int_to_ptr.vmem [resolvable:$true] %s159_s25 }
  0x31   : > { %s3939_s5 = scalar_lea.sflag [#allocation3], %s148_s23  ;;  %s3699_s6 = scalar_lea.hbm %s3931_s4, 2048 }
  0x32   : > { %p3700_p13 = scmp.ne.s32.totalorder %s3931_s4, %s3699_s6  ;;  %p3701_p0 = pneg %p3933_p11 }
  0x33   : > { %s3704_s11 = scalar_lea.hbm %s6471_s0, 4096  ;;  %p3705_p7 = scmp.lt.u32.totalorder %s3931_s4, %s6471_s0 }
  0x34   : > { %p3702_p3 = pnand %p3701_p0, %p3700_p13  ;;  %p3706_p9 = scmp.lt.u32.totalorder %s3704_s11, %s3699_s6 }
  0x35   : > { %p3708_p2 = scmp.lt.u32.totalorder %s3699_s6, %s3931_s4 }
  0x36   : > { %p3703_p5 = pneg %p3702_p3  ;;  %p3707_p1 = por %p3706_p9, %p3705_p7 }
  0x38   : > { %p3709_p4 = por %p3708_p2, %p3707_p1 }
  0x3a   : > { %p3710_p6 = pnand %p3709_p4, %p3703_p5 }
  0x3c   : > { %3713 = shalt.err (!%p3710_p6)
}
  0x3d   : > { %s3714_s23 = scalar_lea.vmem %s3937_s25, 2048  ;;  %s3804_s29 = smov [#allocation2]  }
  0x3e   : > { %p3715_p8 = scmp.ne.s32.totalorder %s3937_s25, %s3714_s23  ;;  %s3719_s30 = sshll.u32 %s3804_s29, 4  ;;  %s3720_s30 = int_to_ptr.vmem [resolvable:$false] %s3719_s30 }
  0x3f   : > { %s3721_s22 = scalar_lea.vmem %s3720_s30, 4096  ;;  %p3722_p3 = scmp.lt.s32.totalorder %s3937_s25, %s3720_s30 }
  0x40   : > { %p3717_p10 = pnand %p3715_p8, %p3701_p0  ;;  %p3723_p7 = scmp.lt.s32.totalorder %s3721_s22, %s3714_s23 }
  0x42   : > { %p3718_p13 = pneg %p3717_p10  ;;  %p3724_p9 = por %p3723_p7, %p3722_p3 }
  0x44   : > { %p3725_p1 = pnand %p3724_p9, %p3718_p13 }
  0x46   : > { %3728 = shalt.err (!%p3725_p1)
}
  0x47   : > { %3113 = dma.hbm_to_vmem [thread:$0]  (!%p3933_p11), %s3931_s4, 2048, %s3937_s25, %s3939_s5, %s3802_s8, %s3802_s8, %s3803_s9  }
  0x48   : > { %p6499_p0 = scmp.ne.s32.totalorder %s6494_s20, 0 }
  0x4a   : > { %171 = sbr.rel (%p6499_p0) target bundleno = 1379 (0x563), region = 32 }
  0x51   : > { %s3973_s6 = sand.u32 1, %s3791_s13   ;;  %p6500_p5 = scmp.ne.s32.totalorder %s6492_s18, 0 }
  0x52   : > { %s2920_s7 = sshll.u32 %s3973_s6, 7  ;;  %s174_s10 = scalar_lea.sflag [#allocation3], %s3973_s6 }
  0x53   : > { %s3979_s26 = scalar_lea.vmem [#allocation2], %s2920_s7 }
  0x54   : > { %3774 = dma.done.wait (%p6500_p5), %s174_s10, 2048  }
  0x55   : > { %3776 = vsyncadd (%p6500_p5), %s174_s10, 4294965248  ;;  %p6501_p11 = scmp.eq.s32.totalorder %s3849_s16, 0 }
  0x57   : > { %3778 = dma.done.wait (%p6501_p11), [#allocation6], 2048   ;;  %p6502_p2 = pmov %p6501_p11 }
  0x58   : > { %v222_v0 = vld [vmem:[#allocation5] sm:$0xff]  ;;  %v223_v1 = vld [vmem:[#allocation5 + $0x8] sm:$0xff]  ;;  %v224_v2 = vld [vmem:[#allocation5 + $0x10] sm:$0xff]  ;;  %s6009_s8 = scalar_lea.vmem [#allocation7], %s2920_s7  ;;  %s2961_s9 = sshll.u32 %s3849_s16, 11 }
  0x59   : > { %3780 = vsyncadd (%p6502_p2), [#allocation6], 4294965248  ;;  %v3050_v3 = vpack.c.bf16 %v223_v1, %v222_v0  ;;  %v225_v4 = vld [vmem:[#allocation5 + $0x18] sm:$0xff]  ;;  %v226_v6 = vld [vmem:[#allocation5 + $0x20] sm:$0xff]  ;;  %s2829_s4 = sshll.u32 %s6009_s8, 4  ;;  %s6424_s11 = scalar_lea.hbm %s6474_s3, %s2961_s9  ;;  %s6426_s4 = int_to_ptr.vmem [resolvable:$true] %s2829_s4 }
  0x5a   : > { %v3054_v5 = vpack.c.bf16 %v225_v4, %v224_v2  ;;  %v227_v7 = vld [vmem:[#allocation5 + $0x28] sm:$0xff]  ;;  %v228_v9 = vld [vmem:[#allocation5 + $0x30] sm:$0xff]  ;;  %v206_v10 = vld [vmem:[%s3979_s26] sm:$0xff]  ;;  %s2816_s27 = scalar_lea.sflag [#allocation4], %s3973_s6  ;;  %s3729_s28 = scalar_lea.vmem %s6426_s4, 2048 }
  0x5b   : > { %3051 = vmatprep.subr.bf16.mxu0 %v3050_v3  ;;  %3082 = vmatprep.subr.bf16.mxu1 %v3050_v3  ;;  %v3058_v8 = vpack.c.bf16 %v227_v7, %v226_v6  ;;  %v229_v11 = vld [vmem:[#allocation5 + $0x38] sm:$0xff]  ;;  %v214_v12 = vld [vmem:[%s3979_s26 + $0x40] sm:$0xff]  ;;  %v3992_v13 = vld [vmem:[%s3979_s26 + $0x10] sm:$0xff]  ;;  %v239_v14 = vmul.f32 %v206_v10, %v206_v10  ;;  %p3730_p4 = scmp.ne.s32.totalorder %s6426_s4, %s3729_s28  ;;  %s3805_s16 = smov [#allocation7]  }
  0x5c   : > { %3053 = vmatpush3.bf16.msra.mxu0 %v3050_v3  ;;  %3090 = vmatpush3.bf16.msra.mxu1 %v3050_v3  ;;  %v241_v15 = vmul.f32 %v3992_v13, %v3992_v13  ;;  %v3062_v16 = vpack.c.bf16 %v229_v11, %v228_v9  ;;  %v3997_v17 = vld [vmem:[%s3979_s26 + $0x8] sm:$0xff]  ;;  %v4000_v18 = vld [vmem:[%s3979_s26 + $0x18] sm:$0xff]  ;;  %v230_v19 = vld [vmem:[#allocation5 + $0x40] sm:$0xff]  ;;  %v247_v42 = vmul.f32 %v214_v12, %v214_v12  ;;  %s3733_s23 = sshll.u32 %s3805_s16, 4  ;;  %s3734_s23 = int_to_ptr.vmem [resolvable:$false] %s3733_s23 }
  0x5d   : > { %3055 = vmatprep.subr.bf16.mxu0 %v3054_v5  ;;  %3083 = vmatprep.subr.bf16.mxu1 %v3054_v5  ;;  %v231_v20 = vld [vmem:[#allocation5 + $0x48] sm:$0xff]  ;;  %v242_v21 = vmul.f32 %v4000_v18, %v4000_v18  ;;  %v240_v22 = vmul.f32 %v3997_v17, %v3997_v17  ;;  %v4007_v24 = vld [vmem:[%s3979_s26 + $0x20] sm:$0xff]  ;;  %v232_v26 = vld [vmem:[#allocation5 + $0x50] sm:$0xff]  ;;  %p3731_p6 = pnand %p3730_p4, %p3922_p12  ;;  %s3735_s29 = scalar_lea.vmem %s3734_s23, 4096 }
  0x5e   : > { %3026 = vmatprep.mubr.f32.mxu0 %v206_v10  ;;  %3038 = vmatprep.mubr.f32.mxu1 %v214_v12  ;;  %v3066_v23 = vpack.c.bf16 %v231_v20, %v230_v19  ;;  %v4010_v25 = vld [vmem:[%s3979_s26 + $0x28] sm:$0xff]  ;;  %v233_v27 = vld [vmem:[#allocation5 + $0x58] sm:$0xff]  ;;  %v243_v29 = vmul.f32 %v4007_v24, %v4007_v24  ;;  %v212_v31 = vld [vmem:[%s3979_s26 + $0x30] sm:$0xff]  ;;  %p3736_p10 = scmp.lt.s32.totalorder %s6426_s4, %s3734_s23  ;;  %p3737_p13 = scmp.lt.s32.totalorder %s3735_s29, %s3729_s28 }
  0x5f   : > { %259 = vadd.xlane.f32.xlu1 %v241_v15  ;;  %255 = vadd.xlane.f32.xlu0 %v239_v14  ;;  %v244_v28 = vmul.f32 %v4010_v25, %v4010_v25  ;;  %v3070_v30 = vpack.c.bf16 %v233_v27, %v232_v26  ;;  %v213_v32 = vld [vmem:[%s3979_s26 + $0x38] sm:$0xff]  ;;  %v234_v33 = vld [vmem:[#allocation5 + $0x60] sm:$0xff]  ;;  %v235_v34 = vld [vmem:[#allocation5 + $0x68] sm:$0xff]  ;;  %v245_v36 = vmul.f32 %v212_v31, %v212_v31  ;;  %p3732_p8 = pneg %p3731_p6 }
  0x60   : > { %3057 = vmatpush3.bf16.msra.mxu0 %v3054_v5  ;;  %3091 = vmatpush3.bf16.msra.mxu1 %v3054_v5  ;;  %v246_v35 = vmul.f32 %v213_v32, %v213_v32  ;;  %v3074_v37 = vpack.c.bf16 %v235_v34, %v234_v33  ;;  %v215_v38 = vld [vmem:[%s3979_s26 + $0x48] sm:$0xff]  ;;  %v236_v39 = vld [vmem:[#allocation5 + $0x70] sm:$0xff]  ;;  %v237_v40 = vld [vmem:[#allocation5 + $0x78] sm:$0xff]  ;;  %p3738_p3 = por %p3737_p13, %p3736_p10 }
  0x61   : > { %3059 = vmatprep.subr.bf16.mxu0 %v3058_v8  ;;  %3084 = vmatprep.subr.bf16.mxu1 %v3058_v8  ;;  %v248_v41 = vmul.f32 %v215_v38, %v215_v38  ;;  %v3078_v43 = vpack.c.bf16 %v237_v40, %v236_v39  ;;  %v216_v44 = vld [vmem:[%s3979_s26 + $0x50] sm:$0xff]  ;;  %v217_v45 = vld [vmem:[%s3979_s26 + $0x58] sm:$0xff]  ;;  %v218_v48 = vld [vmem:[%s3979_s26 + $0x60] sm:$0xff] }
  0x62   : > { %v250_v46 = vmul.f32 %v217_v45, %v217_v45  ;;  %v249_v47 = vmul.f32 %v216_v44, %v216_v44  ;;  %v219_v49 = vld [vmem:[%s3979_s26 + $0x68] sm:$0xff]  ;;  %v251_v51 = vmul.f32 %v218_v48, %v218_v48  ;;  %v220_v52 = vld [vmem:[%s3979_s26 + $0x70] sm:$0xff]  ;;  %v221_v53 = vld [vmem:[%s3979_s26 + $0x78] sm:$0xff]  ;;  %p3739_p7 = pnand %p3738_p3, %p3732_p8 }
  0x63   : > { %261 = vadd.xlane.f32.xlu1 %v242_v21  ;;  %257 = vadd.xlane.f32.xlu0 %v240_v22  ;;  %v252_v50 = vmul.f32 %v219_v49, %v219_v49  ;;  %v254_v54 = vmul.f32 %v221_v53, %v221_v53  ;;  %v253_v55 = vmul.f32 %v220_v52, %v220_v52 }
  0x64   : > { %3061 = vmatpush3.bf16.msra.mxu0 %v3058_v8  ;;  %3092 = vmatpush3.bf16.msra.mxu1 %v3058_v8 }
  0x65   : > { %3063 = vmatprep.subr.bf16.mxu0 %v3062_v16  ;;  %3085 = vmatprep.subr.bf16.mxu1 %v3062_v16 }
  0x67   : > { %265 = vadd.xlane.f32.xlu1 %v244_v28  ;;  %263 = vadd.xlane.f32.xlu0 %v243_v29 }
  0x68   : > { %3065 = vmatpush3.bf16.msra.mxu0 %v3062_v16  ;;  %3093 = vmatpush3.bf16.msra.mxu1 %v3062_v16 }
  0x69   : > { %3067 = vmatprep.subr.bf16.mxu0 %v3066_v23  ;;  %3086 = vmatprep.subr.bf16.mxu1 %v3066_v23 }
  0x6b   : > { %269 = vadd.xlane.f32.xlu1 %v246_v35  ;;  %267 = vadd.xlane.f32.xlu0 %v245_v36 }
  0x6c   : > { %3069 = vmatpush3.bf16.msra.mxu0 %v3066_v23  ;;  %3094 = vmatpush3.bf16.msra.mxu1 %v3066_v23 }
  0x6d   : > { %3071 = vmatprep.subr.bf16.mxu0 %v3070_v30  ;;  %3087 = vmatprep.subr.bf16.mxu1 %v3070_v30 }
  0x6f   : > { %273 = vadd.xlane.f32.xlu1 %v248_v41  ;;  %271 = vadd.xlane.f32.xlu0 %v247_v42 }
  0x70   : > { %3073 = vmatpush3.bf16.msra.mxu0 %v3070_v30  ;;  %3095 = vmatpush3.bf16.msra.mxu1 %v3070_v30 }
  0x71   : > { %3075 = vmatprep.subr.bf16.mxu0 %v3074_v37  ;;  %3088 = vmatprep.subr.bf16.mxu1 %v3074_v37 }
  0x73   : > { %277 = vadd.xlane.f32.xlu1 %v250_v46  ;;  %275 = vadd.xlane.f32.xlu0 %v249_v47 }
  0x74   : > { %3077 = vmatpush3.bf16.msra.mxu0 %v3074_v37  ;;  %3096 = vmatpush3.bf16.msra.mxu1 %v3074_v37 }
  0x75   : > { %3079 = vmatprep.subr.bf16.mxu0 %v3078_v43  ;;  %3089 = vmatprep.subr.bf16.mxu1 %v3078_v43 }
  0x77   : > { %281 = vadd.xlane.f32.xlu1 %v252_v50  ;;  %279 = vadd.xlane.f32.xlu0 %v251_v51 }
  0x78   : > { %3081 = vmatpush3.bf16.msra.mxu0 %v3078_v43  ;;  %3097 = vmatpush3.bf16.msra.mxu1 %v3078_v43 }
  0x7b   : > { %3027 = vmatmul.mubr.f32.vlgmr.msra.gmra.mrb[0].mxu0 %v3997_v17  ;;  %3039 = vmatmul.mubr.f32.vlgmr.msra.gmra.mrb[0].mxu1 %v215_v38 }
  0x7c   : > { %3029 = vmatprep.mubr.f32.mxu0 %v3992_v13  ;;  %3041 = vmatprep.mubr.f32.mxu1 %v216_v44 }
  0x7d   : > { %285 = vadd.xlane.f32.xlu1 %v254_v54  ;;  %283 = vadd.xlane.f32.xlu0 %v253_v55 }
  0x7f   : > { %3030 = vmatmul.mubr.f32.gmra.mrb[2].mxu0 %v4000_v18  ;;  %3042 = vmatmul.mubr.f32.gmra.mrb[2].mxu1 %v217_v45 }
  0x80   : > { %3032 = vmatprep.mubr.f32.mxu0 %v4007_v24  ;;  %3044 = vmatprep.mubr.f32.mxu1 %v218_v48 }
  0x83   : > { %3033 = vmatmul.mubr.f32.gmra.mrb[4].mxu0 %v4010_v25  ;;  %3045 = vmatmul.mubr.f32.gmra.mrb[4].mxu1 %v219_v49 }
  0x84   : > { %3035 = vmatprep.mubr.f32.mxu0 %v212_v31  ;;  %3047 = vmatprep.mubr.f32.mxu1 %v220_v52 }
  0x87   : > { %3036 = vmatmul.mubr.f32.gmra.mrb[6].mxu0 %v213_v32  ;;  %3048 = vmatmul.mubr.f32.gmra.mrb[6].mxu1 %v221_v53 }
  0xec   : > { %v4056_v5 = vpop.xlane.xlu1 %259  ;;  %v4086_v20 = vpop.xlane.xlu0 %255 }
  0xed   : > { %3159 = vrsqrt.f32 %v4056_v5  ;;  %vm303_vm0 = vcmp.eq.f32.partialorder %v4056_v5, inf  ;;  %vm305_vm1 = vcmp.eq.f32.partialorder %v4056_v5, 0.0  ;;  %v306_v41 = vand.u32 2147483648, %v4056_v5 }
  0xee   : > { %3161 = vrsqrt.f32 %v4086_v20  ;;  %vm289_vm2 = vcmp.eq.f32.partialorder %v4086_v20, inf  ;;  %vm291_vm5 = vcmp.eq.f32.partialorder %v4086_v20, 0.0  ;;  %v292_v45 = vand.u32 2147483648, %v4086_v20 }
  0xf0   : > { %v4082_v18 = vpop.xlane.xlu1 %261  ;;  %v4094_v24 = vpop.xlane.xlu0 %257 }
  0xf1   : > { %3163 = vrsqrt.f32 %v4082_v18  ;;  %vm310_vm3 = vcmp.eq.f32.partialorder %v4082_v18, inf  ;;  %vm312_vm4 = vcmp.eq.f32.partialorder %v4082_v18, 0.0  ;;  %v313_v49 = vand.u32 2147483648, %v4082_v18 }
  0xf2   : > { %3165 = vrsqrt.f32 %v4094_v24  ;;  %vm296_vm6 = vcmp.eq.f32.partialorder %v4094_v24, inf  ;;  %vm298_vm7 = vcmp.eq.f32.partialorder %v4094_v24, 0.0  ;;  %v299_v55 = vand.u32 2147483648, %v4094_v24 }
  0xf4   : > { %v4092_v23 = vpop.xlane.xlu1 %265  ;;  %v4109_v30 = vpop.xlane.xlu0 %263 }
  0xf5   : > { %3167 = vrsqrt.f32 %v4092_v23  ;;  %vm324_vm8 = vcmp.eq.f32.partialorder %v4092_v23, inf  ;;  %vm326_vm9 = vcmp.eq.f32.partialorder %v4092_v23, 0.0  ;;  %vm317_vm10 = vcmp.eq.f32.partialorder %v4109_v30, inf }
  0xf6   : > { %3169 = vrsqrt.f32 %v4109_v30  ;;  %vm319_vm11 = vcmp.eq.f32.partialorder %v4109_v30, 0.0 }
  0xf7   : > { %v3160_v35 = vpop.eup %3159 }
  0xf8   : > { %v4104_v28 = vpop.xlane.xlu1 %269  ;;  %v4117_v34 = vpop.xlane.xlu0 %267  ;;  %v302_v40 = vmul.f32 %v3160_v35, %v4056_v5 }
  0xf9   : > { %v3162_v36 = vpop.eup %3161  ;;  %3171 = vrsqrt.f32 %v4104_v28  ;;  %vm338_vm12 = vcmp.eq.f32.partialorder %v4104_v28, inf  ;;  %vm340_vm13 = vcmp.eq.f32.partialorder %v4104_v28, 0.0  ;;  %vm331_vm14 = vcmp.eq.f32.partialorder %v4117_v34, inf }
  0xfa   : > { %v288_v42 = vmul.f32 %v3162_v36, %v4086_v20  ;;  %3173 = vrsqrt.f32 %v4117_v34  ;;  %v304_v51 = vsel %vm303_vm0, %v4056_v5, %v302_v40  ;;  %vm333_vm15 = vcmp.eq.f32.partialorder %v4117_v34, 0.0 }
  0xfb   : > { %v3164_v38 = vpop.eup %3163  ;;  %v334_v40 = vand.u32 2147483648, %v4117_v34 }
  0xfc   : > { %v4114_v32 = vpop.xlane.xlu1 %273  ;;  %v3166_v44 = vpop.eup %3165  ;;  %v309_v48 = vmul.f32 %v3164_v38, %v4082_v18  ;;  %v290_v53 = vsel %vm289_vm2, %v4086_v20, %v288_v42 }
  0xfd   : > { %v4135_v46 = vpop.xlane.xlu0 %271  ;;  %v295_v54 = vmul.f32 %v3166_v44, %v4094_v24  ;;  %3175 = vrsqrt.f32 %v4114_v32  ;;  %vm352_vm0 = vcmp.eq.f32.partialorder %v4114_v32, inf }
  0xff   : > { %v3168_v52 = vpop.eup %3167 }
 0x100   : > { %v4129_v43 = vpop.xlane.xlu1 %277 }
 0x101   : > { %3177 = vrsqrt.f32 %v4129_v43  ;;  %v4172_v5 = vpop.xlane.xlu0 %275  ;;  %vm366_vm2 = vcmp.eq.f32.partialorder %v4129_v43, inf }
 0x102   : > { %3179 = vrsqrt.f32 %v4135_v46 }
 0x14e   : > { %v4030_v56 = vpop.f32.mrb[0].mxu0  ;;  %v4032_v57 = vpop.f32.mrb[0].mxu1 }
 0x14f   : > { %6503 = vst [vmem:[#allocation11_spill] sm:$0xff] %v4032_v57  ;;  %v4034_v58 = vpop.f32.mrb[1].mxu0  ;;  %v561_v59 = vmul.f32 %v4030_v56, %v4030_v56  ;;  %v4038_v60 = vpop.f32.mrb[1].mxu1  ;;  %v569_v62 = vmul.f32 %v4032_v57, %v4032_v57  ;;  %v1217_v31 = vand.u32 2147483647, %v4030_v56 }
 0x150   : > { %6504 = vst [vmem:[#allocation12_spill] sm:$0xff] %v4038_v60  ;;  %v560_v61 = vmul.f32 %v4034_v58, %v4034_v58  ;;  %v568_v0 = vmul.f32 %v4038_v60, %v4038_v60  ;;  %v1216_v33 = vand.u32 2147483647, %v4034_v58 }
 0x151   : > { %578 = vadd.xlane.f32.xlu1 %v561_v59  ;;  %v327_v59 = vand.u32 2147483648, %v4092_v23 }
 0x152   : > { %576 = vadd.xlane.f32.xlu0 %v560_v61  ;;  %v4044_v63 = vpop.f32.mrb[2].mxu0  ;;  %v4048_v1 = vpop.f32.mrb[2].mxu1  ;;  %v320_v61 = vand.u32 2147483648, %v4109_v30 }
 0x153   : > { %6505 = vst [vmem:[#allocation13_spill] sm:$0xff] %v4044_v63  ;;  %6506 = vst [vmem:[#allocation14_spill] sm:$0xff] %v4048_v1  ;;  %v4050_v2 = vpop.f32.mrb[3].mxu0  ;;  %v4052_v3 = vpop.f32.mrb[3].mxu1  ;;  %v563_v4 = vmul.f32 %v4044_v63, %v4044_v63  ;;  %v571_v11 = vmul.f32 %v4048_v1, %v4048_v1  ;;  %v1219_v37 = vand.u32 2147483647, %v4044_v63 }
 0x154   : > { %6507 = vst [vmem:[#allocation15_spill] sm:$0xff] %v4050_v2  ;;  %6508 = vst [vmem:[#allocation16_spill] sm:$0xff] %v4052_v3  ;;  %v562_v6 = vmul.f32 %v4050_v2, %v4050_v2  ;;  %v570_v12 = vmul.f32 %v4052_v3, %v4052_v3  ;;  %v1218_v39 = vand.u32 2147483647, %v4050_v2 }
 0x155   : > { %594 = vadd.xlane.f32.xlu1 %v569_v62 }
 0x156   : > { %592 = vadd.xlane.f32.xlu0 %v568_v0  ;;  %v4060_v7 = vpop.f32.mrb[4].mxu0  ;;  %v4062_v8 = vpop.f32.mrb[4].mxu1  ;;  %v307_v0 = vsel %vm305_vm1, %v306_v41, %v304_v51  ;;  %vm354_vm1 = vcmp.eq.f32.partialorder %v4114_v32, 0.0 }
 0x157   : > { %6509 = vst [vmem:[#allocation17_spill] sm:$0xff] %v4060_v7  ;;  %6510 = vst [vmem:[#allocation18_spill] sm:$0xff] %v4062_v8  ;;  %v4064_v9 = vpop.f32.mrb[5].mxu0  ;;  %v4066_v10 = vpop.f32.mrb[5].mxu1  ;;  %v565_v17 = vmul.f32 %v4060_v7, %v4060_v7  ;;  %v573_v21 = vmul.f32 %v4062_v8, %v4062_v8  ;;  %v1221_v47 = vand.u32 2147483647, %v4060_v7 }
 0x158   : > { %6511 = vst [vmem:[#allocation19_spill] sm:$0xff] %v4064_v9  ;;  %6512 = vst [vmem:[#allocation20_spill] sm:$0xff] %v4066_v10  ;;  %v564_v19 = vmul.f32 %v4064_v9, %v4064_v9  ;;  %v572_v22 = vmul.f32 %v4066_v10, %v4066_v10  ;;  %v1220_v50 = vand.u32 2147483647, %v4064_v9  ;;  %v401_v20 = vmax.f32 %v307_v0, 1e-15 }
 0x159   : > { %582 = vadd.xlane.f32.xlu1 %v563_v4  ;;  %v311_v4 = vsel %vm310_vm3, %v4082_v18, %v309_v48  ;;  %vm368_vm3 = vcmp.eq.f32.partialorder %v4129_v43, 0.0  ;;  %v1229_v0 = vand.u32 2147483647, %v4062_v8 }
 0x15a   : > { %580 = vadd.xlane.f32.xlu0 %v562_v6  ;;  %v4072_v13 = vpop.f32.mrb[6].mxu0  ;;  %v4074_v14 = vpop.f32.mrb[6].mxu1 }
 0x15b   : > { %6513 = vst [vmem:[#allocation21_spill] sm:$0xff] %v4072_v13  ;;  %6514 = vst [vmem:[#allocation22_spill] sm:$0xff] %v4074_v14  ;;  %v4076_v15 = vpop.f32.mrb[7].mxu0  ;;  %v4078_v16 = vpop.f32.mrb[7].mxu1  ;;  %v567_v25 = vmul.f32 %v4072_v13, %v4072_v13  ;;  %v575_v27 = vmul.f32 %v4074_v14, %v4074_v14  ;;  %v1223_v62 = vand.u32 2147483647, %v4072_v13 }
 0x15c   : > { %6515 = vst [vmem:[#allocation23_spill] sm:$0xff] %v4076_v15  ;;  %6516 = vst [vmem:[#allocation24_spill] sm:$0xff] %v4078_v16  ;;  %v566_v26 = vmul.f32 %v4076_v15, %v4076_v15  ;;  %v574_v29 = vmul.f32 %v4078_v16, %v4078_v16  ;;  %v4165_v6 = vpop.xlane.xlu1 %281 }
 0x15d   : > { %598 = vadd.xlane.f32.xlu1 %v571_v11  ;;  %v3170_v11 = vpop.eup %3169  ;;  %3181 = vrsqrt.f32 %v4165_v6 }
 0x15e   : > { %596 = vadd.xlane.f32.xlu0 %v570_v12  ;;  %v1224_v12 = vand.u32 2147483647, %v4038_v60  ;;  %3183 = vrsqrt.f32 %v4172_v5 }
 0x15f   : > { %3185 = vrcp.f32 %v401_v20 }
 0x161   : > { %586 = vadd.xlane.f32.xlu1 %v565_v17  ;;  %v293_v17 = vsel %vm291_vm5, %v292_v45, %v290_v53  ;;  %v4206_v45 = vpop.xlane.xlu1 %285  ;;  %v355_v53 = vand.u32 2147483648, %v4114_v32  ;;  %vm347_vm5 = vcmp.eq.f32.partialorder %v4135_v46, 0.0 }
 0x162   : > { %584 = vadd.xlane.f32.xlu0 %v564_v19  ;;  %v323_v19 = vmul.f32 %v3168_v52, %v4092_v23 }
 0x164   : > { %v325_v35 = vsel %vm324_vm8, %v4092_v23, %v323_v19  ;;  %vm382_vm8 = vcmp.eq.f32.partialorder %v4165_v6, 0.0 }
 0x165   : > { %602 = vadd.xlane.f32.xlu1 %v573_v21  ;;  %v3172_v21 = vpop.eup %3171  ;;  %v328_v41 = vsel %vm326_vm9, %v327_v59, %v325_v35  ;;  %vm361_vm9 = vcmp.eq.f32.partialorder %v4172_v5, 0.0 }
 0x166   : > { %600 = vadd.xlane.f32.xlu0 %v572_v22  ;;  %v297_v22 = vsel %vm296_vm6, %v4094_v24, %v295_v54  ;;  %v337_v36 = vmul.f32 %v3172_v21, %v4104_v28  ;;  %v1227_v24 = vand.u32 2147483647, %v4048_v1  ;;  %vm380_vm6 = vcmp.eq.f32.partialorder %v4165_v6, inf }
 0x167   : > { %v300_v18 = vsel %vm298_vm7, %v299_v55, %v297_v22  ;;  %v404_v55 = vmax.f32 %v328_v41, 1e-15  ;;  %vm359_vm7 = vcmp.eq.f32.partialorder %v4172_v5, inf }
 0x168   : > { %v400_v42 = vmax.f32 %v300_v18, 1e-15 }
 0x169   : > { %590 = vadd.xlane.f32.xlu1 %v567_v25  ;;  %v314_v25 = vsel %vm312_vm4, %v313_v49, %v311_v4  ;;  %v339_v49 = vsel %vm338_vm12, %v4104_v28, %v337_v36  ;;  %vm345_vm4 = vcmp.eq.f32.partialorder %v4135_v46, inf  ;;  %v1230_v36 = vand.u32 2147483647, %v4078_v16 }
 0x16a   : > { %588 = vadd.xlane.f32.xlu0 %v566_v26  ;;  %v341_v26 = vand.u32 2147483648, %v4104_v28  ;;  %v402_v38 = vmax.f32 %v314_v25, 1e-15  ;;  %v4229_v4 = vclamps-f32 %v400_v42, 0.9999999 }
 0x16b   : > { %v4241_v28 = vclamps-f32 %v404_v55, 0.9999999 }
 0x16c   : > { %v4218_v52 = vclamps-f32 %v402_v38, 0.9999999 }
 0x16d   : > { %606 = vadd.xlane.f32.xlu1 %v575_v27  ;;  %v1225_v27 = vand.u32 2147483647, %v4032_v57 }
 0x16e   : > { %604 = vadd.xlane.f32.xlu0 %v574_v29  ;;  %v399_v29 = vmax.f32 %v293_v17, 1e-15  ;;  %v1222_v17 = vand.u32 2147483647, %v4076_v15  ;;  %v830_v8 = vmul.f32 -0.5, %v4218_v52 }
 0x170   : > { %3187 = vrcp.f32 %v399_v29  ;;  %v4209_v48 = vclamps-f32 %v399_v29, 0.9999999 }
 0x171   : > { %1234 = vadd.xlane.f32.xlu1 %v1217_v31  ;;  %v316_v31 = vmul.f32 %v3170_v11, %v4109_v30  ;;  %3189 = vrcp.f32 %v402_v38  ;;  %v342_v11 = vsel %vm340_vm13, %v341_v26, %v339_v49 }
 0x172   : > { %1232 = vadd.xlane.f32.xlu0 %v1216_v33  ;;  %v1226_v33 = vand.u32 2147483647, %v4052_v3  ;;  %3191 = vrsqrt.f32 %v4206_v45  ;;  %v406_v25 = vmax.f32 %v342_v11, 1e-15  ;;  %v4298_v11 = vsub.f32 0.0, %v4229_v4 }
 0x173   : > { %v318_v44 = vsel %vm317_vm10, %v4109_v30, %v316_v31  ;;  %3193 = vrcp.f32 %v400_v42  ;;  %v1231_v31 = vand.u32 2147483647, %v4074_v14  ;;  %v383_v42 = vand.u32 2147483648, %v4165_v6 }
 0x174   : > { %v321_v59 = vsel %vm319_vm11, %v320_v61, %v318_v44  ;;  %v369_v61 = vand.u32 2147483648, %v4129_v43  ;;  %3195 = vrcp.f32 %v404_v55  ;;  %vm394_vm10 = vcmp.eq.f32.partialorder %v4206_v45, inf }
 0x175   : > { %1238 = vadd.xlane.f32.xlu1 %v1219_v37  ;;  %v3174_v37 = vpop.eup %3173  ;;  %v403_v22 = vmax.f32 %v321_v59, 1e-15  ;;  %vm396_vm11 = vcmp.eq.f32.partialorder %v4206_v45, 0.0  ;;  %v815_v14 = vand.u32 2147483647, %v4229_v4 }
 0x176   : > { %1236 = vadd.xlane.f32.xlu0 %v1218_v39  ;;  %v4196_v39 = vclamps-f32 %v401_v20, 0.9999999  ;;  %v330_v23 = vmul.f32 %v3174_v37, %v4117_v34  ;;  %v3176_v51 = vpop.eup %3175  ;;  %v975_v15 = vand.u32 2147483647, %v4298_v11  ;;  %v806_v1 = vand.u32 2147483647, %v4209_v48 }
 0x177   : > { %v3178_v54 = vpop.eup %3177  ;;  %v351_v19 = vmul.f32 %v3176_v51, %v4114_v32 }
 0x178   : > { %v332_v30 = vsel %vm331_vm14, %v4117_v34, %v330_v23  ;;  %v365_v20 = vmul.f32 %v3178_v54, %v4129_v43  ;;  %v362_v23 = vand.u32 2147483648, %v4172_v5 }
 0x179   : > { %1242 = vadd.xlane.f32.xlu1 %v1221_v47  ;;  %v1228_v47 = vand.u32 2147483647, %v4066_v10  ;;  %v353_v37 = vsel %vm352_vm0, %v4114_v32, %v351_v19  ;;  %v4287_v32 = vclamps-f32 %v403_v22, 0.9999999  ;;  %vm4401_vm0 = vcmp.lt.f32.partialorder %v815_v14, 0.0004427343 }
 0x17a   : > { %1240 = vadd.xlane.f32.xlu0 %v1220_v50  ;;  %v4216_v50 = vpop.xlane.xlu0 %279  ;;  %v367_v34 = vsel %vm366_vm2, %v4129_v43, %v365_v20  ;;  %v809_v20 = vadd.f32 1.0, %v4229_v4  ;;  %vm4412_vm2 = vcmp.lt.f32.partialorder %v806_v1, 0.0004427343 }
 0x17b   : > { %3197 = vrsqrt.f32 %v4216_v50  ;;  %v370_v54 = vsel %vm368_vm3, %v369_v61, %v367_v34  ;;  %vm373_vm12 = vcmp.eq.f32.partialorder %v4216_v50, inf  ;;  %vm375_vm13 = vcmp.eq.f32.partialorder %v4216_v50, 0.0 }
 0x17c   : > { %v836_v60 = vadd.f32 1.0, %v4287_v32 }
 0x17d   : > { %1246 = vadd.xlane.f32.xlu1 %v1223_v62  ;;  %v3180_v62 = vpop.eup %3179 }
 0x17e   : > { %1248 = vadd.xlane.f32.xlu0 %v1224_v12  ;;  %v3182_v12 = vpop.eup %3181  ;;  %v344_v26 = vmul.f32 %v3180_v62, %v4135_v46  ;;  %v4285_v62 = vclamps-f32 %v406_v25, 0.9999999 }
 0x17f   : > { %v3184_v21 = vpop.eup %3183  ;;  %v379_v35 = vmul.f32 %v3182_v12, %v4165_v6  ;;  %v410_v12 = vmax.f32 %v370_v54, 1e-15  ;;  %v376_v54 = vand.u32 2147483648, %v4216_v50 }
 0x180   : > { %v4247_v29 = vpop.eup %3185  ;;  %v358_v38 = vmul.f32 %v3184_v21, %v4172_v5  ;;  %v346_v41 = vsel %vm345_vm4, %v4135_v46, %v344_v26  ;;  %v969_v26 = vadd.f32 1.0, %v4298_v11 }
 0x181   : > { %1250 = vadd.xlane.f32.xlu1 %v1225_v27  ;;  %v4245_v27 = vpop.xlane.xlu0 %283  ;;  %v4254_v18 = vpop.eup %3187  ;;  %v381_v49 = vsel %vm380_vm6, %v4165_v6, %v379_v35 }
 0x182   : > { %1252 = vadd.xlane.f32.xlu0 %v1226_v33  ;;  %v335_v33 = vsel %vm333_vm15, %v334_v40, %v332_v30  ;;  %v348_v40 = vand.u32 2147483648, %v4135_v46  ;;  %3199 = vrsqrt.f32 %v4245_v27  ;;  %v4272_v44 = vpop.eup %3189  ;;  %v360_v55 = vsel %vm359_vm7, %v4172_v5, %v358_v38 }
 0x183   : > { %3201 = vrcp.f32 %v403_v22  ;;  %v3192_v51 = vpop.eup %3191  ;;  %v4295_v43 = vsel %vm382_vm8, %v383_v42, %v381_v49  ;;  %v4307_v30 = vsub.f32 0.0, %v4209_v48  ;;  %v397_v22 = vand.u32 2147483648, %v4206_v45 }
 0x184   : > { %3203 = vrcp.f32 %v406_v25  ;;  %v4283_v59 = vpop.eup %3193  ;;  %v4291_v6 = vsel %vm347_vm5, %v348_v40, %v346_v41  ;;  %v393_v19 = vmul.f32 %v3192_v51, %v4206_v45  ;;  %v412_v21 = vmax.f32 %v4295_v43, 1e-15 }
 0x185   : > { %1254 = vadd.xlane.f32.xlu1 %v1227_v24  ;;  %v405_v24 = vmax.f32 %v335_v33, 1e-15  ;;  %v4300_v5 = vpop.eup %3195  ;;  %v407_v46 = vmax.f32 %v4291_v6, 1e-15  ;;  %v960_v40 = vadd.f32 1.0, %v4307_v30  ;;  %v827_v41 = vadd.f32 1.0, %v4218_v52 }
 0x186   : > { %1256 = vadd.xlane.f32.xlu0 %v1228_v47  ;;  %v356_v47 = vsel %vm354_vm1, %v355_v53, %v353_v37  ;;  %v3198_v61 = vpop.eup %3197  ;;  %v800_v37 = vadd.f32 1.0, %v4209_v48  ;;  %vm387_vm14 = vcmp.eq.f32.partialorder %v4245_v27, inf  ;;  %vm389_vm15 = vcmp.eq.f32.partialorder %v4245_v27, 0.0 }
 0x187   : > { %3205 = vrcp.f32 %v405_v24  ;;  %v408_v53 = vmax.f32 %v356_v47, 1e-15  ;;  %v372_v34 = vmul.f32 %v3198_v61, %v4216_v50  ;;  %v966_v57 = vand.u32 2147483647, %v4307_v30 }
 0x188   : > { %vm4405_vm1 = vcmp.lt.f32.partialorder %v975_v15, 0.0004427343 }
 0x189   : > { %1258 = vadd.xlane.f32.xlu1 %v1229_v0  ;;  %v4293_v0 = vclamps-f32 %v405_v24, 0.9999999  ;;  %3207 = vrcp.f32 %v408_v53  ;;  %v4316_v35 = vclamps-f32 %v408_v53, 0.9999999  ;;  %v4327_v24 = vsub.f32 0.0, %v4196_v39 }
 0x18a   : > { %1244 = vadd.xlane.f32.xlu0 %v1222_v17  ;;  %v363_v17 = vsel %vm361_vm9, %v362_v23, %v360_v55  ;;  %3209 = vrcp.f32 %v410_v12  ;;  %v818_v55 = vadd.f32 1.0, %v4196_v39  ;;  %v374_v6 = vsel %vm373_vm12, %v4216_v50, %v372_v34 }
 0x18b   : > { %3211 = vrcp.f32 %v407_v46  ;;  %v409_v25 = vmax.f32 %v363_v17, 1e-15  ;;  %v4346_v53 = vclamps-f32 %v410_v12, 0.9999999  ;;  %v390_v17 = vand.u32 2147483648, %v4245_v27 }
 0x18c   : > { %v3200_v33 = vpop.eup %3199  ;;  %3213 = vrcp.f32 %v412_v21  ;;  %v812_v12 = vmul.f32 -0.5, %v4229_v4  ;;  %v4366_v34 = vclamps-f32 %v407_v46, 0.9999999  ;;  %vm4422_vm3 = vcmp.lt.f32.partialorder %v966_v57, 0.0004427343 }
 0x18d   : > { %1262 = vadd.xlane.f32.xlu1 %v1231_v31  ;;  %v4314_v31 = vsub.f32 0.0, %v4218_v52  ;;  %v4322_v38 = vpop.eup %3201  ;;  %3215 = vrcp.f32 %v409_v25  ;;  %v386_v49 = vmul.f32 %v3200_v33, %v4245_v27  ;;  %v4358_v33 = vsel %vm375_vm13, %v376_v54, %v374_v6 }
 0x18e   : > { %1260 = vadd.xlane.f32.xlu0 %v1230_v36  ;;  %v395_v36 = vsel %vm394_vm10, %v4206_v45, %v393_v19  ;;  %3217 = vlog2.f32 %v809_v20  ;;  %v4332_v42 = vpop.eup %3203  ;;  %v978_v45 = vadd.f32 1.0, %v4327_v24  ;;  %v963_v20 = vmul.f32 -0.5, %v4307_v30 }
 0x18f   : > { %6517 = vst [vmem:[#allocation25_spill] sm:$0xff] %v4332_v42  ;;  %v398_v47 = vsel %vm396_vm11, %v397_v22, %v395_v36  ;;  %3219 = vlog2.f32 %v969_v26  ;;  %v987_v23 = vadd.f32 1.0, %v4314_v31  ;;  %v388_v61 = vsel %vm387_vm14, %v4245_v27, %v386_v49 }
 0x190   : > { %3221 = vlog2.f32 %v800_v37  ;;  %v414_v43 = vmax.f32 %v398_v47, 1e-15  ;;  %v803_v22 = vmul.f32 -0.5, %v4209_v48  ;;  %v4362_v36 = vsub.f32 0.0, %v4241_v28 }
 0x191   : > { %v4338_v51 = vpop.eup %3205  ;;  %3223 = vlog2.f32 %v960_v40  ;;  %v4368_v40 = vclamps-f32 %v412_v21, 0.9999999  ;;  %v972_v49 = vmul.f32 -0.5, %v4298_v11  ;;  %v4383_v46 = vsel %vm389_vm15, %v390_v17, %v388_v61 }
 0x192   : > { %6518 = vst [vmem:[#allocation26_spill] sm:$0xff] %v4338_v51  ;;  %3225 = vlog2.f32 %v827_v41  ;;  %v4370_v41 = vclamps-f32 %v409_v25, 0.9999999  ;;  %v4374_v50 = vclamps-f32 %v414_v43, 0.9999999  ;;  %v804_v21 = vadd.f32 1.0, %v803_v22 }
 0x193   : > { %v4349_v19 = vpop.eup %3207  ;;  %3227 = vlog2.f32 %v987_v23  ;;  %v821_v23 = vmul.f32 -0.5, %v4196_v39  ;;  %v964_v25 = vadd.f32 1.0, %v963_v20  ;;  %v1005_v16 = vadd.f32 1.0, %v4362_v36 }
 0x194   : > { %v4354_v26 = vpop.eup %3209  ;;  %3229 = vlog2.f32 %v818_v55  ;;  %v990_v55 = vmul.f32 -0.5, %v4314_v31  ;;  %v981_v27 = vmul.f32 -0.5, %v4327_v24  ;;  %v973_v61 = vadd.f32 1.0, %v972_v49 }
 0x195   : > { %6519 = vst [vmem:[#allocation27_spill] sm:$0xff] %v4354_v26  ;;  %v4364_v37 = vpop.eup %3211  ;;  %3231 = vlog2.f32 %v978_v45  ;;  %v813_v45 = vadd.f32 1.0, %v812_v12  ;;  %v822_v22 = vadd.f32 1.0, %v821_v23  ;;  %v824_v20 = vand.u32 2147483647, %v4196_v39 }
 0x196   : > { %v4372_v47 = vpop.eup %3213  ;;  %3233 = vrcp.f32 %v414_v43  ;;  %v845_v43 = vadd.f32 1.0, %v4241_v28  ;;  %v4394_v12 = vsub.f32 0.0, %v4287_v32  ;;  %v805_v7 = vmul.f32 %v4209_v48, %v804_v21 }
 0x197   : > { %6520 = vst [vmem:[#allocation28_spill] sm:$0xff] %v4372_v47  ;;  %v4378_v54 = vpop.eup %3215  ;;  %v965_v3 = vmul.f32 %v964_v25, %v4307_v30  ;;  %v814_v51 = vmul.f32 %v4229_v4, %v813_v45  ;;  %v831_v21 = vadd.f32 1.0, %v830_v8  ;;  %v833_v48 = vand.u32 2147483647, %v4218_v52 }
 0x198   : > { %v3218_v6 = vpop.eup %3217  ;;  %v991_v25 = vadd.f32 1.0, %v990_v55  ;;  %v974_v30 = vmul.f32 %v973_v61, %v4298_v11  ;;  %v993_v4 = vand.u32 2147483647, %v4314_v31  ;;  %v982_v14 = vadd.f32 1.0, %v981_v27 }
 0x199   : > { %v3220_v13 = vpop.eup %3219  ;;  %v811_v63 = vmul.f32 0.6931472, %v3218_v6  ;;  %v823_v15 = vmul.f32 %v4196_v39, %v822_v22  ;;  %v984_v8 = vand.u32 2147483647, %v4327_v24  ;;  %v832_v1 = vmul.f32 %v4218_v52, %v831_v21 }
 0x19a   : > { %v3222_v17 = vpop.eup %3221  ;;  %v971_v23 = vmul.f32 0.6931472, %v3220_v13  ;;  %vm4427_vm4 = vcmp.lt.f32.partialorder %v833_v48, 0.0004427343  ;;  %vm4432_vm5 = vcmp.lt.f32.partialorder %v993_v4, 0.0004427343  ;;  %v983_v57 = vmul.f32 %v982_v14, %v4327_v24 }
 0x19b   : > { %v3224_v10 = vpop.eup %3223  ;;  %v802_v6 = vmul.f32 0.6931472, %v3222_v17  ;;  %v817_v55 = vsel %vm4401_vm0, %v814_v51, %v811_v63  ;;  %3235 = vlog2.f32 %v845_v43  ;;  %vm4439_vm6 = vcmp.lt.f32.partialorder %v824_v20, 0.0004427343 }
 0x19c   : > { %v3226_v9 = vpop.eup %3225  ;;  %v962_v13 = vmul.f32 0.6931472, %v3224_v10  ;;  %v992_v10 = vmul.f32 %v991_v25, %v4314_v31  ;;  %vm4443_vm7 = vcmp.lt.f32.partialorder %v984_v8, 0.0004427343  ;;  %3237 = vlog2.f32 %v1005_v16 }
 0x19d   : > { %v3228_v47 = vpop.eup %3227  ;;  %v829_v27 = vmul.f32 0.6931472, %v3226_v9  ;;  %v977_v9 = vsel %vm4405_vm1, %v974_v30, %v971_v23  ;;  %v808_v31 = vsel %vm4412_vm2, %v805_v7, %v802_v6  ;;  %v848_v24 = vmul.f32 -0.5, %v4241_v28 }
 0x19e   : > { %v3230_v42 = vpop.eup %3229  ;;  %v989_v17 = vmul.f32 0.6931472, %v3228_v47  ;;  %v413_v47 = vmax.f32 %v4383_v46, 1e-15  ;;  %v996_v16 = vadd.f32 1.0, %v4394_v12  ;;  %v1105_v23 = vsub.f32 %v817_v55, %v977_v9 }
 0x19f   : > { %v3232_v45 = vpop.eup %3231  ;;  %v820_v39 = vmul.f32 0.6931472, %v3230_v42  ;;  %v968_v42 = vsel %vm4422_vm3, %v965_v3, %v962_v13  ;;  %v835_v43 = vsel %vm4427_vm4, %v832_v1, %v829_v27  ;;  %v6537_v2 = vmax.f32 %v4358_v33, 1e-15 }
 0x1a0   : > { %v4418_v26 = vpop.eup %3233  ;;  %v980_v63 = vmul.f32 0.6931472, %v3232_v45  ;;  %v995_v20 = vsel %vm4432_vm5, %v992_v10, %v989_v17  ;;  %v1104_v21 = vsub.f32 %v808_v31, %v968_v42  ;;  %v851_v48 = vand.u32 2147483647, %v4241_v28 }
 0x1a1   : > { %3239 = vrcp.f32 %v6537_v2  ;;  %v6538_v7 = vmov %v6537_v2  ;;  %v826_v49 = vsel %vm4439_vm6, %v823_v15, %v820_v39  ;;  %v4471_v25 = vsub.f32 0.0, %v4285_v62 }
 0x1a2   : > { %v4463_v3 = vclamps-f32 %v6538_v7, 0.9999999  ;;  %v986_v46 = vsel %vm4443_vm7, %v983_v57, %v980_v63  ;;  %v1107_v30 = vsub.f32 %v835_v43, %v995_v20  ;;  %v849_v6 = vadd.f32 1.0, %v848_v24 }
 0x1a3   : > { %v1008_v4 = vmul.f32 -0.5, %v4362_v36  ;;  %3241 = vlog2.f32 %v836_v60  ;;  %v1106_v33 = vsub.f32 %v826_v49, %v986_v46  ;;  %v839_v14 = vmul.f32 -0.5, %v4287_v32 }
 0x1a4   : > { %3243 = vlog2.f32 %v996_v16  ;;  %v863_v45 = vadd.f32 1.0, %v4285_v62  ;;  %v4476_v13 = vclamps-f32 %v413_v47, 0.9999999  ;;  %v1011_v15 = vand.u32 2147483647, %v4362_v36 }
 0x1a5   : > { %3245 = vrcp.f32 %v413_v47  ;;  %v4480_v8 = vsub.f32 0.0, %v4366_v34  ;;  %v4482_v55 = vmul.f32 0.5, %v1105_v23  ;;  %v4484_v11 = vmul.f32 0.5, %v1104_v21  ;;  %v3236_v1 = vpop.eup %3235 }
 0x1a6   : > { %vm4486_vm8 = vcmp.lt.f32.partialorder %v851_v48, 0.0004427343  ;;  %v1023_v17 = vadd.f32 1.0, %v4471_v25  ;;  %v4491_v61 = vmul.f32 0.5, %v1107_v30  ;;  %v850_v10 = vmul.f32 %v4241_v28, %v849_v6  ;;  %v3238_v63 = vpop.eup %3237 }
 0x1a7   : > { %v1009_v39 = vadd.f32 1.0, %v1008_v4  ;;  %v842_v22 = vand.u32 2147483647, %v4287_v32  ;;  %v4495_v57 = vmul.f32 0.5, %v1106_v33  ;;  %v840_v9 = vadd.f32 1.0, %v839_v14 }
 0x1a8   : > { %3247 = vlog2.f32 %v863_v45  ;;  %v872_v52 = vadd.f32 1.0, %v4366_v34  ;;  %vm4498_vm9 = vcmp.lt.f32.partialorder %v1011_v15, 0.0004427343  ;;  %v999_v31 = vmul.f32 -0.5, %v4394_v12 }
 0x1a9   : > { %v1002_v42 = vand.u32 2147483647, %v4394_v12  ;;  %v1032_v28 = vadd.f32 1.0, %v4480_v8  ;;  %v847_v24 = vmul.f32 0.6931472, %v3236_v1  ;;  %v866_v60 = vmul.f32 -0.5, %v4285_v62 }
 0x1aa   : > { %3249 = vlog2.f32 %v1023_v17  ;;  %v875_v47 = vmul.f32 -0.5, %v4366_v34  ;;  %v1007_v20 = vmul.f32 0.6931472, %v3238_v63  ;;  %v1010_v16 = vmul.f32 %v1009_v39, %v4362_v36 }
 0x1ab   : > { %v4507_v43 = vpop.eup %3239  ;;  %vm4510_vm10 = vcmp.lt.f32.partialorder %v842_v22, 0.0004427343  ;;  %v881_v7 = vadd.f32 1.0, %v4316_v35  ;;  %v841_v49 = vmul.f32 %v4287_v32, %v840_v9  ;;  %v869_v46 = vand.u32 2147483647, %v4285_v62 }
 0x1ac   : > { %v1026_v23 = vmul.f32 -0.5, %v4471_v25  ;;  %3251 = vlog2.f32 %v872_v52  ;;  %v1000_v48 = vadd.f32 1.0, %v999_v31  ;;  %vm4518_vm11 = vcmp.lt.f32.partialorder %v1002_v42, 0.0004427343 }
 0x1ad   : > { %v3242_v21 = vpop.eup %3241  ;;  %3253 = vlog2.f32 %v1032_v28  ;;  %v4523_v36 = vsub.f32 0.0, %v4316_v35  ;;  %v853_v4 = vsel %vm4486_vm8, %v850_v10, %v847_v24  ;;  %v867_v32 = vadd.f32 1.0, %v866_v60 }
 0x1ae   : > { %v3244_v6 = vpop.eup %3243  ;;  %v1029_v33 = vand.u32 2147483647, %v4471_v25  ;;  %v876_v14 = vadd.f32 1.0, %v875_v47  ;;  %v1013_v15 = vsel %vm4498_vm9, %v1010_v16, %v1007_v20  ;;  %v1035_v17 = vmul.f32 -0.5, %v4480_v8 }
 0x1af   : > { %v4528_v45 = vpop.eup %3245  ;;  %3255 = vlog2.f32 %v881_v7  ;;  %v884_v1 = vmul.f32 -0.5, %v4316_v35  ;;  %vm4534_vm12 = vcmp.lt.f32.partialorder %v869_v46, 0.0004427343  ;;  %v1027_v27 = vadd.f32 1.0, %v1026_v23 }
 0x1b0   : > { %6547 = vst [vmem:[#allocation29_spill] sm:$0xff] %v4528_v45  ;;  %v878_v10 = vand.u32 2147483647, %v4366_v34  ;;  %v4540_v22 = vsub.f32 0.0, %v4370_v41  ;;  %v838_v63 = vmul.f32 0.6931472, %v3242_v21  ;;  %v1001_v52 = vmul.f32 %v1000_v48, %v4394_v12 }
 0x1b1   : > { %v998_v9 = vmul.f32 0.6931472, %v3244_v6  ;;  %v1041_v51 = vadd.f32 1.0, %v4523_v36  ;;  %v1109_v42 = vsub.f32 %v853_v4, %v1013_v15  ;;  %v868_v28 = vmul.f32 %v4285_v62, %v867_v32 }
 0x1b2   : > { %v3248_v31 = vpop.eup %3247  ;;  %vm4545_vm13 = vcmp.lt.f32.partialorder %v1029_v33, 0.0004427343  ;;  %v1038_v60 = vand.u32 2147483647, %v4480_v8  ;;  %v4551_v47 = vmul.f32 %v4366_v34, %v876_v14  ;;  %v1036_v20 = vadd.f32 1.0, %v1035_v17 }
 0x1b3   : > { %v885_v16 = vadd.f32 1.0, %v884_v1  ;;  %v890_v7 = vadd.f32 1.0, %v4370_v41  ;;  %v1028_v46 = vmul.f32 %v1027_v27, %v4471_v25  ;;  %vm4555_vm14 = vcmp.lt.f32.partialorder %v878_v10, 0.0004427343 }
 0x1b4   : > { %v3250_v12 = vpop.eup %3249  ;;  %v887_v62 = vand.u32 2147483647, %v4316_v35  ;;  %v1050_v21 = vadd.f32 1.0, %v4540_v22  ;;  %v844_v48 = vsel %vm4510_vm10, %v841_v49, %v838_v63  ;;  %v1004_v34 = vsel %vm4518_vm11, %v1001_v52, %v998_v9 }
 0x1b5   : > { %v865_v6 = vmul.f32 0.6931472, %v3248_v31  ;;  %3257 = vlog2.f32 %v1041_v51  ;;  %v4565_v32 = vmul.f32 0.5, %v1109_v42  ;;  %vm4567_vm15 = vcmp.lt.f32.partialorder %v1038_v60, 0.0004427343 }
 0x1b6   : > { %v3252_v4 = vpop.eup %3251  ;;  %v1044_v33 = vmul.f32 -0.5, %v4523_v36  ;;  %v893_v14 = vmul.f32 -0.5, %v4370_v41  ;;  %v1025_v17 = vmul.f32 0.6931472, %v3250_v12  ;;  %v1037_v2 = vmul.f32 %v1036_v20, %v4480_v8 }
 0x1b7   : > { %v3254_v15 = vpop.eup %3253  ;;  %v4575_v49 = vmul.f32 %v4316_v35, %v885_v16  ;;  %3259 = vlog2.f32 %v890_v7  ;;  %v1108_v30 = vsub.f32 %v844_v48, %v1004_v34  ;;  %vm4577_vm0 = vcmp.lt.f32.partialorder %v887_v62, 0.0004427343 }
 0x1b8   : > { %3261 = vlog2.f32 %v1050_v21  ;;  %v899_v27 = vadd.f32 1.0, %v4346_v53  ;;  %v871_v63 = vsel %vm4534_vm12, %v868_v28, %v865_v6  ;;  %v874_v9 = vmul.f32 0.6931472, %v3252_v4 }
 0x1b9   : > { %v3256_v10 = vpop.eup %3255  ;;  %v1053_v52 = vmul.f32 -0.5, %v4540_v22  ;;  %v4586_v8 = vsub.f32 0.0, %v4346_v53  ;;  %v1034_v35 = vmul.f32 0.6931472, %v3254_v15  ;;  %v1045_v51 = vadd.f32 1.0, %v1044_v33 }
 0x1ba   : > { %v1047_v31 = vand.u32 2147483647, %v4523_v36  ;;  %v894_v42 = vadd.f32 1.0, %v893_v14  ;;  %v1031_v60 = vsel %vm4545_vm13, %v1028_v46, %v1025_v17  ;;  %v896_v20 = vand.u32 2147483647, %v4370_v41 }
 0x1bb   : > { %v1056_v16 = vand.u32 2147483647, %v4540_v22  ;;  %v902_v39 = vmul.f32 -0.5, %v4346_v53  ;;  %v4594_v28 = vmul.f32 0.6931472, %v3256_v10  ;;  %3263 = vlog2.f32 %v899_v27 }
 0x1bc   : > { %v908_v7 = vadd.f32 1.0, %v4463_v3  ;;  %v4598_v12 = vsub.f32 0.0, %v4463_v3  ;;  %v4600_v62 = vmul.f32 0.5, %v1108_v30  ;;  %v880_v24 = vsel %vm4555_vm14, %v4551_v47, %v874_v9 }
 0x1bd   : > { %v1054_v46 = vadd.f32 1.0, %v1053_v52  ;;  %v1059_v21 = vadd.f32 1.0, %v4586_v8  ;;  %v4606_v48 = vsub.f32 %v871_v63, %v1031_v60  ;;  %v1040_v34 = vsel %vm4567_vm15, %v1037_v2, %v1034_v35 }
 0x1be   : > { %v1046_v6 = vmul.f32 %v1045_v51, %v4523_v36  ;;  %vm4611_vm1 = vcmp.lt.f32.partialorder %v1047_v31, 0.0004427343  ;;  %v895_v14 = vmul.f32 %v4370_v41, %v894_v42  ;;  %vm4616_vm2 = vcmp.lt.f32.partialorder %v896_v20, 0.0004427343 }
 0x1bf   : > { %v3258_v33 = vpop.eup %3257  ;;  %vm4620_vm3 = vcmp.lt.f32.partialorder %v1056_v16, 0.0004427343  ;;  %v903_v15 = vadd.f32 1.0, %v902_v39  ;;  %v889_v36 = vsel %vm4577_vm0, %v4575_v49, %v4594_v28  ;;  %v905_v25 = vand.u32 2147483647, %v4346_v53 }
 0x1c0   : > { %3265 = vlog2.f32 %v908_v7  ;;  %v1068_v17 = vadd.f32 1.0, %v4598_v12  ;;  %v4630_v2 = vsub.f32 %v880_v24, %v1040_v34  ;;  %v1055_v30 = vmul.f32 %v1054_v46, %v4540_v22 }
 0x1c1   : > { %v3260_v41 = vpop.eup %3259  ;;  %3267 = vlog2.f32 %v1059_v21  ;;  %v911_v27 = vmul.f32 -0.5, %v4463_v3  ;;  %v1043_v63 = vmul.f32 0.6931472, %v3258_v33  ;;  %v1062_v9 = vmul.f32 -0.5, %v4586_v8 }
 0x1c2   : > { %v3262_v10 = vpop.eup %3261  ;;  %v914_v1 = vand.u32 2147483647, %v4463_v3  ;;  %v917_v49 = vadd.f32 1.0, %v4368_v40  ;;  %v4638_v52 = vmul.f32 %v4346_v53, %v903_v15  ;;  %v920_v35 = vmul.f32 -0.5, %v4368_v40 }
 0x1c3   : > { %v4642_v51 = vsub.f32 0.0, %v4368_v40  ;;  %v854_v22 = vadd.f32 1.0, %v4293_v0  ;;  %v892_v31 = vmul.f32 0.6931472, %v3260_v41  ;;  %vm4645_vm4 = vcmp.lt.f32.partialorder %v905_v25, 0.0004427343 }
 0x1c4   : > { %v1065_v60 = vand.u32 2147483647, %v4586_v8  ;;  %3269 = vlog2.f32 %v1068_v17  ;;  %v1052_v20 = vmul.f32 0.6931472, %v3262_v10  ;;  %v912_v16 = vadd.f32 1.0, %v911_v27 }
 0x1c5   : > { %v1071_v53 = vmul.f32 -0.5, %v4598_v12  ;;  %v4652_v39 = vsub.f32 0.0, %v4293_v0  ;;  %v3264_v28 = vpop.eup %3263  ;;  %v1049_v7 = vsel %vm4611_vm1, %v1046_v6, %v1043_v63  ;;  %v1063_v24 = vadd.f32 1.0, %v1062_v9 }
 0x1c6   : > { %vm4656_vm5 = vcmp.lt.f32.partialorder %v914_v1, 0.0004427343  ;;  %3271 = vlog2.f32 %v917_v49  ;;  %v4661_v21 = vsub.f32 0.0, %v4374_v50  ;;  %v1074_v34 = vand.u32 2147483647, %v4598_v12 }
 0x1c7   : > { %v921_v33 = vadd.f32 1.0, %v920_v35  ;;  %v1077_v15 = vadd.f32 1.0, %v4642_v51  ;;  %3273 = vlog2.f32 %v854_v22  ;;  %v898_v25 = vsel %vm4616_vm2, %v895_v14, %v892_v31 }
 0x1c8   : > { %vm4667_vm6 = vcmp.lt.f32.partialorder %v1065_v60, 0.0004427343  ;;  %v923_v4 = vand.u32 2147483647, %v4368_v40  ;;  %v935_v17 = vadd.f32 1.0, %v4374_v50  ;;  %v1058_v41 = vsel %vm4620_vm3, %v1055_v30, %v1052_v20 }
 0x1c9   : > { %v4675_v27 = vmul.f32 0.6931472, %v3264_v28  ;;  %v1072_v10 = vadd.f32 1.0, %v1071_v53  ;;  %v1014_v63 = vadd.f32 1.0, %v4652_v39  ;;  %v4678_v1 = vsub.f32 %v889_v36, %v1049_v7 }
 0x1ca   : > { %v3266_v9 = vpop.eup %3265  ;;  %v1064_v14 = vmul.f32 %v1063_v24, %v4586_v8  ;;  %v4682_v23 = vmul.f32 %v4463_v3, %v912_v16  ;;  %v1095_v49 = vadd.f32 1.0, %v4661_v21  ;;  %vm4685_vm7 = vcmp.lt.f32.partialorder %v1074_v34, 0.0004427343 }
 0x1cb   : > { %v3268_v35 = vpop.eup %3267  ;;  %v4690_v47 = vmul.f32 %v4368_v40, %v921_v33  ;;  %3275 = vlog2.f32 %v1077_v15  ;;  %v4693_v30 = vsub.f32 0.0, %v4476_v13  ;;  %v4695_v36 = vsub.f32 %v898_v25, %v1058_v41 }
 0x1cc   : > { %vm4697_vm8 = vcmp.lt.f32.partialorder %v923_v4, 0.0004427343  ;;  %v1080_v3 = vmul.f32 -0.5, %v4642_v51  ;;  %v857_v31 = vmul.f32 -0.5, %v4293_v0  ;;  %3277 = vlog2.f32 %v935_v17 }
 0x1cd   : > { %v907_v40 = vsel %vm4645_vm4, %v4638_v52, %v4675_v27  ;;  %v910_v60 = vmul.f32 0.6931472, %v3266_v9  ;;  %v1073_v20 = vmul.f32 %v1072_v10, %v4598_v12  ;;  %3279 = vlog2.f32 %v1014_v63 }
 0x1ce   : > { %v3270_v16 = vpop.eup %3269  ;;  %v1061_v28 = vmul.f32 0.6931472, %v3268_v35  ;;  %v938_v7 = vmul.f32 -0.5, %v4374_v50  ;;  %3281 = vlog2.f32 %v1095_v49  ;;  %v926_v24 = vadd.f32 1.0, %v4476_v13 }
 0x1cf   : > { %v1083_v42 = vand.u32 2147483647, %v4642_v51  ;;  %v1017_v52 = vmul.f32 -0.5, %v4652_v39  ;;  %v1086_v12 = vadd.f32 1.0, %v4693_v30  ;;  %v1081_v15 = vadd.f32 1.0, %v1080_v3 }
 0x1d0   : > { %v3272_v33 = vpop.eup %3271  ;;  %v858_v25 = vadd.f32 1.0, %v857_v31  ;;  %v860_v4 = vand.u32 2147483647, %v4293_v0  ;;  %v916_v41 = vsel %vm4656_vm5, %v4682_v23, %v910_v60  ;;  %v1070_v27 = vmul.f32 0.6931472, %v3270_v16 }
 0x1d1   : > { %v3274_v17 = vpop.eup %3273  ;;  %v1098_v10 = vmul.f32 -0.5, %v4661_v21  ;;  %v929_v63 = vmul.f32 -0.5, %v4476_v13  ;;  %v1067_v49 = vsel %vm4667_vm6, %v1064_v14, %v1061_v28  ;;  %v1020_v35 = vand.u32 2147483647, %v4652_v39 }
 0x1d2   : > { %v939_v3 = vadd.f32 1.0, %v938_v7  ;;  %v4732_v45 = vmul.f32 0.6931472, %v3272_v33  ;;  %vm4734_vm9 = vcmp.lt.f32.partialorder %v1083_v42, 0.0004427343  ;;  %v1018_v23 = vadd.f32 1.0, %v1017_v52 }
 0x1d3   : > { %v941_v60 = vand.u32 2147483647, %v4374_v50  ;;  %v4740_v16 = vmul.f32 %v1081_v15, %v4642_v51  ;;  %v4742_v6 = vmul.f32 0.6931472, %v3274_v17  ;;  %v4745_v14 = vmul.f32 %v4293_v0, %v858_v25 }
 0x1d4   : > { %vm4747_vm10 = vcmp.lt.f32.partialorder %v860_v4, 0.0004427343  ;;  %v1099_v42 = vadd.f32 1.0, %v1098_v10  ;;  %v1101_v52 = vand.u32 2147483647, %v4661_v21  ;;  %v4756_v15 = vsub.f32 %v907_v40, %v1067_v49 }
 0x1d5   : > { %v3276_v7 = vpop.eup %3275  ;;  %vm4758_vm11 = vcmp.lt.f32.partialorder %v1020_v35, 0.0004427343  ;;  %v4763_v25 = vmul.f32 %v4374_v50, %v939_v3  ;;  %v1089_v4 = vmul.f32 -0.5, %v4693_v30  ;;  %v925_v17 = vsel %vm4697_vm8, %v4690_v47, %v4732_v45 }
 0x1d6   : > { %v3278_v33 = vpop.eup %3277  ;;  %v1019_v40 = vmul.f32 %v1018_v23, %v4652_v39  ;;  %vm4773_vm12 = vcmp.lt.f32.partialorder %v941_v60, 0.0004427343  ;;  %v932_v10 = vand.u32 2147483647, %v4476_v13  ;;  %v1079_v49 = vmul.f32 0.6931472, %v3276_v7 }
 0x1d7   : > { %v3280_v22 = vpop.eup %3279  ;;  %v862_v8 = vsel %vm4747_vm10, %v4745_v14, %v4742_v6  ;;  %v1100_v39 = vmul.f32 %v1099_v42, %v4661_v21  ;;  %vm4787_vm13 = vcmp.lt.f32.partialorder %v1101_v52, 0.0004427343  ;;  %v937_v28 = vmul.f32 0.6931472, %v3278_v33 }
 0x1d8   : > { %v3282_v50 = vpop.eup %3281  ;;  %v1016_v60 = vmul.f32 0.6931472, %v3280_v22  ;;  %v1090_v6 = vadd.f32 1.0, %v1089_v4  ;;  %v1092_v22 = vand.u32 2147483647, %v4693_v30  ;;  %v4846_v47 = vmul.f32 0.5, %v4606_v48 }
 0x1d9   : > { %v1097_v42 = vmul.f32 0.6931472, %v3282_v50  ;;  %v943_v50 = vsel %vm4773_vm12, %v4763_v25, %v937_v28  ;;  %vm4833_vm2 = vcmp.lt.f32.partialorder %v932_v10, 0.0004427343 }
 0x1da   : > { %vm4837_vm3 = vcmp.lt.f32.partialorder %v1092_v22, 0.0004427343 }
 0x1db   : > { %v1103_v46 = vsel %vm4787_vm13, %v1100_v39, %v1097_v42 }
 0x1dc   : > { %v1119_v42 = vsub.f32 %v943_v50, %v1103_v46 }
 0x1de   : > { %v4708_v53 = vpop.xlane.xlu1 %578 }
 0x1df   : > { %3283 = vrsqrt.f32 %v4708_v53  ;;  %v4713_v34 = vpop.xlane.xlu0 %576  ;;  %vm617_vm14 = vcmp.eq.f32.partialorder %v4708_v53, inf  ;;  %v620_v14 = vand.u32 2147483648, %v4708_v53  ;;  %vm619_vm15 = vcmp.eq.f32.partialorder %v4708_v53, 0.0 }
 0x1e0   : > { %3285 = vrsqrt.f32 %v4713_v34  ;;  %vm610_vm0 = vcmp.eq.f32.partialorder %v4713_v34, inf  ;;  %v613_v33 = vand.u32 2147483648, %v4713_v34  ;;  %vm612_vm1 = vcmp.eq.f32.partialorder %v4713_v34, 0.0 }
 0x1e1   : > { %3287 = vlog2.f32 %v926_v24  ;;  %v1076_v24 = vsel %vm4685_vm7, %v1073_v20, %v1070_v27 }
 0x1e2   : > { %v4725_v9 = vpop.xlane.xlu1 %594  ;;  %3289 = vlog2.f32 %v1086_v12  ;;  %v930_v12 = vadd.f32 1.0, %v929_v63  ;;  %v4779_v63 = vsub.f32 %v916_v41, %v1076_v24 }
 0x1e3   : > { %v4730_v31 = vpop.xlane.xlu0 %592  ;;  %vm673_vm8 = vcmp.eq.f32.partialorder %v4725_v9, inf }
 0x1e4   : > { %v4792_v35 = vmul.f32 %v4476_v13, %v930_v12  ;;  %vm666_vm5 = vcmp.eq.f32.partialorder %v4730_v31, inf  ;;  %vm668_vm6 = vcmp.eq.f32.partialorder %v4730_v31, 0.0 }
 0x1e6   : > { %v4754_v51 = vpop.xlane.xlu1 %582 }
 0x1e7   : > { %v4766_v20 = vpop.xlane.xlu0 %580  ;;  %vm631_vm7 = vcmp.eq.f32.partialorder %v4754_v51, inf  ;;  %v634_v28 = vand.u32 2147483648, %v4754_v51  ;;  %vm633_vm10 = vcmp.eq.f32.partialorder %v4754_v51, 0.0 }
 0x1e8   : > { %3291 = vrsqrt.f32 %v4766_v20  ;;  %vm624_vm4 = vcmp.eq.f32.partialorder %v4766_v20, inf  ;;  %v627_v46 = vand.u32 2147483648, %v4766_v20 }
 0x1e9   : > { %v3284_v45 = vpop.eup %3283  ;;  %3293 = vrsqrt.f32 %v4754_v51 }
 0x1ea   : > { %v3286_v41 = vpop.eup %3285  ;;  %v616_v3 = vmul.f32 %v3284_v45, %v4708_v53  ;;  %v4795_v23 = vpop.xlane.xlu1 %598  ;;  %3295 = vrsqrt.f32 %v4730_v31 }
 0x1eb   : > { %v609_v21 = vmul.f32 %v3286_v41, %v4713_v34  ;;  %v4801_v7 = vpop.xlane.xlu0 %596  ;;  %v3288_v13 = vpop.eup %3287 }
 0x1ec   : > { %v618_v24 = vsel %vm617_vm14, %v4708_v53, %v616_v3  ;;  %v3290_v52 = vpop.eup %3289  ;;  %v1085_v53 = vsel %vm4734_vm9, %v4740_v16, %v1079_v49  ;;  %v928_v16 = vmul.f32 0.6931472, %v3288_v13  ;;  %v4854_v13 = vmul.f32 0.5, %v4678_v1 }
 0x1ed   : > { %v611_v12 = vsel %vm610_vm0, %v4713_v34, %v609_v21  ;;  %v4808_v4 = vsel %vm619_vm15, %v620_v14, %v618_v24  ;;  %v1022_v34 = vsel %vm4758_vm11, %v1019_v40, %v1016_v60  ;;  %v1091_v21 = vmul.f32 %v1090_v6, %v4693_v30 }
 0x1ee   : > { %v4812_v45 = vpop.xlane.xlu1 %586  ;;  %v721_v41 = vmax.f32 %v4808_v4, 1e-15  ;;  %v4824_v14 = vsel %vm612_vm1, %v613_v33, %v611_v12  ;;  %v1088_v49 = vmul.f32 0.6931472, %v3290_v52  ;;  %v1117_v25 = vsub.f32 %v925_v17, %v1085_v53 }
 0x1ef   : > { %3297 = vrsqrt.f32 %v4812_v45  ;;  %v4822_v3 = vpop.xlane.xlu0 %584  ;;  %v720_v39 = vmax.f32 %v4824_v14, 1e-15  ;;  %v1110_v60 = vsub.f32 %v862_v8, %v1022_v34  ;;  %v4851_v6 = vmul.f32 0.5, %v4630_v2 }
 0x1f0   : > { %3299 = vrsqrt.f32 %v4822_v3  ;;  %v739_v40 = vmul.f32 %v4283_v59, %v721_v41  ;;  %v4857_v24 = vmul.f32 0.5, %v4695_v36  ;;  %v934_v48 = vsel %vm4833_vm2, %v4792_v35, %v928_v16 }
 0x1f1   : > { %3301 = vrsqrt.f32 %v4725_v9  ;;  %v1094_v8 = vsel %vm4837_vm3, %v1091_v21, %v1088_v49  ;;  %v4868_v1 = vmul.f32 0.5, %v4756_v15  ;;  %v4871_v36 = vmul.f32 0.5, %v4779_v63 }
 0x1f2   : > { %v3292_v0 = vpop.eup %3291  ;;  %v4841_v30 = vpop.xlane.xlu1 %602  ;;  %3303 = vrsqrt.f32 %v4795_v23  ;;  %v1137_v52 = vmul.f32 %v4482_v55, %v739_v40  ;;  %v4873_v12 = vmul.f32 0.5, %v1117_v25  ;;  %v737_v35 = vmul.f32 %v4254_v18, %v720_v39 }
 0x1f3   : > { %v3294_v17 = vpop.eup %3293  ;;  %v4848_v10 = vpop.xlane.xlu0 %600  ;;  %v623_v59 = vmul.f32 %v3292_v0, %v4766_v20  ;;  %3305 = vrsqrt.f32 %v4801_v7  ;;  %v4880_v4 = vmul.f32 0.5, %v1110_v60  ;;  %v676_v55 = vand.u32 2147483648, %v4725_v9 }
 0x1f4   : > { %v3296_v2 = vpop.eup %3295  ;;  %v630_v33 = vmul.f32 %v3294_v17, %v4754_v51  ;;  %v4886_v63 = vmul.f32 0.5, %v1119_v42  ;;  %v4888_v22 = vsub.f32 %v934_v48, %v1094_v8  ;;  %v669_v21 = vand.u32 2147483648, %v4730_v31 }
 0x1f5   : > { %v665_v53 = vmul.f32 %v3296_v2, %v4730_v31  ;;  %v625_v18 = vsel %vm624_vm4, %v4766_v20, %v623_v59  ;;  %3307 = vtanh.f32 %v1137_v52  ;;  %vm626_vm9 = vcmp.eq.f32.partialorder %v4766_v20, 0.0 }
 0x1f6   : > { %v4884_v15 = vpop.xlane.xlu1 %590  ;;  %v632_v49 = vsel %vm631_vm7, %v4754_v51, %v630_v33  ;;  %3309 = vrcp.f32 %v721_v41  ;;  %v1136_v25 = vmul.f32 %v4484_v11, %v737_v35  ;;  %v4906_v40 = vsel %vm626_vm9, %v627_v46, %v625_v18 }
 0x1f7   : > { %v4894_v50 = vpop.xlane.xlu0 %588  ;;  %3311 = vrsqrt.f32 %v4884_v15  ;;  %v667_v60 = vsel %vm666_vm5, %v4730_v31, %v665_v53  ;;  %vm687_vm11 = vcmp.eq.f32.partialorder %v4795_v23, inf  ;;  %v690_v11 = vand.u32 2147483648, %v4795_v23 }
 0x1f8   : > { %v683_v41 = vand.u32 2147483648, %v4801_v7  ;;  %3313 = vtanh.f32 %v1136_v25  ;;  %v4918_v42 = vsel %vm633_vm10, %v634_v28, %v632_v49  ;;  %vm680_vm12 = vcmp.eq.f32.partialorder %v4801_v7, inf }
 0x1f9   : > { %v3298_v34 = vpop.eup %3297  ;;  %vm638_vm13 = vcmp.eq.f32.partialorder %v4822_v3, inf  ;;  %3315 = vrsqrt.f32 %v4848_v10  ;;  %v722_v8 = vmax.f32 %v4906_v40, 1e-15  ;;  %vm645_vm14 = vcmp.eq.f32.partialorder %v4812_v45, inf }
 0x1fa   : > { %v3300_v16 = vpop.eup %3299  ;;  %v644_v20 = vmul.f32 %v3298_v34, %v4812_v45  ;;  %v4916_v17 = vpop.xlane.xlu1 %606  ;;  %3317 = vrcp.f32 %v720_v39  ;;  %v4933_v52 = vsel %vm668_vm6, %v669_v21, %v667_v60  ;;  %v641_v53 = vand.u32 2147483648, %v4822_v3 }
 0x1fb   : > { %v3302_v27 = vpop.eup %3301  ;;  %v637_v0 = vmul.f32 %v3300_v16, %v4822_v3  ;;  %v4924_v51 = vpop.xlane.xlu0 %604  ;;  %3319 = vrsqrt.f32 %v4916_v17  ;;  %v723_v18 = vmax.f32 %v4918_v42, 1e-15  ;;  %v648_v46 = vand.u32 2147483648, %v4812_v45 }
 0x1fc   : > { %v3304_v59 = vpop.eup %3303  ;;  %v672_v48 = vmul.f32 %v3302_v27, %v4725_v9  ;;  %v646_v35 = vsel %vm645_vm14, %v4812_v45, %v644_v20  ;;  %vm640_vm15 = vcmp.eq.f32.partialorder %v4822_v3, 0.0  ;;  %v741_v31 = vmul.f32 %v4247_v29, %v722_v8 }
 0x1fd   : > { %v639_v2 = vsel %vm638_vm13, %v4822_v3, %v637_v0  ;;  %v3306_v33 = vpop.eup %3305  ;;  %v686_v34 = vmul.f32 %v3304_v59, %v4795_v23  ;;  %vm675_vm0 = vcmp.eq.f32.partialorder %v4725_v9, 0.0  ;;  %vm682_vm1 = vcmp.eq.f32.partialorder %v4801_v7, 0.0 }
 0x1fe   : > { %vm647_vm2 = vcmp.eq.f32.partialorder %v4812_v45, 0.0  ;;  %3321 = vrsqrt.f32 %v4841_v30  ;;  %v4949_v14 = vsel %vm640_vm15, %v641_v53, %v639_v2  ;;  %v728_v39 = vmax.f32 %v4933_v52, 1e-15  ;;  %v1235_v27 = vpop.xlane.xlu1 %1234 }
 0x1ff   : > { %v3308_v21 = vpop.eup %3307  ;;  %v674_v3 = vsel %vm673_vm8, %v4725_v9, %v672_v48  ;;  %v679_v16 = vmul.f32 %v3306_v33, %v4801_v7  ;;  %v704_v29 = vand.u32 2147483648, %v4841_v30  ;;  %v4957_v49 = vsel %vm647_vm2, %v648_v46, %v646_v35  ;;  %v1233_v0 = vpop.xlane.xlu0 %1232 }
 0x200   : > { %v3310_v25 = vpop.eup %3309  ;;  %v697_v45 = vand.u32 2147483648, %v4848_v10  ;;  %3323 = vrsqrt.f32 %v4894_v50  ;;  %v1169_v28 = vmul.f32 %v3308_v21, %v4030_v56  ;;  %v743_v60 = vmul.f32 %v4272_v44, %v723_v18 }
 0x201   : > { %v3312_v20 = vpop.eup %3311  ;;  %v688_v42 = vsel %vm687_vm11, %v4795_v23, %v686_v34  ;;  %vm689_vm3 = vcmp.eq.f32.partialorder %v4795_v23, 0.0  ;;  %vm659_vm4 = vcmp.eq.f32.partialorder %v4884_v15, inf  ;;  %v1138_v59 = vmul.f32 %v4495_v57, %v741_v31 }
 0x202   : > { %v724_v48 = vmax.f32 %v4949_v14, 1e-15  ;;  %vm661_vm5 = vcmp.eq.f32.partialorder %v4884_v15, 0.0  ;;  %v662_v56 = vand.u32 2147483648, %v4884_v15  ;;  %v1187_v2 = vmul.f32 %v3310_v25, %v1169_v28  ;;  %v3314_v35 = vpop.eup %3313 }
 0x203   : > { %v725_v44 = vmax.f32 %v4957_v49, 1e-15  ;;  %v753_v33 = vmul.f32 %v4364_v37, %v728_v39  ;;  %v681_v53 = vsel %vm680_vm12, %v4801_v7, %v679_v16  ;;  %vm694_vm6 = vcmp.eq.f32.partialorder %v4848_v10, inf  ;;  %v3316_v34 = vpop.eup %3315  ;;  %v4995_v57 = vpop.xlane.xlu0 %1236 }
 0x204   : > { %3325 = vrsqrt.f32 %v4924_v51  ;;  %vm1265_vm7 = vcmp.eq.f32.partialorder %v1235_v27, 0.0  ;;  %v658_v46 = vmul.f32 %v3312_v20, %v4884_v15  ;;  %vm715_vm8 = vcmp.eq.f32.partialorder %v4916_v17, inf  ;;  %v3318_v25 = vpop.eup %3317 }
 0x205   : > { %v4984_v31 = vsel %vm1265_vm7, 0.0, %v1187_v2  ;;  %v1168_v37 = vmul.f32 %v3314_v35, %v4034_v58  ;;  %v1139_v21 = vmul.f32 %v4491_v61, %v743_v60  ;;  %v718_v16 = vand.u32 2147483648, %v4916_v17  ;;  %v3320_v20 = vpop.eup %3319  ;;  %v5003_v60 = vpop.xlane.xlu1 %1238 }
 0x206   : > { %3327 = vtanh.f32 %v1138_v59  ;;  %v1329_v28 = vmul.f32 %v4984_v31, %v4984_v31  ;;  %v745_v27 = vmul.f32 %v4322_v38, %v724_v48  ;;  %vm701_vm9 = vcmp.eq.f32.partialorder %v4841_v30, inf }
 0x207   : > { %v1185_v2 = vmul.f32 %v3318_v25, %v1168_v37  ;;  %3329 = vrcp.f32 %v723_v18  ;;  %v747_v58 = vmul.f32 %v4300_v5, %v725_v44  ;;  %v1144_v61 = vmul.f32 %v4851_v6, %v753_v33 }
 0x208   : > { %vm696_vm10 = vcmp.eq.f32.partialorder %v4848_v10, 0.0  ;;  %vm717_vm11 = vcmp.eq.f32.partialorder %v4916_v17, 0.0  ;;  %vm1264_vm12 = vcmp.eq.f32.partialorder %v1233_v0, 0.0  ;;  %3331 = vrcp.f32 %v722_v8  ;;  %1346 = vadd.xlane.f32.xlu1 %v1329_v28  ;;  %v3322_v6 = vpop.eup %3321 }
 0x209   : > { %v677_v38 = vsel %vm675_vm0, %v676_v55, %v674_v3  ;;  %v5015_v5 = vsel %vm682_vm1, %v683_v41, %v681_v53  ;;  %v693_v18 = vmul.f32 %v3316_v34, %v4848_v10  ;;  %v660_v40 = vsel %vm659_vm4, %v4884_v15, %v658_v46  ;;  %v6588_v34 = vld [vmem:[#allocation27_spill] sm:$0xff] }
 0x20a   : > { %vm652_vm13 = vcmp.eq.f32.partialorder %v4894_v50, inf  ;;  %v5022_v8 = vsel %vm1264_vm12, 0.0, %v1185_v2  ;;  %3333 = vtanh.f32 %v1139_v21  ;;  %vm703_vm14 = vcmp.eq.f32.partialorder %v4841_v30, 0.0  ;;  %v3324_v41 = vpop.eup %3323 }
 0x20b   : > { %v714_v9 = vmul.f32 %v3320_v20, %v4916_v17  ;;  %v1328_v7 = vmul.f32 %v5022_v8, %v5022_v8  ;;  %v1140_v55 = vmul.f32 %v4600_v62, %v745_v27  ;;  %3335 = vtanh.f32 %v1144_v61  ;;  %v6590_v61 = vld [vmem:[#allocation25_spill] sm:$0xff] }
 0x20c   : > { %v1141_v3 = vmul.f32 %v4565_v32, %v747_v58  ;;  %v729_v0 = vmax.f32 %v677_v38, 1e-15  ;;  %v730_v59 = vmax.f32 %v5015_v5, 1e-15  ;;  %v5035_v33 = vsel %vm689_vm3, %v690_v11, %v688_v42  ;;  %v5052_v11 = vpop.xlane.xlu0 %1240 }
 0x20d   : > { %v700_v35 = vmul.f32 %v3322_v6, %v4841_v30  ;;  %vm654_vm15 = vcmp.eq.f32.partialorder %v4894_v50, 0.0  ;;  %vm708_vm0 = vcmp.eq.f32.partialorder %v4924_v51, inf  ;;  %1344 = vadd.xlane.f32.xlu0 %v1328_v7  ;;  %v5042_v62 = vsel %vm661_vm5, %v662_v56, %v660_v40 }
 0x20e   : > { %3337 = vrcp.f32 %v728_v39  ;;  %v731_v32 = vmax.f32 %v5035_v33, 1e-15  ;;  %v695_v23 = vsel %vm694_vm6, %v4848_v10, %v693_v18  ;;  %v755_v42 = vmul.f32 %v4349_v19, %v729_v0  ;;  %v3326_v56 = vpop.eup %3325  ;;  %v5060_v39 = vpop.xlane.xlu1 %1242 }
 0x20f   : > { %3339 = vrcp.f32 %v724_v48  ;;  %v757_v15 = vmul.f32 %v4378_v54, %v730_v59  ;;  %v651_v53 = vmul.f32 %v3324_v41, %v4894_v50  ;;  %v716_v52 = vsel %vm715_vm8, %v4916_v17, %v714_v9 }
 0x210   : > { %3341 = vtanh.f32 %v1140_v55  ;;  %v759_v46 = vmul.f32 %v6588_v34, %v731_v32  ;;  %v727_v14 = vmax.f32 %v5042_v62, 1e-15  ;;  %v1145_v48 = vmul.f32 %v4854_v13, %v755_v42  ;;  %v3328_v54 = vpop.eup %3327  ;;  %v1249_v5 = vpop.xlane.xlu0 %1248  ;;  %v6591_v55 = vld [vmem:[#allocation12_spill] sm:$0xff] }
 0x211   : > { %3343 = vtanh.f32 %v1141_v3  ;;  %v1146_v19 = vmul.f32 %v4857_v24, %v757_v15  ;;  %v702_v37 = vsel %vm701_vm9, %v4841_v30, %v700_v35  ;;  %vm710_vm1 = vcmp.eq.f32.partialorder %v4924_v51, 0.0  ;;  %v5071_v25 = vpop.eup %3329 }
 0x212   : > { %3345 = vrcp.f32 %v729_v0  ;;  %v1147_v21 = vmul.f32 %v4868_v1, %v759_v46  ;;  %v5077_v28 = vsel %vm717_vm11, %v718_v16, %v716_v52  ;;  %v707_v13 = vmul.f32 %v3326_v56, %v4924_v51  ;;  %v3332_v27 = vpop.eup %3331  ;;  %v6589_v16 = vld [vmem:[#allocation15_spill] sm:$0xff]  ;;  %v5097_v18 = vpop.xlane.xlu1 %1246  ;;  %v6594_v56 = vld [vmem:[#allocation26_spill] sm:$0xff]  ;;  %v6595_v52 = vld [vmem:[#allocation13_spill] sm:$0xff] }
 0x213   : > { %3347 = vtanh.f32 %v1145_v48  ;;  %v698_v24 = vsel %vm696_vm10, %v697_v45, %v695_v23  ;;  %v653_v1 = vsel %vm652_vm13, %v4894_v50, %v651_v53  ;;  %v711_v20 = vand.u32 2147483648, %v4924_v51 }
 0x214   : > { %3349 = vtanh.f32 %v1146_v19  ;;  %v732_v2 = vmax.f32 %v698_v24, 1e-15  ;;  %v3334_v17 = vpop.eup %3333  ;;  %v1170_v58 = vmul.f32 %v3328_v54, %v6589_v16  ;;  %v751_v38 = vmul.f32 %v6590_v61, %v727_v14 }
 0x215   : > { %3351 = vtanh.f32 %v1147_v21  ;;  %v705_v10 = vsel %vm703_vm14, %v704_v29, %v702_v37  ;;  %v3336_v45 = vpop.eup %3335  ;;  %v735_v6 = vmax.f32 %v5077_v28, 1e-15  ;;  %v709_v7 = vsel %vm708_vm0, %v4924_v51, %v707_v13  ;;  %v6596_v21 = vld [vmem:[#allocation19_spill] sm:$0xff] }
 0x216   : > { %3353 = vrcp.f32 %v730_v59  ;;  %v761_v40 = vmul.f32 %v4507_v43, %v732_v2  ;;  %v733_v9 = vmax.f32 %v705_v10, 1e-15  ;;  %v1176_v41 = vmul.f32 %v3336_v45, %v6591_v55  ;;  %v6593_v43 = vld [vmem:[#allocation28_spill] sm:$0xff]  ;;  %v1251_v48 = vpop.xlane.xlu1 %1250 }
 0x217   : > { %3355 = vrcp.f32 %v725_v44  ;;  %v6592_v30 = vand.u32 2147483648, %v4894_v50  ;;  %vm1272_vm2 = vcmp.eq.f32.partialorder %v1249_v5, 0.0  ;;  %v1189_v23 = vmul.f32 %v3332_v27, %v1170_v58  ;;  %v6597_v27 = vld [vmem:[#allocation11_spill] sm:$0xff]  ;;  %v6599_v58 = vld [vmem:[#allocation29_spill] sm:$0xff] }
 0x218   : > { %v3338_v3 = vpop.eup %3337  ;;  %v1148_v0 = vmul.f32 %v4871_v36, %v761_v40  ;;  %v763_v59 = vmul.f32 %v6593_v43, %v733_v9  ;;  %v1143_v42 = vmul.f32 %v4846_v47, %v751_v38  ;;  %3357 = vrcp.f32 %v731_v32 }
 0x219   : > { %v656_v29 = vsel %vm654_vm15, %v6592_v30, %v653_v1  ;;  %v3340_v35 = vpop.eup %3339  ;;  %v1201_v49 = vmul.f32 %v3338_v3, %v1176_v41  ;;  %v767_v15 = vmul.f32 %v4418_v26, %v735_v6  ;;  %v1171_v34 = vmul.f32 %v3334_v17, %v6595_v52  ;;  %v1253_v26 = vpop.xlane.xlu0 %1252  ;;  %v6601_v3 = vld [vmem:[#allocation17_spill] sm:$0xff] }
 0x21a   : > { %v726_v33 = vmax.f32 %v656_v29, 1e-15  ;;  %v3342_v44 = vpop.eup %3341  ;;  %3359 = vtanh.f32 %v1148_v0  ;;  %v1149_v50 = vmul.f32 %v4873_v12, %v763_v59  ;;  %v712_v47 = vsel %vm710_vm1, %v711_v20, %v709_v7  ;;  %v6600_v7 = vld [vmem:[#allocation14_spill] sm:$0xff]  ;;  %v1255_v41 = vpop.xlane.xlu1 %1254 }
 0x21b   : > { %v3344_v36 = vpop.eup %3343  ;;  %v5120_v46 = vsel %vm1272_vm2, 0.0, %v1201_v49  ;;  %3361 = vrcp.f32 %v732_v2  ;;  %vm1266_vm3 = vcmp.eq.f32.partialorder %v4995_v57, 0.0  ;;  %v1172_v13 = vmul.f32 %v3342_v44, %v6596_v21  ;;  %v6605_v21 = vld [vmem:[#allocation21_spill] sm:$0xff] }
 0x21c   : > { %v749_v53 = vmul.f32 %v6594_v56, %v726_v33  ;;  %v3346_v32 = vpop.eup %3345  ;;  %v1336_v12 = vmul.f32 %v5120_v46, %v5120_v46  ;;  %3363 = vtanh.f32 %v1149_v50  ;;  %v5128_v37 = vsel %vm1266_vm3, 0.0, %v1189_v23 }
 0x21d   : > { %v3348_v54 = vpop.eup %3347  ;;  %3365 = vtanh.f32 %v1143_v42  ;;  %v734_v24 = vmax.f32 %v712_v47, 1e-15  ;;  %v1151_v57 = vmul.f32 %v4886_v63, %v767_v15  ;;  %v1134_v20 = vmul.f32 0.5, %v4888_v22  ;;  %v1257_v30 = vpop.xlane.xlu0 %1256  ;;  %v6602_v42 = vld [vmem:[#allocation20_spill] sm:$0xff] }
 0x21e   : > { %v1142_v19 = vmul.f32 %v4880_v4, %v749_v53  ;;  %v3350_v51 = vpop.eup %3349  ;;  %v1177_v1 = vmul.f32 %v3348_v54, %v6597_v27  ;;  %1360 = vadd.xlane.f32.xlu0 %v1336_v12  ;;  %v1191_v17 = vmul.f32 %v5071_v25, %v1171_v34  ;;  %vm1273_vm4 = vcmp.eq.f32.partialorder %v1251_v48, 0.0  ;;  %v6598_v4 = vld [vmem:[#allocation16_spill] sm:$0xff]  ;;  %v6604_v48 = vld [vmem:[#allocation23_spill] sm:$0xff] }
 0x21f   : > { %v3352_v2 = vpop.eup %3351  ;;  %v1178_v16 = vmul.f32 %v3350_v51, %v6598_v4  ;;  %v765_v61 = vmul.f32 %v6599_v58, %v734_v24  ;;  %vm1274_vm5 = vcmp.eq.f32.partialorder %v1253_v26, 0.0  ;;  %v1330_v10 = vmul.f32 %v5128_v37, %v5128_v37 }
 0x220   : > { %3367 = vtanh.f32 %v1142_v19  ;;  %v3354_v38 = vpop.eup %3353  ;;  %v1203_v5 = vmul.f32 %v3346_v32, %v1177_v1  ;;  %v1193_v40 = vmul.f32 %v3340_v35, %v1172_v13  ;;  %vm1267_vm6 = vcmp.eq.f32.partialorder %v5003_v60, 0.0  ;;  %v1259_v19 = vpop.xlane.xlu1 %1258 }
 0x221   : > { %3369 = vrcp.f32 %v726_v33  ;;  %v3356_v45 = vpop.eup %3355  ;;  %v1205_v63 = vmul.f32 %v3354_v38, %v1178_v16  ;;  %v1150_v22 = vmul.f32 %v1134_v20, %v765_v61  ;;  %v1179_v55 = vmul.f32 %v3352_v2, %v6600_v7  ;;  %v1245_v34 = vpop.xlane.xlu0 %1244  ;;  %v6606_v2 = vld [vmem:[#allocation24_spill] sm:$0xff] }
 0x222   : > { %3371 = vrcp.f32 %v733_v9  ;;  %v5140_v25 = vsel %vm1273_vm4, 0.0, %v1203_v5  ;;  %1348 = vadd.xlane.f32.xlu0 %v1330_v10  ;;  %v3358_v29 = vpop.eup %3357  ;;  %v1173_v0 = vmul.f32 %v3344_v36, %v6601_v3  ;;  %v5149_v60 = vsel %vm1267_vm6, 0.0, %v1191_v17  ;;  %v6603_v36 = vld [vmem:[#allocation18_spill] sm:$0xff] }
 0x223   : > { %3373 = vtanh.f32 %v1151_v57  ;;  %v5145_v43 = vsel %vm1274_vm5, 0.0, %v1205_v63  ;;  %v1337_v9 = vmul.f32 %v5140_v25, %v5140_v25  ;;  %vm1268_vm7 = vcmp.eq.f32.partialorder %v5052_v11, 0.0  ;;  %v6607_v5 = vld [vmem:[#allocation22_spill] sm:$0xff] }
 0x224   : > { %3375 = vtanh.f32 %v1150_v22  ;;  %v3360_v59 = vpop.eup %3359  ;;  %v1338_v33 = vmul.f32 %v5145_v43, %v5145_v43  ;;  %v5156_v23 = vsel %vm1268_vm7, 0.0, %v1193_v40  ;;  %vm1275_vm8 = vcmp.eq.f32.partialorder %v1255_v41, 0.0 }
 0x225   : > { %3377 = vrcp.f32 %v727_v14  ;;  %v3362_v35 = vpop.eup %3361  ;;  %1362 = vadd.xlane.f32.xlu1 %v1337_v9  ;;  %v1180_v49 = vmul.f32 %v3360_v59, %v6602_v42  ;;  %v1207_v15 = vmul.f32 %v3358_v29, %v1179_v55  ;;  %v1195_v56 = vmul.f32 %v3356_v45, %v1173_v0  ;;  %v1261_v4 = vpop.xlane.xlu0 %1260  ;;  %v238_v9 = vld [vmem:[%s6473_s2] sm:$0x1] }
 0x226   : > { %3379 = vrcp.f32 %v734_v24  ;;  %v3364_v44 = vpop.eup %3363  ;;  %1364 = vadd.xlane.f32.xlu0 %v1338_v33  ;;  %v1331_v62 = vmul.f32 %v5149_v60, %v5149_v60  ;;  %vm1276_vm9 = vcmp.eq.f32.partialorder %v1257_v30, 0.0  ;;  %v1332_v47 = vmul.f32 %v5156_v23, %v5156_v23  ;;  %v1263_v30 = vpop.xlane.xlu1 %1262 }
 0x227   : > { %v3366_v50 = vpop.eup %3365  ;;  %v1209_v11 = vmul.f32 %v3362_v35, %v1180_v49  ;;  %v5161_v53 = vsel %vm1275_vm8, 0.0, %v1207_v15  ;;  %v1181_v52 = vmul.f32 %v3364_v44, %v6603_v36  ;;  %3381 = vrcp.f32 %v735_v6 }
 0x228   : > { %vm1269_vm10 = vcmp.eq.f32.partialorder %v5060_v39, 0.0  ;;  %v1175_v13 = vmul.f32 %v3366_v50, %v6605_v21  ;;  %v1339_v51 = vmul.f32 %v5161_v53, %v5161_v53  ;;  %vm1270_vm11 = vcmp.eq.f32.partialorder %v1245_v34, 0.0 }
 0x229   : > { %v5166_v32 = vsel %vm1276_vm9, 0.0, %v1209_v11  ;;  %1350 = vadd.xlane.f32.xlu1 %v1331_v62  ;;  %v5175_v1 = vsel %vm1269_vm10, 0.0, %v1195_v56  ;;  %vm1277_vm12 = vcmp.eq.f32.partialorder %v1259_v19, 0.0  ;;  %vm1278_vm13 = vcmp.eq.f32.partialorder %v1261_v4, 0.0 }
 0x22a   : > { %v3368_v14 = vpop.eup %3367  ;;  %1352 = vadd.xlane.f32.xlu0 %v1332_v47  ;;  %v1340_v28 = vmul.f32 %v5166_v32, %v5166_v32  ;;  %v1333_v61 = vmul.f32 %v5175_v1, %v5175_v1  ;;  %vm1271_vm14 = vcmp.eq.f32.partialorder %v5097_v18, 0.0  ;;  %vm1279_vm15 = vcmp.eq.f32.partialorder %v1263_v30, 0.0 }
 0x22b   : > { %v1174_v26 = vmul.f32 %v3368_v14, %v6604_v48  ;;  %v3370_v12 = vpop.eup %3369  ;;  %v1664_v59 = vmul.f32 %v238_v9, %v238_v9  ;;  %vm1665_vm0 = vcmask 1040384  }
 0x22c   : > { %v3372_v54 = vpop.eup %3371 }
 0x22d   : > { %v1197_v24 = vmul.f32 %v3370_v12, %v1174_v26  ;;  %v3374_v27 = vpop.eup %3373  ;;  %v1211_v57 = vmul.f32 %v3372_v54, %v1181_v52  ;;  %1366 = vadd.xlane.f32.xlu1 %v1339_v51  ;;  %v1666_v33 = vsel %vm1665_vm0, %v1664_v59, 0.0  ;;  %v1670_v52 = vlaneseq }
 0x22e   : > { %v3376_v6 = vpop.eup %3375  ;;  %1368 = vadd.xlane.f32.xlu0 %v1340_v28  ;;  %v1183_v10 = vmul.f32 %v3374_v27, %v6607_v5 }
 0x22f   : > { %v5179_v20 = vsel %vm1270_vm11, 0.0, %v1197_v24  ;;  %v3378_v39 = vpop.eup %3377  ;;  %v1182_v17 = vmul.f32 %v3376_v6, %v6606_v2  ;;  %v5184_v38 = vsel %vm1277_vm12, 0.0, %v1211_v57  ;;  %v5207_v12 = vshrl.u32 %v1670_v52, 7 }
 0x230   : > { %v3380_v16 = vpop.eup %3379  ;;  %v1199_v58 = vmul.f32 %v3378_v39, %v1175_v13  ;;  %v1334_v40 = vmul.f32 %v5179_v20, %v5179_v20  ;;  %v1341_v7 = vmul.f32 %v5184_v38, %v5184_v38 }
 0x231   : > { %v1213_v45 = vmul.f32 %v3380_v16, %v1182_v17  ;;  %1354 = vadd.xlane.f32.xlu1 %v1333_v61  ;;  %v3382_v22 = vpop.eup %3381  ;;  %v1672_v54 = vsub.s32 0, %v5207_v12 }
 0x232   : > { %1356 = vadd.xlane.f32.xlu0 %v1334_v40  ;;  %v5194_v55 = vsel %vm1271_vm14, 0.0, %v1199_v58  ;;  %v1215_v41 = vmul.f32 %v3382_v22, %v1183_v10 }
 0x233   : > { %v5189_v63 = vsel %vm1278_vm13, 0.0, %v1213_v45  ;;  %v1335_v3 = vmul.f32 %v5194_v55, %v5194_v55  ;;  %v5216_v27 = vrot.slane %v238_v9, %v1672_v54 }
 0x234   : > { %v1342_v29 = vmul.f32 %v5189_v63, %v5189_v63  ;;  %v5200_v0 = vsel %vm1279_vm15, 0.0, %v1215_v41 }
 0x235   : > { %1370 = vadd.xlane.f32.xlu1 %v1341_v7  ;;  %v1343_v18 = vmul.f32 %v5200_v0, %v5200_v0 }
 0x236   : > { %1372 = vadd.xlane.f32.xlu0 %v1342_v29 }
 0x239   : > { %1358 = vadd.xlane.f32.xlu1 %v1335_v3 }
 0x23a   : > { %1667 = vadd.xlane.f32.xlu0 %v1666_v33 }
 0x23d   : > { %1374 = vadd.xlane.f32.xlu1 %v1343_v18 }
 0x295   : > { %v1347_v35 = vpop.xlane.xlu1 %1346 }
 0x296   : > { %3383 = vrsqrt.f32 %v1347_v35  ;;  %vm1385_vm1 = vcmp.eq.f32.partialorder %v1347_v35, inf  ;;  %v1388_v15 = vand.u32 2147483648, %v1347_v35  ;;  %vm1387_vm2 = vcmp.eq.f32.partialorder %v1347_v35, 0.0 }
 0x29a   : > { %v1345_v42 = vpop.xlane.xlu0 %1344 }
 0x29b   : > { %3385 = vrsqrt.f32 %v1345_v42  ;;  %vm1378_vm3 = vcmp.eq.f32.partialorder %v1345_v42, inf  ;;  %v1381_v36 = vand.u32 2147483648, %v1345_v42  ;;  %vm1380_vm4 = vcmp.eq.f32.partialorder %v1345_v42, 0.0 }
 0x2a0   : > { %v3384_v49 = vpop.eup %3383 }
 0x2a1   : > { %v1384_v44 = vmul.f32 %v3384_v49, %v1347_v35 }
 0x2a3   : > { %v1386_v50 = vsel %vm1385_vm1, %v1347_v35, %v1384_v44 }
 0x2a4   : > { %v1389_v11 = vsel %vm1387_vm2, %v1388_v15, %v1386_v50 }
 0x2a5   : > { %v3386_v56 = vpop.eup %3385  ;;  %v1489_v14 = vmax.f32 %v1389_v11, 1e-15 }
 0x2a6   : > { %v1377_v62 = vmul.f32 %v3386_v56, %v1345_v42 }
 0x2a7   : > { %3387 = vrcp.f32 %v1489_v14  ;;  %vm1553_vm5 = vcmp.gt.f32.partialorder %v1489_v14, 0.996 }
 0x2a8   : > { %v1379_v34 = vsel %vm1378_vm3, %v1345_v42, %v1377_v62 }
 0x2a9   : > { %v1382_v47 = vsel %vm1380_vm4, %v1381_v36, %v1379_v34 }
 0x2aa   : > { %v1488_v26 = vmax.f32 %v1382_v47, 1e-15 }
 0x2ab   : > { %v1361_v48 = vpop.xlane.xlu0 %1360 }
 0x2ac   : > { %3389 = vrsqrt.f32 %v1361_v48  ;;  %vm1434_vm6 = vcmp.eq.f32.partialorder %v1361_v48, inf  ;;  %v1437_v4 = vand.u32 2147483648, %v1361_v48  ;;  %vm1436_vm7 = vcmp.eq.f32.partialorder %v1361_v48, 0.0 }
 0x2ad   : > { %3391 = vrcp.f32 %v1488_v26  ;;  %vm1552_vm9 = vcmp.gt.f32.partialorder %v1488_v26, 0.996 }
 0x2af   : > { %v1349_v19 = vpop.xlane.xlu0 %1348 }
 0x2b0   : > { %3393 = vrsqrt.f32 %v1349_v19  ;;  %vm1392_vm8 = vcmp.eq.f32.partialorder %v1349_v19, inf  ;;  %v1395_v30 = vand.u32 2147483648, %v1349_v19  ;;  %vm1394_vm10 = vcmp.eq.f32.partialorder %v1349_v19, 0.0 }
 0x2b1   : > { %v3388_v13 = vpop.eup %3387 }
 0x2b2   : > { %v1363_v21 = vpop.xlane.xlu1 %1362  ;;  %v1507_v51 = vmul.f32 %v3388_v13, %v4984_v31 }
 0x2b3   : > { %3395 = vrsqrt.f32 %v1363_v21  ;;  %v5210_v24 = vpop.xlane.xlu0 %1364  ;;  %vm1441_vm11 = vcmp.eq.f32.partialorder %v1363_v21, inf  ;;  %v1444_v49 = vand.u32 2147483648, %v1363_v21  ;;  %vm1443_vm13 = vcmp.eq.f32.partialorder %v1363_v21, 0.0 }
 0x2b4   : > { %3397 = vrsqrt.f32 %v5210_v24  ;;  %v1537_v6 = vmul.f32 0.996, %v1507_v51  ;;  %vm1448_vm12 = vcmp.eq.f32.partialorder %v5210_v24, inf  ;;  %v1451_v52 = vand.u32 2147483648, %v5210_v24 }
 0x2b5   : > { %vm1450_vm15 = vcmp.eq.f32.partialorder %v5210_v24, 0.0 }
 0x2b6   : > { %v3390_v57 = vpop.eup %3389  ;;  %v5218_v28 = vpop.xlane.xlu1 %1350  ;;  %v5224_v16 = vsel %vm1553_vm5, %v1537_v6, %v4984_v31 }
 0x2b7   : > { %v3392_v39 = vpop.eup %3391  ;;  %v1433_v2 = vmul.f32 %v3390_v57, %v1361_v48  ;;  %3399 = vrsqrt.f32 %v5218_v28  ;;  %v5221_v17 = vpop.xlane.xlu0 %1352  ;;  %v1676_v58 = vmul.f32 %v5216_v27, %v5224_v16  ;;  %vm1399_vm14 = vcmp.eq.f32.partialorder %v5218_v28, inf }
 0x2b8   : > { %v1505_v61 = vmul.f32 %v3392_v39, %v5022_v8  ;;  %3401 = vrsqrt.f32 %v5221_v17  ;;  %v1402_v47 = vand.u32 2147483648, %v5218_v28  ;;  %vm1401_vm0 = vcmp.eq.f32.partialorder %v5218_v28, 0.0 }
 0x2b9   : > { %v1435_v5 = vsel %vm1434_vm6, %v1361_v48, %v1433_v2  ;;  %1693 = vadd.xlane.f32.xlu0 %v1676_v58  ;;  %vm1406_vm3 = vcmp.eq.f32.partialorder %v5221_v17, inf  ;;  %vm1408_vm4 = vcmp.eq.f32.partialorder %v5221_v17, 0.0 }
 0x2ba   : > { %v3394_v10 = vpop.eup %3393  ;;  %v5229_v45 = vpop.xlane.xlu1 %1366  ;;  %v5232_v40 = vsel %vm1436_vm7, %v1437_v4, %v1435_v5  ;;  %v1536_v31 = vmul.f32 0.996, %v1505_v61 }
 0x2bb   : > { %v1391_v22 = vmul.f32 %v3394_v10, %v1349_v19  ;;  %3403 = vrsqrt.f32 %v5229_v45  ;;  %v5235_v7 = vpop.xlane.xlu0 %1368  ;;  %v1496_v29 = vmax.f32 %v5232_v40, 1e-15  ;;  %vm1455_vm1 = vcmp.eq.f32.partialorder %v5229_v45, inf }
 0x2bc   : > { %3405 = vrsqrt.f32 %v5235_v7  ;;  %v5242_v33 = vsel %vm1552_vm9, %v1536_v31, %v5022_v8  ;;  %vm1457_vm2 = vcmp.eq.f32.partialorder %v5229_v45, 0.0  ;;  %vm1462_vm5 = vcmp.eq.f32.partialorder %v5235_v7, inf }
 0x2bd   : > { %v3396_v41 = vpop.eup %3395  ;;  %v1393_v3 = vsel %vm1392_vm8, %v1349_v19, %v1391_v22  ;;  %v1675_v44 = vmul.f32 %v5216_v27, %v5242_v33  ;;  %v1409_v22 = vand.u32 2147483648, %v5221_v17  ;;  %vm1560_vm7 = vcmp.gt.f32.partialorder %v1496_v29, 0.996 }
 0x2be   : > { %v3398_v18 = vpop.eup %3397  ;;  %v1440_v9 = vmul.f32 %v3396_v41, %v1363_v21  ;;  %v5238_v59 = vpop.xlane.xlu1 %1354  ;;  %v5246_v42 = vsel %vm1394_vm10, %v1395_v30, %v1393_v3  ;;  %vm1464_vm8 = vcmp.eq.f32.partialorder %v5235_v7, 0.0 }
 0x2bf   : > { %v1447_v35 = vmul.f32 %v3398_v18, %v5210_v24  ;;  %3407 = vrsqrt.f32 %v5238_v59  ;;  %v5256_v11 = vpop.xlane.xlu0 %1356  ;;  %1691 = vadd.xlane.f32.xlu1 %v1675_v44  ;;  %v1490_v14 = vmax.f32 %v5246_v42, 1e-15  ;;  %vm1413_vm6 = vcmp.eq.f32.partialorder %v5238_v59, inf }
 0x2c0   : > { %3409 = vrcp.f32 %v1496_v29  ;;  %v1442_v8 = vsel %vm1441_vm11, %v1363_v21, %v1440_v9  ;;  %v1465_v44 = vand.u32 2147483648, %v5235_v7  ;;  %vm1415_vm9 = vcmp.eq.f32.partialorder %v5238_v59, 0.0 }
 0x2c1   : > { %v3400_v15 = vpop.eup %3399  ;;  %v5258_v62 = vsel %vm1443_vm13, %v1444_v49, %v1442_v8  ;;  %v1449_v36 = vsel %vm1448_vm12, %v5210_v24, %v1447_v35  ;;  %v1458_v24 = vand.u32 2147483648, %v5229_v45  ;;  %vm1420_vm13 = vcmp.eq.f32.partialorder %v5256_v11, inf }
 0x2c2   : > { %v1398_v50 = vmul.f32 %v3400_v15, %v5218_v28  ;;  %v5254_v56 = vpop.xlane.xlu1 %1370  ;;  %v3402_v34 = vpop.eup %3401  ;;  %v1497_v48 = vmax.f32 %v5258_v62, 1e-15  ;;  %v5272_v21 = vsel %vm1450_vm15, %v1451_v52, %v1449_v36 }
 0x2c3   : > { %3411 = vrsqrt.f32 %v5254_v56  ;;  %v1405_v57 = vmul.f32 %v3402_v34, %v5221_v17  ;;  %v1498_v2 = vmax.f32 %v5272_v21, 1e-15  ;;  %v1416_v34 = vand.u32 2147483648, %v5238_v59 }
 0x2c4   : > { %3413 = vrcp.f32 %v1490_v14  ;;  %v1400_v19 = vsel %vm1399_vm14, %v5218_v28, %v1398_v50  ;;  %v5284_v28 = vpop.xlane.xlu0 %1372  ;;  %vm1469_vm10 = vcmp.eq.f32.partialorder %v5254_v56, inf  ;;  %vm1561_vm11 = vcmp.gt.f32.partialorder %v1497_v48, 0.996 }
 0x2c5   : > { %v3404_v26 = vpop.eup %3403  ;;  %3415 = vrcp.f32 %v1497_v48  ;;  %v5277_v51 = vsel %vm1401_vm0, %v1402_v47, %v1400_v19  ;;  %v1407_v41 = vsel %vm1406_vm3, %v5221_v17, %v1405_v57  ;;  %v1472_v57 = vand.u32 2147483648, %v5254_v56 }
 0x2c6   : > { %v1454_v13 = vmul.f32 %v3404_v26, %v5229_v45  ;;  %v3406_v6 = vpop.eup %3405  ;;  %3417 = vrsqrt.f32 %v5256_v11  ;;  %v1491_v39 = vmax.f32 %v5277_v51, 1e-15  ;;  %v5292_v5 = vpop.xlane.xlu1 %1358  ;;  %v5310_v35 = vsel %vm1408_vm4, %v1409_v22, %v1407_v41 }
 0x2c7   : > { %v1461_v31 = vmul.f32 %v3406_v6, %v5235_v7  ;;  %v1492_v47 = vmax.f32 %v5310_v35, 1e-15  ;;  %v1616_v6 = vmul.f32 %v5242_v33, %v5242_v33  ;;  %vm1471_vm12 = vcmp.eq.f32.partialorder %v5254_v56, 0.0 }
 0x2c8   : > { %v1456_v4 = vsel %vm1455_vm1, %v5229_v45, %v1454_v13  ;;  %3419 = vrcp.f32 %v1491_v39  ;;  %vm1554_vm14 = vcmp.gt.f32.partialorder %v1490_v14, 0.996  ;;  %vm1427_vm15 = vcmp.eq.f32.partialorder %v5292_v5, inf }
 0x2c9   : > { %v3408_v58 = vpop.eup %3407  ;;  %v5289_v61 = vsel %vm1457_vm2, %v1458_v24, %v1456_v4  ;;  %3421 = vrsqrt.f32 %v5284_v28  ;;  %v1463_v15 = vsel %vm1462_vm5, %v5235_v7, %v1461_v31  ;;  %vm1476_vm0 = vcmp.eq.f32.partialorder %v5284_v28, inf }
 0x2ca   : > { %v3410_v10 = vpop.eup %3409  ;;  %v1412_v45 = vmul.f32 %v3408_v58, %v5238_v59  ;;  %3423 = vrcp.f32 %v1498_v2  ;;  %v1499_v3 = vmax.f32 %v5289_v61, 1e-15  ;;  %v5318_v50 = vpop.xlane.xlu1 %1374  ;;  %vm1555_vm1 = vcmp.gt.f32.partialorder %v1491_v39, 0.996 }
 0x2cb   : > { %v1521_v30 = vmul.f32 %v3410_v10, %v5120_v46  ;;  %3425 = vrsqrt.f32 %v5292_v5  ;;  %vm1562_vm2 = vcmp.gt.f32.partialorder %v1498_v2, 0.996  ;;  %vm1422_vm3 = vcmp.eq.f32.partialorder %v5256_v11, 0.0 }
 0x2cc   : > { %3427 = vrcp.f32 %v1499_v3  ;;  %v1414_v52 = vsel %vm1413_vm6, %v5238_v59, %v1412_v45  ;;  %v1430_v39 = vand.u32 2147483648, %v5292_v5  ;;  %v1479_v2 = vand.u32 2147483648, %v5284_v28 }
 0x2cd   : > { %v3412_v18 = vpop.eup %3411  ;;  %v1544_v9 = vmul.f32 0.996, %v1521_v30  ;;  %3429 = vrsqrt.f32 %v5318_v50  ;;  %v5336_v13 = vsel %vm1415_vm9, %v1416_v34, %v1414_v52  ;;  %vm1563_vm4 = vcmp.gt.f32.partialorder %v1499_v3, 0.996 }
 0x2ce   : > { %v3414_v49 = vpop.eup %3413  ;;  %v1468_v17 = vmul.f32 %v3412_v18, %v5254_v56  ;;  %3431 = vrcp.f32 %v1492_v47  ;;  %v1493_v41 = vmax.f32 %v5336_v13, 1e-15  ;;  %vm1429_vm5 = vcmp.eq.f32.partialorder %v5292_v5, 0.0 }
 0x2cf   : > { %v3416_v8 = vpop.eup %3415  ;;  %v5321_v36 = vsel %vm1560_vm7, %v1544_v9, %v5120_v46  ;;  %v1509_v19 = vmul.f32 %v3414_v49, %v5128_v37  ;;  %v5332_v46 = vsel %vm1464_vm8, %v1465_v44, %v1463_v15  ;;  %v1617_v49 = vmul.f32 %v5224_v16, %v5224_v16 }
 0x2d0   : > { %v1683_v40 = vmul.f32 %v5216_v27, %v5321_v36  ;;  %v1523_v29 = vmul.f32 %v3416_v8, %v5140_v25  ;;  %v3418_v26 = vpop.eup %3417  ;;  %v1470_v59 = vsel %vm1469_vm10, %v5254_v56, %v1468_v17  ;;  %v1500_v22 = vmax.f32 %v5332_v46, 1e-15 }
 0x2d1   : > { %v1419_v58 = vmul.f32 %v3418_v26, %v5256_v11  ;;  %v1538_v48 = vmul.f32 0.996, %v1509_v19  ;;  %v5357_v18 = vsel %vm1471_vm12, %v1472_v57, %v1470_v59  ;;  %v1624_v44 = vmul.f32 %v5321_v36, %v5321_v36 }
 0x2d2   : > { %1707 = vadd.xlane.f32.xlu1 %v1683_v40  ;;  %v1545_v7 = vmul.f32 0.996, %v1523_v29  ;;  %v3420_v24 = vpop.eup %3419  ;;  %3433 = vrcp.f32 %v1500_v22  ;;  %v1501_v17 = vmax.f32 %v5357_v18, 1e-15  ;;  %v1423_v40 = vand.u32 2147483648, %v5256_v11 }
 0x2d3   : > { %v3422_v4 = vpop.eup %3421  ;;  %v1511_v30 = vmul.f32 %v3420_v24, %v5149_v60  ;;  %v1421_v56 = vsel %vm1420_vm13, %v5256_v11, %v1419_v58  ;;  %v5370_v15 = vsel %vm1554_vm14, %v1538_v48, %v5128_v37  ;;  %3435 = vrcp.f32 %v1493_v41 }
 0x2d4   : > { %v5346_v10 = vsel %vm1561_vm11, %v1545_v7, %v5140_v25  ;;  %v3424_v31 = vpop.eup %3423  ;;  %v1475_v34 = vmul.f32 %v3422_v4, %v5284_v28  ;;  %v1677_v29 = vmul.f32 %v5216_v27, %v5370_v15  ;;  %3437 = vrcp.f32 %v1501_v17 }
 0x2d5   : > { %v1684_v62 = vmul.f32 %v5216_v27, %v5346_v10  ;;  %v3426_v45 = vpop.eup %3425  ;;  %v1525_v25 = vmul.f32 %v3424_v31, %v5145_v43  ;;  %v1539_v42 = vmul.f32 0.996, %v1511_v30  ;;  %v1625_v26 = vmul.f32 %v5346_v10, %v5346_v10 }
 0x2d6   : > { %1632 = vadd.xlane.f32.xlu1 %v1616_v6  ;;  %v3428_v9 = vpop.eup %3427  ;;  %v1426_v52 = vmul.f32 %v3426_v45, %v5292_v5  ;;  %v5395_v7 = vsel %vm1422_vm3, %v1423_v40, %v1421_v56  ;;  %vm1478_vm6 = vcmp.eq.f32.partialorder %v5284_v28, 0.0  ;;  %vm1483_vm7 = vcmp.eq.f32.partialorder %v5318_v50, inf }
 0x2d7   : > { %1709 = vadd.xlane.f32.xlu0 %v1684_v62  ;;  %v1546_v8 = vmul.f32 0.996, %v1525_v25  ;;  %v1527_v14 = vmul.f32 %v3428_v9, %v5161_v53  ;;  %v3430_v37 = vpop.eup %3429  ;;  %v5398_v51 = vsel %vm1555_vm1, %v1539_v42, %v5149_v60  ;;  %v1494_v6 = vmax.f32 %v5395_v7, 1e-15 }
 0x2d8   : > { %v3432_v24 = vpop.eup %3431  ;;  %v1428_v11 = vsel %vm1427_vm15, %v5292_v5, %v1426_v52  ;;  %v1482_v57 = vmul.f32 %v3430_v37, %v5318_v50  ;;  %v1678_v59 = vmul.f32 %v5216_v27, %v5398_v51  ;;  %v1486_v5 = vand.u32 2147483648, %v5318_v50 }
 0x2d9   : > { %v5391_v19 = vsel %vm1562_vm2, %v1546_v8, %v5145_v43  ;;  %v1547_v21 = vmul.f32 0.996, %v1527_v14  ;;  %v1477_v43 = vsel %vm1476_vm0, %v5284_v28, %v1475_v34  ;;  %v1513_v4 = vmul.f32 %v3432_v24, %v5156_v23 }
 0x2da   : > { %1648 = vadd.xlane.f32.xlu1 %v1624_v44  ;;  %v1685_v60 = vmul.f32 %v5216_v27, %v5391_v19  ;;  %v5419_v58 = vsel %vm1429_vm5, %v1430_v39, %v1428_v11  ;;  %v5421_v31 = vsel %vm1478_vm6, %v1479_v2, %v1477_v43  ;;  %v1484_v28 = vsel %vm1483_vm7, %v5318_v50, %v1482_v57 }
 0x2db   : > { %1634 = vadd.xlane.f32.xlu0 %v1617_v49  ;;  %v5425_v3 = vsel %vm1563_vm4, %v1547_v21, %v5161_v53  ;;  %v1618_v48 = vmul.f32 %v5370_v15, %v5370_v15  ;;  %3439 = vrcp.f32 %v1494_v6  ;;  %v1495_v45 = vmax.f32 %v5419_v58, 1e-15 }
 0x2dc   : > { %v3434_v61 = vpop.eup %3433  ;;  %v1502_v30 = vmax.f32 %v5421_v31, 1e-15  ;;  %v1686_v53 = vmul.f32 %v5216_v27, %v5425_v3  ;;  %v1540_v25 = vmul.f32 0.996, %v1513_v4  ;;  %vm1485_vm8 = vcmp.eq.f32.partialorder %v5318_v50, 0.0 }
 0x2dd   : > { %v3436_v62 = vpop.eup %3435  ;;  %v1529_v9 = vmul.f32 %v3434_v61, %v5166_v32  ;;  %v5440_v44 = vsel %vm1485_vm8, %v1486_v5, %v1484_v28  ;;  %v1619_v8 = vmul.f32 %v5398_v51, %v5398_v51  ;;  %v1626_v52 = vmul.f32 %v5391_v19, %v5391_v19 }
 0x2de   : > { %1695 = vadd.xlane.f32.xlu1 %v1677_v29  ;;  %v1515_v49 = vmul.f32 %v3436_v62, %v5175_v1  ;;  %v3438_v56 = vpop.eup %3437  ;;  %vm1556_vm9 = vcmp.gt.f32.partialorder %v1492_v47, 0.996  ;;  %3441 = vrcp.f32 %v1502_v30  ;;  %v1503_v42 = vmax.f32 %v5440_v44, 1e-15 }
 0x2df   : > { %1650 = vadd.xlane.f32.xlu0 %v1625_v26  ;;  %v5449_v34 = vsel %vm1556_vm9, %v1540_v25, %v5156_v23  ;;  %v1548_v50 = vmul.f32 0.996, %v1529_v9  ;;  %3443 = vrcp.f32 %v1495_v45  ;;  %v1531_v40 = vmul.f32 %v3438_v56, %v5184_v38 }
 0x2e0   : > { %v1541_v14 = vmul.f32 0.996, %v1515_v49  ;;  %v1679_v37 = vmul.f32 %v5216_v27, %v5449_v34  ;;  %vm1564_vm10 = vcmp.gt.f32.partialorder %v1500_v22, 0.996  ;;  %v1627_v23 = vmul.f32 %v5425_v3, %v5425_v3 }
 0x2e1   : > { %vm1557_vm11 = vcmp.gt.f32.partialorder %v1493_v41, 0.996  ;;  %v5464_v35 = vsel %vm1564_vm10, %v1548_v50, %v5166_v32  ;;  %3445 = vrcp.f32 %v1503_v42  ;;  %v1549_v26 = vmul.f32 0.996, %v1531_v40 }
 0x2e2   : > { %1711 = vadd.xlane.f32.xlu1 %v1685_v60  ;;  %v5467_v29 = vsel %vm1557_vm11, %v1541_v14, %v5175_v1  ;;  %v1687_v46 = vmul.f32 %v5216_v27, %v5464_v35  ;;  %vm1565_vm12 = vcmp.gt.f32.partialorder %v1501_v17, 0.996  ;;  %v1620_v24 = vmul.f32 %v5449_v34, %v5449_v34 }
 0x2e3   : > { %1697 = vadd.xlane.f32.xlu0 %v1678_v59  ;;  %v1680_v22 = vmul.f32 %v5216_v27, %v5467_v29  ;;  %v5477_v41 = vsel %vm1565_vm12, %v1549_v26, %v5184_v38  ;;  %v1628_v38 = vmul.f32 %v5464_v35, %v5464_v35  ;;  %vm1558_vm13 = vcmp.gt.f32.partialorder %v1494_v6, 0.996 }
 0x2e4   : > { %v1688_v21 = vmul.f32 %v5216_v27, %v5477_v41  ;;  %v1621_v39 = vmul.f32 %v5467_v29, %v5467_v29  ;;  %vm1566_vm14 = vcmp.gt.f32.partialorder %v1502_v30, 0.996  ;;  %v1629_v7 = vmul.f32 %v5477_v41, %v5477_v41 }
 0x2e5   : > { %v3440_v47 = vpop.eup %3439  ;;  %vm1559_vm15 = vcmp.gt.f32.partialorder %v1495_v45, 0.996  ;;  %vm1567_vm0 = vcmp.gt.f32.partialorder %v1503_v42, 0.996 }
 0x2e6   : > { %1636 = vadd.xlane.f32.xlu1 %v1618_v48  ;;  %v1517_v32 = vmul.f32 %v3440_v47, %v5179_v20  ;;  %v1668_v48 = vpop.xlane.xlu0 %1667 }
 0x2e7   : > { %1713 = vadd.xlane.f32.xlu0 %v1686_v53  ;;  %v5526_v9 = vrot.slane %v1668_v48, %v1672_v54 }
 0x2e8   : > { %v3442_v13 = vpop.eup %3441  ;;  %v1542_v11 = vmul.f32 0.996, %v1517_v32 }
 0x2e9   : > { %v3444_v1 = vpop.eup %3443  ;;  %v1533_v43 = vmul.f32 %v3442_v13, %v5189_v63 }
 0x2ea   : > { %1652 = vadd.xlane.f32.xlu1 %v1626_v52  ;;  %v1519_v18 = vmul.f32 %v3444_v1, %v5194_v55  ;;  %v5492_v2 = vsel %vm1558_vm13, %v1542_v11, %v5179_v20 }
 0x2eb   : > { %1638 = vadd.xlane.f32.xlu0 %v1619_v8  ;;  %v3446_v17 = vpop.eup %3445  ;;  %v1550_v57 = vmul.f32 0.996, %v1533_v43  ;;  %v1681_v4 = vmul.f32 %v5216_v27, %v5492_v2 }
 0x2ec   : > { %v1543_v60 = vmul.f32 0.996, %v1519_v18  ;;  %v1535_v59 = vmul.f32 %v3446_v17, %v5200_v0 }
 0x2ed   : > { %v5502_v6 = vsel %vm1566_vm14, %v1550_v57, %v5189_v63  ;;  %v1622_v63 = vmul.f32 %v5492_v2, %v5492_v2 }
 0x2ee   : > { %1699 = vadd.xlane.f32.xlu1 %v1679_v37  ;;  %v5505_v20 = vsel %vm1559_vm15, %v1543_v60, %v5194_v55  ;;  %v1551_v31 = vmul.f32 0.996, %v1535_v59  ;;  %v1689_v61 = vmul.f32 %v5216_v27, %v5502_v6  ;;  %v1630_v5 = vmul.f32 %v5502_v6, %v5502_v6 }
 0x2ef   : > { %1654 = vadd.xlane.f32.xlu0 %v1627_v23  ;;  %v1682_v62 = vmul.f32 %v5216_v27, %v5505_v20  ;;  %v1623_v28 = vmul.f32 %v5505_v20, %v5505_v20 }
 0x2f0   : > { %v5512_v58 = vsel %vm1567_vm0, %v1551_v31, %v5200_v0 }
 0x2f1   : > { %v1690_v55 = vmul.f32 %v5216_v27, %v5512_v58  ;;  %v1631_v0 = vmul.f32 %v5512_v58, %v5512_v58 }
 0x2f2   : > { %1715 = vadd.xlane.f32.xlu1 %v1687_v46 }
 0x2f3   : > { %1701 = vadd.xlane.f32.xlu0 %v1680_v22 }
 0x2f6   : > { %1640 = vadd.xlane.f32.xlu1 %v1620_v24 }
 0x2f7   : > { %1717 = vadd.xlane.f32.xlu0 %v1688_v21 }
 0x2fa   : > { %1656 = vadd.xlane.f32.xlu1 %v1628_v38 }
 0x2fb   : > { %1642 = vadd.xlane.f32.xlu0 %v1621_v39 }
 0x2fe   : > { %1703 = vadd.xlane.f32.xlu1 %v1681_v4 }
 0x2ff   : > { %1658 = vadd.xlane.f32.xlu0 %v1629_v7 }
 0x302   : > { %1719 = vadd.xlane.f32.xlu1 %v1689_v61 }
 0x303   : > { %1705 = vadd.xlane.f32.xlu0 %v1682_v62 }
 0x306   : > { %1644 = vadd.xlane.f32.xlu1 %v1622_v63 }
 0x307   : > { %1721 = vadd.xlane.f32.xlu0 %v1690_v55 }
 0x30a   : > { %1660 = vadd.xlane.f32.xlu1 %v1630_v5 }
 0x30b   : > { %1646 = vadd.xlane.f32.xlu0 %v1623_v28 }
 0x30f   : > { %1662 = vadd.xlane.f32.xlu0 %v1631_v0 }
 0x346   : > { %v1694_v53 = vpop.xlane.xlu0 %1693 }
 0x347   : > { %v1724_v50 = vmul.f32 2.0, %v1694_v53 }
 0x349   : > { %v1740_v26 = vadd.f32 1.0, %v1724_v50 }
 0x34b   : > { %v1760_v31 = vadd.f32 %v5526_v9, %v1740_v26 }
 0x34c   : > { %v1692_v45 = vpop.xlane.xlu1 %1691 }
 0x34d   : > { %v1723_v25 = vmul.f32 2.0, %v1692_v45 }
 0x34f   : > { %v1739_v44 = vadd.f32 1.0, %v1723_v25 }
 0x351   : > { %v1759_v1 = vadd.f32 %v5526_v9, %v1739_v44 }
 0x353   : > { %v1775_v59 = vmul.f32 %v1759_v1, %v5242_v33 }
 0x35f   : > { %v1708_v30 = vpop.xlane.xlu1 %1707 }
 0x360   : > { %v1731_v56 = vmul.f32 2.0, %v1708_v30 }
 0x362   : > { %v1747_v40 = vadd.f32 1.0, %v1731_v56 }
 0x363   : > { %v1633_v49 = vpop.xlane.xlu1 %1632 }
 0x364   : > { %v1710_v8 = vpop.xlane.xlu0 %1709  ;;  %v1839_v52 = vmul.f32 %v5526_v9, %v1633_v49  ;;  %v1791_v54 = vsub.f32 1.0, %v1633_v49  ;;  %v1767_v61 = vadd.f32 %v5526_v9, %v1747_v40  ;;  %v1776_v49 = vmul.f32 %v1760_v31, %v5224_v16 }
 0x365   : > { %v1732_v46 = vmul.f32 2.0, %v1710_v8 }
 0x366   : > { %v1855_v42 = vadd.f32 %v1839_v52, %v1739_v44  ;;  %v1807_v17 = vmul.f32 %v1791_v54, %v5216_v27  ;;  %v1783_v44 = vmul.f32 %v1767_v61, %v5321_v36 }
 0x367   : > { %v1649_v14 = vpop.xlane.xlu1 %1648  ;;  %v1748_v11 = vadd.f32 1.0, %v1732_v46 }
 0x368   : > { %v1871_v37 = vmax.f32 %v1855_v42, 1e-15  ;;  %v1635_v23 = vpop.xlane.xlu0 %1634  ;;  %v1847_v47 = vmul.f32 %v5526_v9, %v1649_v14  ;;  %v1799_v39 = vsub.f32 1.0, %v1649_v14  ;;  %v1823_v63 = vadd.f32 %v1807_v17, %v1775_v59 }
 0x369   : > { %v1840_v12 = vmul.f32 %v5526_v9, %v1635_v23  ;;  %v1792_v38 = vsub.f32 1.0, %v1635_v23  ;;  %v1768_v55 = vadd.f32 %v5526_v9, %v1748_v11 }
 0x36a   : > { %3447 = vrcp.f32 %v1871_v37  ;;  %v1863_v22 = vadd.f32 %v1847_v47, %v1747_v40  ;;  %v1815_v28 = vmul.f32 %v1799_v39, %v5216_v27 }
 0x36b   : > { %v1856_v32 = vadd.f32 %v1840_v12, %v1740_v26  ;;  %v1696_v13 = vpop.xlane.xlu1 %1695  ;;  %v1808_v5 = vmul.f32 %v1792_v38, %v5216_v27  ;;  %v1784_v50 = vmul.f32 %v1768_v55, %v5346_v10 }
 0x36c   : > { %v1879_v24 = vmax.f32 %v1863_v22, 1e-15  ;;  %v1651_v21 = vpop.xlane.xlu0 %1650  ;;  %v1725_v4 = vmul.f32 2.0, %v1696_v13  ;;  %v1831_v14 = vadd.f32 %v1815_v28, %v1783_v44 }
 0x36d   : > { %v1872_v43 = vmax.f32 %v1856_v32, 1e-15  ;;  %v1848_v18 = vmul.f32 %v5526_v9, %v1651_v21  ;;  %v1800_v45 = vsub.f32 1.0, %v1651_v21  ;;  %v1824_v42 = vadd.f32 %v1808_v5, %v1776_v49 }
 0x36e   : > { %3449 = vrcp.f32 %v1879_v24  ;;  %v1741_v30 = vadd.f32 1.0, %v1725_v4 }
 0x36f   : > { %3451 = vrcp.f32 %v1872_v43  ;;  %v1864_v57 = vadd.f32 %v1848_v18, %v1748_v11  ;;  %v1712_v60 = vpop.xlane.xlu1 %1711  ;;  %v1816_v47 = vmul.f32 %v1800_v45, %v5216_v27 }
 0x370   : > { %v1698_v7 = vpop.xlane.xlu0 %1697  ;;  %v1733_v33 = vmul.f32 2.0, %v1712_v60  ;;  %v1761_v17 = vadd.f32 %v5526_v9, %v1741_v30 }
 0x371   : > { %v1880_v62 = vmax.f32 %v1864_v57, 1e-15  ;;  %v1726_v56 = vmul.f32 2.0, %v1698_v7  ;;  %v1832_v18 = vadd.f32 %v1816_v47, %v1784_v50 }
 0x372   : > { %v1749_v26 = vadd.f32 1.0, %v1733_v33  ;;  %v1777_v28 = vmul.f32 %v1761_v17, %v5370_v15 }
 0x373   : > { %3453 = vrcp.f32 %v1880_v62  ;;  %v1637_v0 = vpop.xlane.xlu1 %1636  ;;  %v1742_v22 = vadd.f32 1.0, %v1726_v56 }
 0x374   : > { %v3448_v48 = vpop.eup %3447  ;;  %v1714_v53 = vpop.xlane.xlu0 %1713  ;;  %v1841_v25 = vmul.f32 %v5526_v9, %v1637_v0  ;;  %v1793_v1 = vsub.f32 1.0, %v1637_v0  ;;  %v1769_v33 = vadd.f32 %v5526_v9, %v1749_v26 }
 0x375   : > { %v5543_v8 = vmul.f32 %v3448_v48, %v1823_v63  ;;  %v1734_v32 = vmul.f32 2.0, %v1714_v53 }
 0x376   : > { %v1857_v52 = vadd.f32 %v1841_v25, %v1741_v30  ;;  %v1809_v61 = vmul.f32 %v1793_v1, %v5216_v27  ;;  %v1762_v30 = vadd.f32 %v5526_v9, %v1742_v22  ;;  %v1785_v47 = vmul.f32 %v1769_v33, %v5391_v19 }
 0x377   : > { %v1653_v40 = vpop.xlane.xlu1 %1652  ;;  %v1919_v37 = vmul.f32 %v5543_v8, %v5543_v8  ;;  %v1750_v59 = vadd.f32 1.0, %v1734_v32 }
 0x378   : > { %v3450_v23 = vpop.eup %3449  ;;  %v1873_v46 = vmax.f32 %v1857_v52, 1e-15  ;;  %v1639_v16 = vpop.xlane.xlu0 %1638  ;;  %v1849_v36 = vmul.f32 %v5526_v9, %v1653_v40  ;;  %v1801_v63 = vsub.f32 1.0, %v1653_v40  ;;  %v1825_v25 = vadd.f32 %v1809_v61, %v1777_v28 }
 0x379   : > { %v3452_v12 = vpop.eup %3451  ;;  %v5550_v54 = vmul.f32 %v3450_v23, %v1831_v14  ;;  %v1842_v10 = vmul.f32 %v5526_v9, %v1639_v16  ;;  %1935 = vadd.xlane.f32.xlu1 %v1919_v37  ;;  %v1794_v62 = vsub.f32 1.0, %v1639_v16  ;;  %v1770_v49 = vadd.f32 %v5526_v9, %v1750_v59 }
 0x37a   : > { %v5553_v13 = vmul.f32 %v3452_v12, %v1824_v42  ;;  %3455 = vrcp.f32 %v1873_v46  ;;  %v1865_v24 = vadd.f32 %v1849_v36, %v1749_v26  ;;  %v1817_v56 = vmul.f32 %v1801_v63, %v5216_v27 }
 0x37b   : > { %v1858_v21 = vadd.f32 %v1842_v10, %v1742_v22  ;;  %v1700_v11 = vpop.xlane.xlu1 %1699  ;;  %v1927_v43 = vmul.f32 %v5550_v54, %v5550_v54  ;;  %v1810_v44 = vmul.f32 %v1794_v62, %v5216_v27  ;;  %v1778_v23 = vmul.f32 %v1762_v30, %v5398_v51 }
 0x37c   : > { %v1881_v38 = vmax.f32 %v1865_v24, 1e-15  ;;  %v1655_v39 = vpop.xlane.xlu0 %1654  ;;  %v1920_v57 = vmul.f32 %v5553_v13, %v5553_v13  ;;  %v1727_v0 = vmul.f32 2.0, %v1700_v11  ;;  %v1786_v36 = vmul.f32 %v1770_v49, %v5425_v3 }
 0x37d   : > { %v3454_v60 = vpop.eup %3453  ;;  %v1874_v4 = vmax.f32 %v1858_v21, 1e-15  ;;  %v1850_v7 = vmul.f32 %v5526_v9, %v1655_v39  ;;  %1951 = vadd.xlane.f32.xlu1 %v1927_v43  ;;  %v1802_v50 = vsub.f32 1.0, %v1655_v39  ;;  %v1826_v12 = vadd.f32 %v1810_v44, %v1778_v23 }
 0x37e   : > { %v5561_v31 = vmul.f32 %v3454_v60, %v1832_v18  ;;  %3457 = vrcp.f32 %v1881_v38  ;;  %1937 = vadd.xlane.f32.xlu0 %v1920_v57  ;;  %v1743_v42 = vadd.f32 1.0, %v1727_v0  ;;  %v1833_v22 = vadd.f32 %v1817_v56, %v1785_v47 }
 0x37f   : > { %3459 = vrcp.f32 %v1874_v4  ;;  %v1866_v55 = vadd.f32 %v1850_v7, %v1750_v59  ;;  %v1716_v5 = vpop.xlane.xlu1 %1715  ;;  %v1818_v24 = vmul.f32 %v1802_v50, %v5216_v27 }
 0x380   : > { %v1702_v48 = vpop.xlane.xlu0 %1701  ;;  %v1928_v45 = vmul.f32 %v5561_v31, %v5561_v31  ;;  %v1735_v14 = vmul.f32 2.0, %v1716_v5  ;;  %v1763_v28 = vadd.f32 %v5526_v9, %v1743_v42 }
 0x381   : > { %v1882_v53 = vmax.f32 %v1866_v55, 1e-15  ;;  %v1728_v46 = vmul.f32 2.0, %v1702_v48  ;;  %v1834_v61 = vadd.f32 %v1818_v24, %v1786_v36 }
 0x382   : > { %1953 = vadd.xlane.f32.xlu0 %v1928_v45  ;;  %v1751_v21 = vadd.f32 1.0, %v1735_v14  ;;  %v1779_v50 = vmul.f32 %v1763_v28, %v5449_v34 }
 0x383   : > { %3461 = vrcp.f32 %v1882_v53  ;;  %v1641_v15 = vpop.xlane.xlu1 %1640  ;;  %v1744_v17 = vadd.f32 1.0, %v1728_v46 }
 0x384   : > { %v3456_v52 = vpop.eup %3455  ;;  %v1718_v40 = vpop.xlane.xlu0 %1717  ;;  %v1843_v37 = vmul.f32 %v5526_v9, %v1641_v15  ;;  %v1795_v57 = vsub.f32 1.0, %v1641_v15  ;;  %v1771_v14 = vadd.f32 %v5526_v9, %v1751_v21 }
 0x385   : > { %v5575_v26 = vmul.f32 %v3456_v52, %v1825_v25  ;;  %v1736_v38 = vmul.f32 2.0, %v1718_v40 }
 0x386   : > { %v1859_v16 = vadd.f32 %v1843_v37, %v1743_v42  ;;  %v1811_v33 = vmul.f32 %v1795_v57, %v5216_v27  ;;  %v1764_v42 = vadd.f32 %v5526_v9, %v1744_v17 }
 0x387   : > { %v1657_v32 = vpop.xlane.xlu1 %1656  ;;  %v1921_v10 = vmul.f32 %v5575_v26, %v5575_v26  ;;  %v1752_v0 = vadd.f32 1.0, %v1736_v38 }
 0x388   : > { %v3458_v1 = vpop.eup %3457  ;;  %v1875_v11 = vmax.f32 %v1859_v16, 1e-15  ;;  %v1643_v51 = vpop.xlane.xlu0 %1642  ;;  %v1851_v19 = vmul.f32 %v5526_v9, %v1657_v32  ;;  %v1803_v25 = vsub.f32 1.0, %v1657_v32  ;;  %v1827_v37 = vadd.f32 %v1811_v33, %v1779_v50 }
 0x389   : > { %v3460_v43 = vpop.eup %3459  ;;  %v5582_v18 = vmul.f32 %v3458_v1, %v1833_v22  ;;  %v1844_v3 = vmul.f32 %v5526_v9, %v1643_v51  ;;  %1939 = vadd.xlane.f32.xlu1 %v1921_v10  ;;  %v1796_v53 = vsub.f32 1.0, %v1643_v51  ;;  %v1780_v10 = vmul.f32 %v1764_v42, %v5467_v29 }
 0x38a   : > { %v5585_v39 = vmul.f32 %v3460_v43, %v1826_v12  ;;  %3463 = vrcp.f32 %v1875_v11  ;;  %v1867_v60 = vadd.f32 %v1851_v19, %v1751_v21  ;;  %v1819_v47 = vmul.f32 %v1803_v25, %v5216_v27 }
 0x38b   : > { %v1860_v59 = vadd.f32 %v1844_v3, %v1744_v17  ;;  %v1704_v4 = vpop.xlane.xlu1 %1703  ;;  %v1929_v7 = vmul.f32 %v5582_v18, %v5582_v18  ;;  %v1812_v23 = vmul.f32 %v1796_v53, %v5216_v27  ;;  %v1787_v1 = vmul.f32 %v1771_v14, %v5464_v35 }
 0x38c   : > { %v1883_v62 = vmax.f32 %v1867_v60, 1e-15  ;;  %v1659_v63 = vpop.xlane.xlu0 %1658  ;;  %v1922_v55 = vmul.f32 %v5585_v39, %v5585_v39  ;;  %v1729_v56 = vmul.f32 2.0, %v1704_v4  ;;  %v1772_v11 = vadd.f32 %v5526_v9, %v1752_v0 }
 0x38d   : > { %v3462_v5 = vpop.eup %3461  ;;  %v1876_v48 = vmax.f32 %v1860_v59, 1e-15  ;;  %v1852_v45 = vmul.f32 %v5526_v9, %v1659_v63  ;;  %1955 = vadd.xlane.f32.xlu1 %v1929_v7  ;;  %v1804_v36 = vsub.f32 1.0, %v1659_v63  ;;  %v1828_v19 = vadd.f32 %v1812_v23, %v1780_v10 }
 0x38e   : > { %v5593_v30 = vmul.f32 %v3462_v5, %v1834_v61  ;;  %3465 = vrcp.f32 %v1883_v62  ;;  %1941 = vadd.xlane.f32.xlu0 %v1922_v55  ;;  %v1745_v12 = vadd.f32 1.0, %v1729_v56  ;;  %v1835_v43 = vadd.f32 %v1819_v47, %v1787_v1 }
 0x38f   : > { %3467 = vrcp.f32 %v1876_v48  ;;  %v1868_v49 = vadd.f32 %v1852_v45, %v1752_v0  ;;  %v1720_v44 = vpop.xlane.xlu1 %1719  ;;  %v1820_v57 = vmul.f32 %v1804_v36, %v5216_v27  ;;  %v1788_v55 = vmul.f32 %v1772_v11, %v5477_v41 }
 0x390   : > { %v1706_v15 = vpop.xlane.xlu0 %1705  ;;  %v1930_v52 = vmul.f32 %v5593_v30, %v5593_v30  ;;  %v1737_v22 = vmul.f32 2.0, %v1720_v44  ;;  %v1765_v56 = vadd.f32 %v5526_v9, %v1745_v12 }
 0x391   : > { %v1884_v40 = vmax.f32 %v1868_v49, 1e-15  ;;  %v1730_v21 = vmul.f32 2.0, %v1706_v15  ;;  %v1836_v33 = vadd.f32 %v1820_v57, %v1788_v55 }
 0x392   : > { %1957 = vadd.xlane.f32.xlu0 %v1930_v52  ;;  %v1753_v60 = vadd.f32 1.0, %v1737_v22  ;;  %v1781_v47 = vmul.f32 %v1765_v56, %v5492_v2 }
 0x393   : > { %3469 = vrcp.f32 %v1884_v40  ;;  %v1645_v46 = vpop.xlane.xlu1 %1644  ;;  %v1746_v61 = vadd.f32 1.0, %v1730_v21 }
 0x394   : > { %v3464_v16 = vpop.eup %3463  ;;  %v1722_v32 = vpop.xlane.xlu0 %1721  ;;  %v1845_v34 = vmul.f32 %v5526_v9, %v1645_v46  ;;  %v1797_v0 = vsub.f32 1.0, %v1645_v46  ;;  %v1773_v46 = vadd.f32 %v5526_v9, %v1753_v60 }
 0x395   : > { %v5606_v24 = vmul.f32 %v3464_v16, %v1827_v37  ;;  %v1738_v62 = vmul.f32 2.0, %v1722_v32  ;;  %v1766_v36 = vadd.f32 %v5526_v9, %v1746_v61 }
 0x396   : > { %v1861_v51 = vadd.f32 %v1845_v34, %v1745_v12  ;;  %v1813_v42 = vmul.f32 %v1797_v0, %v5216_v27  ;;  %v1789_v1 = vmul.f32 %v1773_v46, %v5502_v6 }
 0x397   : > { %v1661_v17 = vpop.xlane.xlu1 %1660  ;;  %v1923_v38 = vmul.f32 %v5606_v24, %v5606_v24  ;;  %v1754_v15 = vadd.f32 1.0, %v1738_v62  ;;  %v1782_v2 = vmul.f32 %v1766_v36, %v5505_v20 }
 0x398   : > { %v3466_v3 = vpop.eup %3465  ;;  %v1877_v59 = vmax.f32 %v1861_v51, 1e-15  ;;  %v1647_v29 = vpop.xlane.xlu0 %1646  ;;  %v1853_v35 = vmul.f32 %v5526_v9, %v1661_v17  ;;  %v1805_v14 = vsub.f32 1.0, %v1661_v17  ;;  %v1829_v12 = vadd.f32 %v1813_v42, %v1781_v47 }
 0x399   : > { %v3468_v4 = vpop.eup %3467  ;;  %v5613_v7 = vmul.f32 %v3466_v3, %v1835_v43  ;;  %v1846_v63 = vmul.f32 %v5526_v9, %v1647_v29  ;;  %1943 = vadd.xlane.f32.xlu1 %v1923_v38  ;;  %v1798_v37 = vsub.f32 1.0, %v1647_v29  ;;  %v1774_v11 = vadd.f32 %v5526_v9, %v1754_v15 }
 0x39a   : > { %v5617_v5 = vmul.f32 %v3468_v4, %v1828_v19  ;;  %3471 = vrcp.f32 %v1877_v59  ;;  %v1869_v28 = vadd.f32 %v1853_v35, %v1753_v60  ;;  %v1821_v22 = vmul.f32 %v1805_v14, %v5216_v27 }
 0x39b   : > { %v1862_v48 = vadd.f32 %v1846_v63, %v1746_v61  ;;  %v1931_v45 = vmul.f32 %v5613_v7, %v5613_v7  ;;  %v1814_v34 = vmul.f32 %v1798_v37, %v5216_v27  ;;  %v1790_v6 = vmul.f32 %v1774_v11, %v5512_v58 }
 0x39c   : > { %v1885_v53 = vmax.f32 %v1869_v28, 1e-15  ;;  %v1663_v25 = vpop.xlane.xlu0 %1662  ;;  %v1924_v49 = vmul.f32 %v5617_v5, %v5617_v5  ;;  %v1837_v51 = vadd.f32 %v1821_v22, %v1789_v1 }
 0x39d   : > { %v3470_v44 = vpop.eup %3469  ;;  %v1878_v41 = vmax.f32 %v1862_v48, 1e-15  ;;  %v1854_v52 = vmul.f32 %v5526_v9, %v1663_v25  ;;  %1959 = vadd.xlane.f32.xlu1 %v1931_v45  ;;  %v1806_v10 = vsub.f32 1.0, %v1663_v25  ;;  %v1830_v17 = vadd.f32 %v1814_v34, %v1782_v2 }
 0x39e   : > { %v5625_v50 = vmul.f32 %v3470_v44, %v1836_v33  ;;  %3473 = vrcp.f32 %v1885_v53  ;;  %1945 = vadd.xlane.f32.xlu0 %v1924_v49 }
 0x39f   : > { %3475 = vrcp.f32 %v1878_v41  ;;  %v1870_v40 = vadd.f32 %v1854_v52, %v1754_v15  ;;  %v1822_v38 = vmul.f32 %v1806_v10, %v5216_v27 }
 0x3a0   : > { %v1932_v23 = vmul.f32 %v5625_v50, %v5625_v50 }
 0x3a1   : > { %v1886_v16 = vmax.f32 %v1870_v40, 1e-15  ;;  %v1838_v9 = vadd.f32 %v1822_v38, %v1790_v6 }
 0x3a2   : > { %1961 = vadd.xlane.f32.xlu0 %v1932_v23 }
 0x3a3   : > { %3477 = vrcp.f32 %v1886_v16 }
 0x3a4   : > { %v3472_v32 = vpop.eup %3471 }
 0x3a5   : > { %v5636_v21 = vmul.f32 %v3472_v32, %v1829_v12 }
 0x3a7   : > { %v1925_v19 = vmul.f32 %v5636_v21, %v5636_v21 }
 0x3a8   : > { %v3474_v43 = vpop.eup %3473 }
 0x3a9   : > { %v3476_v3 = vpop.eup %3475  ;;  %v5643_v57 = vmul.f32 %v3474_v43, %v1837_v51  ;;  %1947 = vadd.xlane.f32.xlu1 %v1925_v19 }
 0x3aa   : > { %v5646_v60 = vmul.f32 %v3476_v3, %v1830_v17 }
 0x3ab   : > { %v1933_v20 = vmul.f32 %v5643_v57, %v5643_v57 }
 0x3ac   : > { %v1926_v59 = vmul.f32 %v5646_v60, %v5646_v60 }
 0x3ad   : > { %v3478_v29 = vpop.eup %3477  ;;  %1963 = vadd.xlane.f32.xlu1 %v1933_v20 }
 0x3ae   : > { %v5652_v35 = vmul.f32 %v3478_v29, %v1838_v9  ;;  %1949 = vadd.xlane.f32.xlu0 %v1926_v59 }
 0x3b0   : > { %v1934_v27 = vmul.f32 %v5652_v35, %v5652_v35 }
 0x3b2   : > { %1965 = vadd.xlane.f32.xlu0 %v1934_v27 }
 0x406   : > { %v1936_v4 = vpop.xlane.xlu1 %1935 }
 0x407   : > { %3479 = vrsqrt.f32 %v1936_v4  ;;  %vm1969_vm1 = vcmp.eq.f32.partialorder %v1936_v4, inf  ;;  %v1972_v28 = vand.u32 2147483648, %v1936_v4  ;;  %vm1971_vm2 = vcmp.eq.f32.partialorder %v1936_v4, 0.0 }
 0x40a   : > { %v1952_v58 = vpop.xlane.xlu1 %1951 }
 0x40b   : > { %v1938_v61 = vpop.xlane.xlu0 %1937  ;;  %3481 = vrsqrt.f32 %v1952_v58  ;;  %vm2025_vm3 = vcmp.eq.f32.partialorder %v1952_v58, inf  ;;  %v2028_v56 = vand.u32 2147483648, %v1952_v58  ;;  %vm2027_vm4 = vcmp.eq.f32.partialorder %v1952_v58, 0.0 }
 0x40c   : > { %3483 = vrsqrt.f32 %v1938_v61  ;;  %vm1976_vm5 = vcmp.eq.f32.partialorder %v1938_v61, inf  ;;  %v1979_v15 = vand.u32 2147483648, %v1938_v61  ;;  %vm1978_vm6 = vcmp.eq.f32.partialorder %v1938_v61, 0.0 }
 0x40f   : > { %v1954_v62 = vpop.xlane.xlu0 %1953 }
 0x410   : > { %3485 = vrsqrt.f32 %v1954_v62  ;;  %vm2032_vm7 = vcmp.eq.f32.partialorder %v1954_v62, inf  ;;  %v2035_v16 = vand.u32 2147483648, %v1954_v62  ;;  %vm2034_vm8 = vcmp.eq.f32.partialorder %v1954_v62, 0.0 }
 0x411   : > { %v3480_v63 = vpop.eup %3479 }
 0x412   : > { %v1968_v55 = vmul.f32 %v3480_v63, %v1936_v4 }
 0x414   : > { %v1970_v0 = vsel %vm1969_vm1, %v1936_v4, %v1968_v55 }
 0x415   : > { %v3482_v48 = vpop.eup %3481  ;;  %v1973_v45 = vsel %vm1971_vm2, %v1972_v28, %v1970_v0 }
 0x416   : > { %v3484_v33 = vpop.eup %3483  ;;  %v2024_v53 = vmul.f32 %v3482_v48, %v1952_v58  ;;  %v1940_v25 = vpop.xlane.xlu1 %1939  ;;  %v2079_v49 = vmax.f32 %v1973_v45, 1e-15 }
 0x417   : > { %v1975_v44 = vmul.f32 %v3484_v33, %v1938_v61  ;;  %3487 = vrsqrt.f32 %v1940_v25  ;;  %vm1983_vm9 = vcmp.eq.f32.partialorder %v1940_v25, inf  ;;  %v1986_v11 = vand.u32 2147483648, %v1940_v25 }
 0x418   : > { %3489 = vrcp.f32 %v2079_v49  ;;  %v2026_v41 = vsel %vm2025_vm3, %v1952_v58, %v2024_v53  ;;  %vm1985_vm10 = vcmp.eq.f32.partialorder %v1940_v25, 0.0  ;;  %vm2143_vm12 = vcmp.gt.f32.partialorder %v2079_v49, 0.996 }
 0x419   : > { %v1977_v52 = vsel %vm1976_vm5, %v1938_v61, %v1975_v44  ;;  %v5656_v42 = vsel %vm2027_vm4, %v2028_v56, %v2026_v41 }
 0x41a   : > { %v3486_v14 = vpop.eup %3485  ;;  %v1956_v40 = vpop.xlane.xlu1 %1955  ;;  %v5658_v37 = vsel %vm1978_vm6, %v1979_v15, %v1977_v52  ;;  %v2087_v23 = vmax.f32 %v5656_v42, 1e-15 }
 0x41b   : > { %v2031_v47 = vmul.f32 %v3486_v14, %v1954_v62  ;;  %v1942_v46 = vpop.xlane.xlu0 %1941  ;;  %3491 = vrsqrt.f32 %v1956_v40  ;;  %v2080_v36 = vmax.f32 %v5658_v37, 1e-15  ;;  %vm2039_vm11 = vcmp.eq.f32.partialorder %v1956_v40, inf }
 0x41c   : > { %3493 = vrsqrt.f32 %v1942_v46  ;;  %vm1990_vm13 = vcmp.eq.f32.partialorder %v1942_v46, inf  ;;  %v2042_v20 = vand.u32 2147483648, %v1956_v40  ;;  %v1993_v4 = vand.u32 2147483648, %v1942_v46 }
 0x41d   : > { %3495 = vrcp.f32 %v2087_v23  ;;  %v2033_v12 = vsel %vm2032_vm7, %v1954_v62, %v2031_v47  ;;  %vm1992_vm14 = vcmp.eq.f32.partialorder %v1942_v46, 0.0  ;;  %vm2041_vm15 = vcmp.eq.f32.partialorder %v1956_v40, 0.0 }
 0x41e   : > { %3497 = vrcp.f32 %v2080_v36  ;;  %v5662_v22 = vsel %vm2034_vm8, %v2035_v16, %v2033_v12  ;;  %vm2151_vm0 = vcmp.gt.f32.partialorder %v2087_v23, 0.996  ;;  %vm2144_vm2 = vcmp.gt.f32.partialorder %v2080_v36, 0.996 }
 0x41f   : > { %v5664_v32 = vpop.xlane.xlu0 %1957  ;;  %v2088_v34 = vmax.f32 %v5662_v22, 1e-15 }
 0x420   : > { %3499 = vrsqrt.f32 %v5664_v32  ;;  %vm2046_vm1 = vcmp.eq.f32.partialorder %v5664_v32, inf  ;;  %v2049_v23 = vand.u32 2147483648, %v5664_v32  ;;  %vm2048_vm4 = vcmp.eq.f32.partialorder %v5664_v32, 0.0 }
 0x421   : > { %v3488_v10 = vpop.eup %3487  ;;  %3501 = vrcp.f32 %v2088_v34  ;;  %vm2152_vm3 = vcmp.gt.f32.partialorder %v2088_v34, 0.996 }
 0x422   : > { %v3490_v1 = vpop.eup %3489  ;;  %v1982_v2 = vmul.f32 %v3488_v10, %v1940_v25 }
 0x423   : > { %v2096_v51 = vmul.f32 %v3490_v1, %v5543_v8 }
 0x424   : > { %v1984_v19 = vsel %vm1983_vm9, %v1940_v25, %v1982_v2 }
 0x425   : > { %v3492_v43 = vpop.eup %3491  ;;  %v2127_v17 = vmul.f32 0.996, %v2096_v51  ;;  %v5671_v38 = vsel %vm1985_vm10, %v1986_v11, %v1984_v19 }
 0x426   : > { %v3494_v3 = vpop.eup %3493  ;;  %v2038_v6 = vmul.f32 %v3492_v43, %v1956_v40  ;;  %v5673_v9 = vpop.xlane.xlu1 %1943  ;;  %v2081_v59 = vmax.f32 %v5671_v38, 1e-15 }
 0x427   : > { %v3496_v29 = vpop.eup %3495  ;;  %v1989_v27 = vmul.f32 %v3494_v3, %v1942_v46  ;;  %3503 = vrsqrt.f32 %v5673_v9  ;;  %v5678_v61 = vsel %vm2143_vm12, %v2127_v17, %v5543_v8  ;;  %vm1997_vm5 = vcmp.eq.f32.partialorder %v5673_v9, inf }
 0x428   : > { %v3498_v58 = vpop.eup %3497  ;;  %v2112_v62 = vmul.f32 %v3496_v29, %v5550_v54  ;;  %3505 = vrcp.f32 %v2081_v59  ;;  %v2207_v63 = vmul.f32 %v5678_v61, %v5678_v61  ;;  %v2040_v0 = vsel %vm2039_vm11, %v1956_v40, %v2038_v6 }
 0x429   : > { %v2098_v55 = vmul.f32 %v3498_v58, %v5553_v13  ;;  %v1991_v28 = vsel %vm1990_vm13, %v1942_v46, %v1989_v27  ;;  %v5692_v53 = vsel %vm2041_vm15, %v2042_v20, %v2040_v0  ;;  %vm1999_vm6 = vcmp.eq.f32.partialorder %v5673_v9, 0.0 }
 0x42a   : > { %v3500_v48 = vpop.eup %3499  ;;  %v5688_v45 = vpop.xlane.xlu1 %1959  ;;  %v2135_v8 = vmul.f32 0.996, %v2112_v62  ;;  %v5690_v33 = vsel %vm1992_vm14, %v1993_v4, %v1991_v28  ;;  %2223 = vadd.xlane.f32.xlu1 %v2207_v63  ;;  %v2089_v42 = vmax.f32 %v5692_v53, 1e-15  ;;  %vm2145_vm7 = vcmp.gt.f32.partialorder %v2081_v59, 0.996 }
 0x42b   : > { %v3502_v25 = vpop.eup %3501  ;;  %v2045_v49 = vmul.f32 %v3500_v48, %v5664_v32  ;;  %v5695_v44 = vpop.xlane.xlu0 %1945  ;;  %3507 = vrsqrt.f32 %v5688_v45  ;;  %v2128_v56 = vmul.f32 0.996, %v2098_v55  ;;  %v2082_v52 = vmax.f32 %v5690_v33, 1e-15 }
 0x42c   : > { %3509 = vrsqrt.f32 %v5695_v44  ;;  %v5701_v15 = vsel %vm2151_vm0, %v2135_v8, %v5550_v54  ;;  %v2114_v41 = vmul.f32 %v3502_v25, %v5561_v31  ;;  %vm2053_vm8 = vcmp.eq.f32.partialorder %v5688_v45, inf }
 0x42d   : > { %v5707_v14 = vsel %vm2144_vm2, %v2128_v56, %v5553_v13  ;;  %v2215_v40 = vmul.f32 %v5701_v15, %v5701_v15  ;;  %v2047_v37 = vsel %vm2046_vm1, %v5664_v32, %v2045_v49  ;;  %3511 = vrcp.f32 %v2082_v52 }
 0x42e   : > { %v2208_v54 = vmul.f32 %v5707_v14, %v5707_v14  ;;  %v2136_v46 = vmul.f32 0.996, %v2114_v41  ;;  %v5728_v36 = vsel %vm2048_vm4, %v2049_v23, %v2047_v37  ;;  %v2000_v32 = vand.u32 2147483648, %v5673_v9 }
 0x42f   : > { %v5715_v47 = vpop.xlane.xlu0 %1961  ;;  %2239 = vadd.xlane.f32.xlu1 %v2215_v40  ;;  %v2090_v22 = vmax.f32 %v5728_v36, 1e-15  ;;  %v2056_v17 = vand.u32 2147483648, %v5688_v45  ;;  %vm2004_vm9 = vcmp.eq.f32.partialorder %v5695_v44, inf  ;;  %v2007_v38 = vand.u32 2147483648, %v5695_v44 }
 0x430   : > { %3513 = vrsqrt.f32 %v5715_v47  ;;  %2225 = vadd.xlane.f32.xlu0 %v2208_v54  ;;  %v5724_v16 = vsel %vm2152_vm3, %v2136_v46, %v5561_v31  ;;  %vm2055_vm10 = vcmp.eq.f32.partialorder %v5688_v45, 0.0  ;;  %vm2006_vm11 = vcmp.eq.f32.partialorder %v5695_v44, 0.0 }
 0x431   : > { %v3504_v13 = vpop.eup %3503  ;;  %3515 = vrcp.f32 %v2089_v42  ;;  %v2216_v1 = vmul.f32 %v5724_v16, %v5724_v16  ;;  %vm2146_vm12 = vcmp.gt.f32.partialorder %v2082_v52, 0.996  ;;  %vm2060_vm13 = vcmp.eq.f32.partialorder %v5715_v47, inf }
 0x432   : > { %v3506_v12 = vpop.eup %3505  ;;  %v1996_v10 = vmul.f32 %v3504_v13, %v5673_v9  ;;  %3517 = vrcp.f32 %v2090_v22  ;;  %v2063_v56 = vand.u32 2147483648, %v5715_v47  ;;  %vm2153_vm14 = vcmp.gt.f32.partialorder %v2089_v42, 0.996 }
 0x433   : > { %v2100_v31 = vmul.f32 %v3506_v12, %v5575_v26  ;;  %vm2062_vm15 = vcmp.eq.f32.partialorder %v5715_v47, 0.0  ;;  %vm2154_vm0 = vcmp.gt.f32.partialorder %v2090_v22, 0.996 }
 0x434   : > { %v1998_v34 = vsel %vm1997_vm5, %v5673_v9, %v1996_v10  ;;  %2241 = vadd.xlane.f32.xlu0 %v2216_v1 }
 0x435   : > { %v3508_v2 = vpop.eup %3507  ;;  %v2129_v11 = vmul.f32 0.996, %v2100_v31  ;;  %v5743_v51 = vsel %vm1999_vm6, %v2000_v32, %v1998_v34 }
 0x436   : > { %v3510_v19 = vpop.eup %3509  ;;  %v2052_v43 = vmul.f32 %v3508_v2, %v5688_v45  ;;  %v5748_v3 = vpop.xlane.xlu1 %1947  ;;  %v2083_v6 = vmax.f32 %v5743_v51, 1e-15 }
 0x437   : > { %v2003_v20 = vmul.f32 %v3510_v19, %v5695_v44  ;;  %3519 = vrsqrt.f32 %v5748_v3  ;;  %v5756_v9 = vsel %vm2145_vm7, %v2129_v11, %v5575_v26  ;;  %v3512_v29 = vpop.eup %3511  ;;  %vm2011_vm1 = vcmp.eq.f32.partialorder %v5748_v3, inf }
 0x438   : > { %3521 = vrcp.f32 %v2083_v6  ;;  %v2054_v59 = vsel %vm2053_vm8, %v5688_v45, %v2052_v43  ;;  %v2209_v27 = vmul.f32 %v5756_v9, %v5756_v9  ;;  %v2102_v63 = vmul.f32 %v3512_v29, %v5585_v39 }
 0x439   : > { %v2005_v4 = vsel %vm2004_vm9, %v5695_v44, %v2003_v20  ;;  %v5766_v58 = vsel %vm2055_vm10, %v2056_v17, %v2054_v59  ;;  %v2014_v42 = vand.u32 2147483648, %v5748_v3  ;;  %vm2013_vm2 = vcmp.eq.f32.partialorder %v5748_v3, 0.0 }
 0x43a   : > { %v3514_v62 = vpop.eup %3513  ;;  %v5768_v26 = vpop.xlane.xlu1 %1963  ;;  %v5771_v55 = vsel %vm2006_vm11, %v2007_v38, %v2005_v4  ;;  %v2091_v28 = vmax.f32 %v5766_v58, 1e-15  ;;  %2227 = vadd.xlane.f32.xlu1 %v2209_v27  ;;  %v2130_v8 = vmul.f32 0.996, %v2102_v63  ;;  %vm2147_vm4 = vcmp.gt.f32.partialorder %v2083_v6, 0.996 }
 0x43b   : > { %v3516_v0 = vpop.eup %3515  ;;  %v2059_v48 = vmul.f32 %v3514_v62, %v5715_v47  ;;  %v5775_v45 = vpop.xlane.xlu0 %1949  ;;  %3523 = vrsqrt.f32 %v5768_v26  ;;  %v2084_v49 = vmax.f32 %v5771_v55, 1e-15  ;;  %vm2067_vm3 = vcmp.eq.f32.partialorder %v5768_v26, inf }
 0x43c   : > { %3525 = vrsqrt.f32 %v5775_v45  ;;  %v2116_v25 = vmul.f32 %v3516_v0, %v5582_v18  ;;  %v3518_v44 = vpop.eup %3517  ;;  %v5788_v41 = vsel %vm2146_vm12, %v2130_v8, %v5585_v39  ;;  %vm2018_vm5 = vcmp.eq.f32.partialorder %v5775_v45, inf }
 0x43d   : > { %3527 = vrcp.f32 %v2091_v28  ;;  %v2061_v40 = vsel %vm2060_vm13, %v5715_v47, %v2059_v48  ;;  %v2210_v33 = vmul.f32 %v5788_v41, %v5788_v41  ;;  %v2118_v23 = vmul.f32 %v3518_v44, %v5593_v30 }
 0x43e   : > { %v2137_v37 = vmul.f32 0.996, %v2116_v25  ;;  %3529 = vrcp.f32 %v2084_v49  ;;  %v5805_v13 = vsel %vm2062_vm15, %v2063_v56, %v2061_v40  ;;  %v2070_v17 = vand.u32 2147483648, %v5768_v26 }
 0x43f   : > { %v5793_v52 = vpop.xlane.xlu0 %1965  ;;  %2229 = vadd.xlane.f32.xlu0 %v2210_v33  ;;  %v2138_v46 = vmul.f32 0.996, %v2118_v23  ;;  %v2092_v53 = vmax.f32 %v5805_v13, 1e-15  ;;  %v2021_v20 = vand.u32 2147483648, %v5775_v45  ;;  %vm2020_vm6 = vcmp.eq.f32.partialorder %v5775_v45, 0.0 }
 0x440   : > { %3531 = vrsqrt.f32 %v5793_v52  ;;  %v5803_v54 = vsel %vm2153_vm14, %v2137_v37, %v5582_v18  ;;  %vm2069_vm7 = vcmp.eq.f32.partialorder %v5768_v26, 0.0  ;;  %vm2155_vm8 = vcmp.gt.f32.partialorder %v2091_v28, 0.996 }
 0x441   : > { %v3520_v39 = vpop.eup %3519  ;;  %v2217_v1 = vmul.f32 %v5803_v54, %v5803_v54  ;;  %v5816_v18 = vsel %vm2154_vm0, %v2138_v46, %v5593_v30  ;;  %3533 = vrcp.f32 %v2092_v53  ;;  %vm2074_vm9 = vcmp.eq.f32.partialorder %v5793_v52, inf }
 0x442   : > { %v3522_v12 = vpop.eup %3521  ;;  %v2010_v10 = vmul.f32 %v3520_v39, %v5748_v3  ;;  %v2218_v32 = vmul.f32 %v5816_v18, %v5816_v18  ;;  %vm2148_vm10 = vcmp.gt.f32.partialorder %v2084_v49, 0.996  ;;  %vm2076_vm11 = vcmp.eq.f32.partialorder %v5793_v52, 0.0 }
 0x443   : > { %v2104_v47 = vmul.f32 %v3522_v12, %v5606_v24  ;;  %2243 = vadd.xlane.f32.xlu1 %v2217_v1  ;;  %vm2156_vm12 = vcmp.gt.f32.partialorder %v2092_v53, 0.996 }
 0x444   : > { %v2012_v31 = vsel %vm2011_vm1, %v5748_v3, %v2010_v10  ;;  %2245 = vadd.xlane.f32.xlu0 %v2218_v32 }
 0x445   : > { %v3524_v36 = vpop.eup %3523  ;;  %v2131_v22 = vmul.f32 0.996, %v2104_v47  ;;  %v2015_v34 = vsel %vm2013_vm2, %v2014_v42, %v2012_v31 }
 0x446   : > { %v3526_v2 = vpop.eup %3525  ;;  %v2066_v11 = vmul.f32 %v3524_v36, %v5768_v26  ;;  %v2085_v30 = vmax.f32 %v2015_v34, 1e-15 }
 0x447   : > { %v3528_v19 = vpop.eup %3527  ;;  %v2017_v43 = vmul.f32 %v3526_v2, %v5775_v45  ;;  %v5831_v3 = vsel %vm2147_vm4, %v2131_v22, %v5606_v24 }
 0x448   : > { %v2211_v38 = vmul.f32 %v5831_v3, %v5831_v3  ;;  %v2120_v59 = vmul.f32 %v3528_v19, %v5613_v7  ;;  %3535 = vrcp.f32 %v2085_v30  ;;  %v3530_v51 = vpop.eup %3529  ;;  %v2068_v29 = vsel %vm2067_vm3, %v5768_v26, %v2066_v11 }
 0x449   : > { %v2019_v6 = vsel %vm2018_vm5, %v5775_v45, %v2017_v43  ;;  %v2106_v27 = vmul.f32 %v3530_v51, %v5617_v5  ;;  %v2071_v63 = vsel %vm2069_vm7, %v2070_v17, %v2068_v29  ;;  %v2077_v26 = vand.u32 2147483648, %v5793_v52 }
 0x44a   : > { %v3532_v24 = vpop.eup %3531  ;;  %2231 = vadd.xlane.f32.xlu1 %v2211_v38  ;;  %v2139_v4 = vmul.f32 0.996, %v2120_v59  ;;  %v2022_v62 = vsel %vm2020_vm6, %v2021_v20, %v2019_v6  ;;  %v2093_v45 = vmax.f32 %v2071_v63, 1e-15  ;;  %vm2149_vm13 = vcmp.gt.f32.partialorder %v2085_v30, 0.996 }
 0x44b   : > { %v2073_v0 = vmul.f32 %v3532_v24, %v5793_v52  ;;  %v2086_v48 = vmax.f32 %v2022_v62, 1e-15  ;;  %v2132_v8 = vmul.f32 0.996, %v2106_v27  ;;  %v3534_v56 = vpop.eup %3533 }
 0x44c   : > { %v5849_v25 = vsel %vm2155_vm8, %v2139_v4, %v5613_v7  ;;  %v2122_v55 = vmul.f32 %v3534_v56, %v5625_v50  ;;  %vm2157_vm15 = vcmp.gt.f32.partialorder %v2093_v45, 0.996 }
 0x44d   : > { %v2219_v44 = vmul.f32 %v5849_v25, %v5849_v25  ;;  %3537 = vrcp.f32 %v2086_v48  ;;  %v5857_v58 = vsel %vm2148_vm10, %v2132_v8, %v5617_v5  ;;  %v2075_v28 = vsel %vm2074_vm9, %v5793_v52, %v2073_v0 }
 0x44e   : > { %3539 = vrcp.f32 %v2093_v45  ;;  %v2212_v7 = vmul.f32 %v5857_v58, %v5857_v58  ;;  %v2078_v49 = vsel %vm2076_vm11, %v2077_v26, %v2075_v28  ;;  %v2140_v33 = vmul.f32 0.996, %v2122_v55 }
 0x44f   : > { %2247 = vadd.xlane.f32.xlu1 %v2219_v44  ;;  %v2094_v40 = vmax.f32 %v2078_v49, 1e-15  ;;  %vm2150_vm14 = vcmp.gt.f32.partialorder %v2086_v48, 0.996 }
 0x450   : > { %2233 = vadd.xlane.f32.xlu0 %v2212_v7  ;;  %v5865_v5 = vsel %vm2156_vm12, %v2140_v33, %v5625_v50 }
 0x451   : > { %3541 = vrcp.f32 %v2094_v40  ;;  %v2220_v52 = vmul.f32 %v5865_v5, %v5865_v5  ;;  %vm2158_vm0 = vcmp.gt.f32.partialorder %v2094_v40, 0.996 }
 0x452   : > { %v3536_v37 = vpop.eup %3535 }
 0x453   : > { %v2108_v23 = vmul.f32 %v3536_v37, %v5636_v21 }
 0x454   : > { %2249 = vadd.xlane.f32.xlu0 %v2220_v52 }
 0x455   : > { %v2133_v39 = vmul.f32 0.996, %v2108_v23 }
 0x457   : > { %v3538_v46 = vpop.eup %3537  ;;  %v5871_v13 = vsel %vm2149_vm13, %v2133_v39, %v5636_v21 }
 0x458   : > { %v3540_v12 = vpop.eup %3539  ;;  %v2213_v10 = vmul.f32 %v5871_v13, %v5871_v13  ;;  %v2110_v1 = vmul.f32 %v3538_v46, %v5646_v60 }
 0x459   : > { %v2124_v50 = vmul.f32 %v3540_v12, %v5643_v57 }
 0x45a   : > { %2235 = vadd.xlane.f32.xlu1 %v2213_v10  ;;  %v2134_v53 = vmul.f32 0.996, %v2110_v1 }
 0x45b   : > { %v2141_v42 = vmul.f32 0.996, %v2124_v50  ;;  %v3542_v47 = vpop.eup %3541 }
 0x45c   : > { %v5878_v32 = vsel %vm2150_vm14, %v2134_v53, %v5646_v60  ;;  %v2126_v36 = vmul.f32 %v3542_v47, %v5652_v35 }
 0x45d   : > { %v2214_v21 = vmul.f32 %v5878_v32, %v5878_v32  ;;  %v5883_v31 = vsel %vm2157_vm15, %v2141_v42, %v5643_v57 }
 0x45e   : > { %v2221_v22 = vmul.f32 %v5883_v31, %v5883_v31  ;;  %v2142_v34 = vmul.f32 0.996, %v2126_v36 }
 0x45f   : > { %2237 = vadd.xlane.f32.xlu0 %v2214_v21 }
 0x460   : > { %2251 = vadd.xlane.f32.xlu1 %v2221_v22  ;;  %v5889_v2 = vsel %vm2158_vm0, %v2142_v34, %v5652_v35 }
 0x461   : > { %v2222_v60 = vmul.f32 %v5889_v2, %v5889_v2 }
 0x463   : > { %2253 = vadd.xlane.f32.xlu0 %v2222_v60 }
 0x4b7   : > { %v2224_v11 = vpop.xlane.xlu1 %2223 }
 0x4b8   : > { %3543 = vrsqrt.f32 %v2224_v11  ;;  %vm2257_vm1 = vcmp.eq.f32.partialorder %v2224_v11, inf  ;;  %v2260_v20 = vand.u32 2147483648, %v2224_v11  ;;  %vm2259_vm2 = vcmp.eq.f32.partialorder %v2224_v11, 0.0 }
 0x4bc   : > { %v2240_v57 = vpop.xlane.xlu1 %2239 }
 0x4bd   : > { %v2226_v30 = vpop.xlane.xlu0 %2225  ;;  %3545 = vrsqrt.f32 %v2240_v57  ;;  %vm2313_vm3 = vcmp.eq.f32.partialorder %v2240_v57, inf  ;;  %v2316_v63 = vand.u32 2147483648, %v2240_v57  ;;  %vm2315_vm5 = vcmp.eq.f32.partialorder %v2240_v57, 0.0 }
 0x4be   : > { %3547 = vrsqrt.f32 %v2226_v30  ;;  %vm2264_vm4 = vcmp.eq.f32.partialorder %v2226_v30, inf  ;;  %v2267_v8 = vand.u32 2147483648, %v2226_v30  ;;  %vm2266_vm6 = vcmp.eq.f32.partialorder %v2226_v30, 0.0 }
 0x4c1   : > { %v5893_v43 = vpop.xlane.xlu0 %2241 }
 0x4c2   : > { %v3544_v19 = vpop.eup %3543  ;;  %3549 = vrsqrt.f32 %v5893_v43  ;;  %vm2320_vm7 = vcmp.eq.f32.partialorder %v5893_v43, inf  ;;  %vm2322_vm8 = vcmp.eq.f32.partialorder %v5893_v43, 0.0  ;;  %v2323_v52 = vand.u32 2147483648, %v5893_v43 }
 0x4c3   : > { %v2256_v17 = vmul.f32 %v3544_v19, %v2224_v11 }
 0x4c5   : > { %v2258_v38 = vsel %vm2257_vm1, %v2224_v11, %v2256_v17 }
 0x4c6   : > { %v2261_v35 = vsel %vm2259_vm2, %v2260_v20, %v2258_v38 }
 0x4c7   : > { %v3546_v59 = vpop.eup %3545  ;;  %v2367_v51 = vmax.f32 %v2261_v35, 1e-15  ;;  %v5896_v4 = vpop.xlane.xlu1 %2227 }
 0x4c8   : > { %v3548_v6 = vpop.eup %3547  ;;  %v2312_v29 = vmul.f32 %v3546_v59, %v2240_v57  ;;  %3551 = vrsqrt.f32 %v5896_v4  ;;  %vm2271_vm9 = vcmp.eq.f32.partialorder %v5896_v4, inf  ;;  %vm2273_vm10 = vcmp.eq.f32.partialorder %v5896_v4, 0.0 }
 0x4c9   : > { %v2939_v24 = vclamps-f32 %v2367_v51, 0.9999999  ;;  %v2263_v27 = vmul.f32 %v3548_v6, %v2226_v30  ;;  %v2274_v47 = vand.u32 2147483648, %v5896_v4 }
 0x4ca   : > { %v2314_v62 = vsel %vm2313_vm3, %v2240_v57, %v2312_v29 }
 0x4cb   : > { %v2415_v0 = vadd.f32 1.0, %v2939_v24  ;;  %v2559_v48 = vsub.f32 0.0, %v2939_v24  ;;  %v2265_v45 = vsel %vm2264_vm4, %v2226_v30, %v2263_v27  ;;  %v2317_v26 = vsel %vm2315_vm5, %v2316_v63, %v2314_v62 }
 0x4cc   : > { %v2418_v56 = vmul.f32 -0.5, %v2939_v24  ;;  %v2268_v28 = vsel %vm2266_vm6, %v2267_v8, %v2265_v45  ;;  %v2375_v7 = vmax.f32 %v2317_v26, 1e-15  ;;  %v3550_v55 = vpop.eup %3549  ;;  %v2421_v37 = vand.u32 2147483647, %v2939_v24 }
 0x4cd   : > { %3553 = vlog2.f32 %v2415_v0  ;;  %v2575_v44 = vadd.f32 1.0, %v2559_v48  ;;  %v2578_v49 = vmul.f32 -0.5, %v2559_v48  ;;  %v2368_v40 = vmax.f32 %v2268_v28, 1e-15 }
 0x4ce   : > { %v5899_v33 = vclamps-f32 %v2375_v7, 0.9999999  ;;  %v2419_v39 = vadd.f32 1.0, %v2418_v56  ;;  %v2581_v46 = vand.u32 2147483647, %v2559_v48  ;;  %v2319_v10 = vmul.f32 %v3550_v55, %v5893_v43 }
 0x4cf   : > { %3555 = vlog2.f32 %v2575_v44  ;;  %v5903_v23 = vclamps-f32 %v2368_v40, 0.9999999  ;;  %v2579_v1 = vadd.f32 1.0, %v2578_v49  ;;  %vm5918_vm11 = vcmp.lt.f32.partialorder %v2421_v37, 0.0004427343 }
 0x4d0   : > { %3557 = vrcp.f32 %v2367_v51  ;;  %v2487_v12 = vadd.f32 1.0, %v5899_v33  ;;  %v5914_v42 = vsub.f32 0.0, %v5899_v33  ;;  %v2490_v22 = vmul.f32 -0.5, %v5899_v33  ;;  %v5935_v51 = vpop.xlane.xlu0 %2229  ;;  %v5945_v8 = vpop.xlane.xlu1 %2243 }
 0x4d1   : > { %v2424_v50 = vadd.f32 1.0, %v5903_v23  ;;  %v5911_v53 = vsub.f32 0.0, %v5903_v23  ;;  %3559 = vrcp.f32 %v2375_v7  ;;  %v2427_v60 = vmul.f32 -0.5, %v5903_v23 }
 0x4d2   : > { %3561 = vlog2.f32 %v2487_v12  ;;  %v3552_v34 = vpop.eup %3551  ;;  %v2647_v11 = vadd.f32 1.0, %v5914_v42  ;;  %v2321_v57 = vsel %vm2320_vm7, %v5893_v43, %v2319_v10  ;;  %v2420_v19 = vmul.f32 %v2939_v24, %v2419_v39 }
 0x4d3   : > { %3563 = vlog2.f32 %v2424_v50  ;;  %v2584_v36 = vadd.f32 1.0, %v5911_v53  ;;  %v2580_v17 = vmul.f32 %v2579_v1, %v2559_v48  ;;  %vm5929_vm12 = vcmp.lt.f32.partialorder %v2581_v46, 0.0004427343 }
 0x4d4   : > { %3565 = vrcp.f32 %v2368_v40  ;;  %v2430_v35 = vand.u32 2147483647, %v5903_v23  ;;  %v2493_v59 = vand.u32 2147483647, %v5899_v33  ;;  %v2587_v29 = vmul.f32 -0.5, %v5911_v53 }
 0x4d5   : > { %3567 = vlog2.f32 %v2584_v36  ;;  %v2491_v27 = vadd.f32 1.0, %v2490_v22  ;;  %v5940_v24 = vsel %vm2322_vm8, %v2323_v52, %v2321_v57  ;;  %v2270_v62 = vmul.f32 %v3552_v34, %v5896_v4 }
 0x4d6   : > { %3569 = vlog2.f32 %v2647_v11  ;;  %v2428_v0 = vadd.f32 1.0, %v2427_v60  ;;  %v2650_v48 = vmul.f32 -0.5, %v5914_v42  ;;  %v2376_v45 = vmax.f32 %v5940_v24, 1e-15 }
 0x4d7   : > { %v3554_v30 = vpop.eup %3553  ;;  %v2590_v44 = vand.u32 2147483647, %v5911_v53  ;;  %v2653_v56 = vand.u32 2147483647, %v5914_v42  ;;  %v2272_v43 = vsel %vm2271_vm9, %v5896_v4, %v2270_v62  ;;  %3571 = vrsqrt.f32 %v5935_v51 }
 0x4d8   : > { %v2417_v38 = vmul.f32 0.6931472, %v3554_v30  ;;  %vm5957_vm13 = vcmp.lt.f32.partialorder %v2493_v59, 0.0004427343  ;;  %v5961_v49 = vclamps-f32 %v2376_v45, 0.9999999  ;;  %v5965_v40 = vsel %vm2273_vm10, %v2274_v47, %v2272_v43 }
 0x4d9   : > { %v3556_v6 = vpop.eup %3555  ;;  %v2588_v39 = vadd.f32 1.0, %v2587_v29  ;;  %v2369_v46 = vmax.f32 %v5965_v40, 1e-15  ;;  %3573 = vrsqrt.f32 %v5945_v8  ;;  %vm5971_vm14 = vcmp.lt.f32.partialorder %v2430_v35, 0.0004427343 }
 0x4da   : > { %v2577_v63 = vmul.f32 0.6931472, %v3556_v6  ;;  %v3558_v26 = vpop.eup %3557  ;;  %v2423_v28 = vsel %vm5918_vm11, %v2420_v19, %v2417_v38  ;;  %v2651_v1 = vadd.f32 1.0, %v2650_v48  ;;  %v2496_v50 = vadd.f32 1.0, %v5961_v49 }
 0x4db   : > { %v5967_v37 = vpop.eup %3559  ;;  %v5977_v4 = vsub.f32 0.0, %v5961_v49  ;;  %v2429_v36 = vmul.f32 %v5903_v23, %v2428_v0  ;;  %vm5980_vm15 = vcmp.lt.f32.partialorder %v2590_v44, 0.0004427343  ;;  %v2492_v34 = vmul.f32 %v5899_v33, %v2491_v27 }
 0x4dc   : > { %v2583_v7 = vsel %vm5929_vm12, %v2580_v17, %v2577_v63  ;;  %v3562_v12 = vpop.eup %3561  ;;  %vm5985_vm0 = vcmp.lt.f32.partialorder %v2653_v56, 0.0004427343  ;;  %3575 = vlog2.f32 %v2496_v50  ;;  %v5991_v30 = vclamps-f32 %v2369_v46, 0.9999999 }
 0x4dd   : > { %v2719_v52 = vsub.f32 %v2423_v28, %v2583_v7  ;;  %v3564_v47 = vpop.eup %3563  ;;  %vm2278_vm1 = vcmp.eq.f32.partialorder %v5935_v51, inf  ;;  %v2589_v17 = vmul.f32 %v2588_v39, %v5911_v53  ;;  %v2489_v20 = vmul.f32 0.6931472, %v3562_v12 }
 0x4de   : > { %v3566_v60 = vpop.eup %3565  ;;  %v2426_v11 = vmul.f32 0.6931472, %v3564_v47  ;;  %v2656_v33 = vadd.f32 1.0, %v5977_v4  ;;  %v2652_v59 = vmul.f32 %v2651_v1, %v5914_v42  ;;  %v2499_v6 = vmul.f32 -0.5, %v5961_v49 }
 0x4df   : > { %v2735_v21 = vmul.f32 0.5, %v2719_v52  ;;  %v3568_v23 = vpop.eup %3567  ;;  %vm2280_vm2 = vcmp.eq.f32.partialorder %v5935_v51, 0.0  ;;  %v2502_v24 = vand.u32 2147483647, %v5961_v49  ;;  %v2659_v62 = vmul.f32 -0.5, %v5977_v4 }
 0x4e0   : > { %v3570_v38 = vpop.eup %3569  ;;  %v2586_v35 = vmul.f32 0.6931472, %v3568_v23  ;;  %3577 = vlog2.f32 %v2656_v33  ;;  %v2433_v63 = vadd.f32 1.0, %v5991_v30  ;;  %v2495_v48 = vsel %vm5957_vm13, %v2492_v34, %v2489_v20  ;;  %v6042_v20 = vpop.xlane.xlu0 %2245 }
 0x4e1   : > { %v2751_v19 = vmul.f32 %v2735_v21, %v5678_v61  ;;  %v2649_v27 = vmul.f32 0.6931472, %v3570_v38  ;;  %v2432_v61 = vsel %vm5971_vm14, %v2429_v36, %v2426_v11  ;;  %v3572_v42 = vpop.eup %3571  ;;  %3579 = vrcp.f32 %v2376_v45 }
 0x4e2   : > { %v2592_v53 = vsel %vm5980_vm15, %v2589_v17, %v2586_v35  ;;  %v2500_v56 = vadd.f32 1.0, %v2499_v6  ;;  %3581 = vlog2.f32 %v2433_v63  ;;  %v6017_v43 = vsub.f32 0.0, %v5991_v30  ;;  %v6050_v6 = vpop.xlane.xlu1 %2231 }
 0x4e3   : > { %v2768_v29 = vmul.f32 %v3558_v26, %v2751_v19  ;;  %v2720_v0 = vsub.f32 %v2432_v61, %v2592_v53  ;;  %v2655_v26 = vsel %vm5985_vm0, %v2652_v59, %v2649_v27  ;;  %v3574_v28 = vpop.eup %3573  ;;  %v2662_v52 = vand.u32 2147483647, %v5977_v4 }
 0x4e4   : > { %v2727_v44 = vsub.f32 %v2495_v48, %v2655_v26  ;;  %v2277_v39 = vmul.f32 %v3572_v42, %v5935_v51  ;;  %v2281_v12 = vand.u32 2147483648, %v5935_v51  ;;  %vm6022_vm3 = vcmp.lt.f32.partialorder %v2502_v24, 0.0004427343 }
 0x4e5   : > { %2799 = vst [vmem:[%s6009_s8] sm:$0xff] %v2768_v29  ;;  %v2736_v7 = vmul.f32 0.5, %v2720_v0  ;;  %v2660_v45 = vadd.f32 1.0, %v2659_v62  ;;  %v2593_v1 = vadd.f32 1.0, %v6017_v43  ;;  %v2436_v47 = vmul.f32 -0.5, %v5991_v30 }
 0x4e6   : > { %v2743_v55 = vmul.f32 0.5, %v2727_v44  ;;  %v2279_v21 = vsel %vm2278_vm1, %v5935_v51, %v2277_v39  ;;  %v2326_v36 = vmul.f32 %v3574_v28, %v5945_v8  ;;  %v3576_v22 = vpop.eup %3575  ;;  %v2501_v11 = vmul.f32 %v5961_v49, %v2500_v56 }
 0x4e7   : > { %v2752_v50 = vmul.f32 %v2736_v7, %v5707_v14  ;;  %3583 = vlog2.f32 %v2593_v1  ;;  %v2282_v57 = vsel %vm2280_vm2, %v2281_v12, %v2279_v21  ;;  %vm6037_vm4 = vcmp.lt.f32.partialorder %v2662_v52, 0.0004427343  ;;  %v6074_v52 = vpop.xlane.xlu0 %2233 }
 0x4e8   : > { %v2759_v34 = vmul.f32 %v2743_v55, %v5701_v15  ;;  %v2596_v19 = vmul.f32 -0.5, %v6017_v43  ;;  %v2370_v17 = vmax.f32 %v2282_v57, 1e-15  ;;  %v2498_v15 = vmul.f32 0.6931472, %v3576_v22 }
 0x4e9   : > { %v2770_v23 = vmul.f32 %v3566_v60, %v2752_v50  ;;  %v2661_v49 = vmul.f32 %v2660_v45, %v5977_v4  ;;  %vm2327_vm5 = vcmp.eq.f32.partialorder %v5945_v8, inf  ;;  %v2437_v60 = vadd.f32 1.0, %v2436_v47 }
 0x4ea   : > { %v2784_v33 = vmul.f32 %v5967_v37, %v2759_v34  ;;  %v3578_v51 = vpop.eup %3577  ;;  %v2439_v38 = vand.u32 2147483647, %v5991_v30  ;;  %v2942_v35 = vclamps-f32 %v2370_v17, 0.9999999  ;;  %v2328_v59 = vsel %vm2327_vm5, %v5945_v8, %v2326_v36 }
 0x4eb   : > { %2800 = vst [vmem:[%s6009_s8 + $0x8] sm:$0xff] %v2770_v23  ;;  %v2658_v29 = vmul.f32 0.6931472, %v3578_v51  ;;  %v2599_v27 = vand.u32 2147483647, %v6017_v43  ;;  %v2330_v37 = vand.u32 2147483648, %v5945_v8  ;;  %3585 = vrsqrt.f32 %v6042_v20  ;;  %v3580_v4 = vpop.eup %3579 }
 0x4ec   : > { %2807 = vst [vmem:[%s6009_s8 + $0x40] sm:$0xff] %v2784_v33  ;;  %v2597_v24 = vadd.f32 1.0, %v2596_v19  ;;  %v2442_v61 = vadd.f32 1.0, %v2942_v35  ;;  %v6056_v53 = vsub.f32 0.0, %v2942_v35  ;;  %vm2329_vm6 = vcmp.eq.f32.partialorder %v5945_v8, 0.0  ;;  %v3582_v62 = vpop.eup %3581 }
 0x4ed   : > { %v2504_v63 = vsel %vm6022_vm3, %v2501_v11, %v2498_v15  ;;  %v2664_v42 = vsel %vm6037_vm4, %v2661_v49, %v2658_v29  ;;  %v6063_v0 = vsel %vm2329_vm6, %v2330_v37, %v2328_v59  ;;  %3587 = vrsqrt.f32 %v6050_v6 }
 0x4ee   : > { %v2728_v48 = vsub.f32 %v2504_v63, %v2664_v42  ;;  %3589 = vlog2.f32 %v2442_v61  ;;  %vm6066_vm7 = vcmp.lt.f32.partialorder %v2439_v38, 0.0004427343  ;;  %v2445_v44 = vmul.f32 -0.5, %v2942_v35 }
 0x4ef   : > { %v2602_v8 = vadd.f32 1.0, %v6056_v53  ;;  %v2435_v28 = vmul.f32 0.6931472, %v3582_v62  ;;  %3591 = vrcp.f32 %v2369_v46  ;;  %v2377_v7 = vmax.f32 %v6063_v0, 1e-15 }
 0x4f0   : > { %v2744_v56 = vmul.f32 0.5, %v2728_v48  ;;  %v2438_v12 = vmul.f32 %v5991_v30, %v2437_v60  ;;  %v2598_v55 = vmul.f32 %v2597_v24, %v6017_v43  ;;  %vm2600_vm8 = vcmp.lt.f32.partialorder %v2599_v27, 0.0004427343  ;;  %v6111_v27 = vpop.xlane.xlu1 %2247 }
 0x4f1   : > { %v3584_v39 = vpop.eup %3583  ;;  %3593 = vlog2.f32 %v2602_v8  ;;  %v2448_v1 = vand.u32 2147483647, %v2942_v35  ;;  %v6081_v40 = vclamps-f32 %v2377_v7, 0.9999999  ;;  %v2446_v46 = vadd.f32 1.0, %v2445_v44 }
 0x4f2   : > { %v2760_v10 = vmul.f32 %v2744_v56, %v5724_v16  ;;  %v2595_v45 = vmul.f32 0.6931472, %v3584_v39  ;;  %v2605_v50 = vmul.f32 -0.5, %v6056_v53  ;;  %v2608_v47 = vand.u32 2147483647, %v6056_v53 }
 0x4f3   : > { %3595 = vrsqrt.f32 %v6074_v52  ;;  %v2441_v43 = vsel %vm6066_vm7, %v2438_v12, %v2435_v28  ;;  %v2505_v16 = vadd.f32 1.0, %v6081_v40  ;;  %v6090_v34 = vsub.f32 0.0, %v6081_v40 }
 0x4f4   : > { %v2786_v30 = vmul.f32 %v3580_v4, %v2760_v10  ;;  %v2601_v21 = vsel %vm2600_vm8, %v2598_v55, %v2595_v45  ;;  %3597 = vrcp.f32 %v2370_v17  ;;  %vm2334_vm9 = vcmp.eq.f32.partialorder %v6042_v20, inf }
 0x4f5   : > { %v3586_v36 = vpop.eup %3585  ;;  %v2721_v22 = vsub.f32 %v2441_v43, %v2601_v21  ;;  %3599 = vlog2.f32 %v2505_v16  ;;  %vm2336_vm10 = vcmp.eq.f32.partialorder %v6042_v20, 0.0  ;;  %v2337_v57 = vand.u32 2147483648, %v6042_v20  ;;  %v6140_v43 = vpop.xlane.xlu0 %2249 }
 0x4f6   : > { %2808 = vst [vmem:[%s6009_s8 + $0x48] sm:$0xff] %v2786_v30  ;;  %v2333_v11 = vmul.f32 %v3586_v36, %v6042_v20  ;;  %vm6097_vm11 = vcmp.lt.f32.partialorder %v2448_v1, 0.0004427343  ;;  %v2606_v17 = vadd.f32 1.0, %v2605_v50  ;;  %v2665_v33 = vadd.f32 1.0, %v6090_v34 }
 0x4f7   : > { %v3588_v23 = vpop.eup %3587  ;;  %v2737_v14 = vmul.f32 0.5, %v2721_v22  ;;  %v2447_v49 = vmul.f32 %v2942_v35, %v2446_v46  ;;  %vm6102_vm12 = vcmp.lt.f32.partialorder %v2608_v47, 0.0004427343  ;;  %vm2285_vm13 = vcmp.eq.f32.partialorder %v6050_v6, inf }
 0x4f8   : > { %v3590_v15 = vpop.eup %3589  ;;  %v2335_v60 = vsel %vm2334_vm9, %v6042_v20, %v2333_v11  ;;  %v2284_v38 = vmul.f32 %v3588_v23, %v6050_v6  ;;  %3601 = vlog2.f32 %v2665_v33  ;;  %v2288_v29 = vand.u32 2147483648, %v6050_v6 }
 0x4f9   : > { %v2753_v59 = vmul.f32 %v2737_v14, %v5756_v9  ;;  %v3592_v37 = vpop.eup %3591  ;;  %v2444_v35 = vmul.f32 0.6931472, %v3590_v15  ;;  %v2508_v4 = vmul.f32 -0.5, %v6081_v40  ;;  %v2338_v24 = vsel %vm2336_vm10, %v2337_v57, %v2335_v60 }
 0x4fa   : > { %v2286_v61 = vsel %vm2285_vm13, %v6050_v6, %v2284_v38  ;;  %v2607_v9 = vmul.f32 %v2606_v17, %v6056_v53  ;;  %v2378_v42 = vmax.f32 %v2338_v24, 1e-15  ;;  %vm2287_vm14 = vcmp.eq.f32.partialorder %v6050_v6, 0.0 }
 0x4fb   : > { %v3594_v62 = vpop.eup %3593  ;;  %v2772_v63 = vmul.f32 %v3592_v37, %v2753_v59  ;;  %v2668_v26 = vmul.f32 -0.5, %v6090_v34  ;;  %v2289_v44 = vsel %vm2287_vm14, %v2288_v29, %v2286_v61  ;;  %3603 = vrsqrt.f32 %v6111_v27 }
 0x4fc   : > { %v2604_v48 = vmul.f32 0.6931472, %v3594_v62  ;;  %v2511_v20 = vand.u32 2147483647, %v6081_v40  ;;  %v6123_v56 = vclamps-f32 %v2378_v42, 0.9999999  ;;  %v2450_v39 = vsel %vm6097_vm11, %v2447_v49, %v2444_v35 }
 0x4fd   : > { %v3596_v8 = vpop.eup %3595  ;;  %2801 = vst [vmem:[%s6009_s8 + $0x10] sm:$0xff] %v2772_v63  ;;  %v2371_v28 = vmax.f32 %v2289_v44, 1e-15  ;;  %v2509_v6 = vadd.f32 1.0, %v2508_v4  ;;  %v2671_v12 = vand.u32 2147483647, %v6090_v34  ;;  %3605 = vrcp.f32 %v2377_v7 }
 0x4fe   : > { %v2610_v53 = vsel %vm6102_vm12, %v2607_v9, %v2604_v48  ;;  %v3598_v55 = vpop.eup %3597  ;;  %v2514_v45 = vadd.f32 1.0, %v6123_v56  ;;  %v2291_v1 = vmul.f32 %v3596_v8, %v6074_v52  ;;  %v2669_v50 = vadd.f32 1.0, %v2668_v26 }
 0x4ff   : > { %v2722_v10 = vsub.f32 %v2450_v39, %v2610_v53  ;;  %v3600_v46 = vpop.eup %3599  ;;  %v6135_v47 = vsub.f32 0.0, %v6123_v56  ;;  %v6137_v30 = vclamps-f32 %v2371_v28, 0.9999999  ;;  %vm2292_vm15 = vcmp.eq.f32.partialorder %v6074_v52, inf }
 0x500   : > { %v2507_v16 = vmul.f32 0.6931472, %v3600_v46  ;;  %3607 = vlog2.f32 %v2514_v45  ;;  %vm2294_vm0 = vcmp.eq.f32.partialorder %v6074_v52, 0.0  ;;  %v2510_v0 = vmul.f32 %v6081_v40, %v2509_v6 }
 0x501   : > { %v2738_v21 = vmul.f32 0.5, %v2722_v10  ;;  %vm6144_vm1 = vcmp.lt.f32.partialorder %v2511_v20, 0.0004427343  ;;  %vm6148_vm2 = vcmp.lt.f32.partialorder %v2671_v12, 0.0004427343  ;;  %v2674_v22 = vadd.f32 1.0, %v6135_v47 }
 0x502   : > { %v3602_v11 = vpop.eup %3601  ;;  %v2451_v23 = vadd.f32 1.0, %v6137_v30  ;;  %v2293_v14 = vsel %vm2292_vm15, %v6074_v52, %v2291_v1  ;;  %3609 = vrsqrt.f32 %v6140_v43  ;;  %v2670_v19 = vmul.f32 %v2669_v50, %v6090_v34 }
 0x503   : > { %v2754_v57 = vmul.f32 %v2738_v21, %v5788_v41  ;;  %v2667_v40 = vmul.f32 0.6931472, %v3602_v11  ;;  %3611 = vlog2.f32 %v2674_v22  ;;  %v2295_v17 = vand.u32 2147483648, %v6074_v52 }
 0x504   : > { %v2513_v15 = vsel %vm6144_vm1, %v2510_v0, %v2507_v16  ;;  %v2517_v49 = vmul.f32 -0.5, %v6123_v56  ;;  %vm2341_vm3 = vcmp.eq.f32.partialorder %v6111_v27, inf  ;;  %3613 = vlog2.f32 %v2451_v23 }
 0x505   : > { %v2774_v33 = vmul.f32 %v3598_v55, %v2754_v57  ;;  %v3604_v41 = vpop.eup %3603  ;;  %v2673_v51 = vsel %vm6148_vm2, %v2670_v19, %v2667_v40  ;;  %v6166_v60 = vsub.f32 0.0, %v6137_v30  ;;  %v6170_v34 = vsel %vm2294_vm0, %v2295_v17, %v2293_v14  ;;  %v6220_v40 = vpop.xlane.xlu1 %2235 }
 0x506   : > { %v2729_v38 = vsub.f32 %v2513_v15, %v2673_v51  ;;  %v2677_v59 = vmul.f32 -0.5, %v6135_v47  ;;  %3615 = vrcp.f32 %v2378_v42  ;;  %v2372_v29 = vmax.f32 %v6170_v34, 1e-15 }
 0x507   : > { %2802 = vst [vmem:[%s6009_s8 + $0x18] sm:$0xff] %v2774_v33  ;;  %v2454_v37 = vmul.f32 -0.5, %v6137_v30  ;;  %v2611_v35 = vadd.f32 1.0, %v6166_v60  ;;  %v2340_v4 = vmul.f32 %v3604_v41, %v6111_v27  ;;  %vm2343_vm4 = vcmp.eq.f32.partialorder %v6111_v27, 0.0  ;;  %v3606_v24 = vpop.eup %3605 }
 0x508   : > { %v2745_v61 = vmul.f32 0.5, %v2729_v38  ;;  %3617 = vrcp.f32 %v2371_v28  ;;  %v6181_v52 = vclamps-f32 %v2372_v29, 0.9999999  ;;  %v2344_v62 = vand.u32 2147483648, %v6111_v27 }
 0x509   : > { %v2518_v63 = vadd.f32 1.0, %v2517_v49  ;;  %v2520_v9 = vand.u32 2147483647, %v6123_v56  ;;  %3619 = vlog2.f32 %v2611_v35  ;;  %v2342_v42 = vsel %vm2341_vm3, %v6111_v27, %v2340_v4  ;;  %v6267_v46 = vpop.xlane.xlu1 %2251 }
 0x50a   : > { %v3608_v48 = vpop.eup %3607  ;;  %v2761_v26 = vmul.f32 %v2745_v61, %v5803_v54  ;;  %v2678_v44 = vadd.f32 1.0, %v2677_v59  ;;  %v2680_v8 = vand.u32 2147483647, %v6135_v47  ;;  %v2460_v20 = vadd.f32 1.0, %v6181_v52 }
 0x50b   : > { %v2455_v28 = vadd.f32 1.0, %v2454_v37  ;;  %v2457_v39 = vand.u32 2147483647, %v6137_v30  ;;  %v6193_v53 = vsub.f32 0.0, %v6181_v52  ;;  %v6197_v6 = vsel %vm2343_vm4, %v2344_v62, %v2342_v42 }
 0x50c   : > { %v3610_v12 = vpop.eup %3609  ;;  %v2788_v55 = vmul.f32 %v3606_v24, %v2761_v26  ;;  %v2516_v10 = vmul.f32 0.6931472, %v3608_v48  ;;  %v2614_v54 = vmul.f32 -0.5, %v6166_v60  ;;  %3621 = vlog2.f32 %v2460_v20 }
 0x50d   : > { %v3612_v45 = vpop.eup %3611  ;;  %v2519_v1 = vmul.f32 %v6123_v56, %v2518_v63  ;;  %vm6201_vm5 = vcmp.lt.f32.partialorder %v2520_v9, 0.0004427343  ;;  %v2617_v50 = vand.u32 2147483647, %v6166_v60  ;;  %v2620_v21 = vadd.f32 1.0, %v6193_v53 }
 0x50e   : > { %2809 = vst [vmem:[%s6009_s8 + $0x50] sm:$0xff] %v2788_v55  ;;  %v2676_v27 = vmul.f32 0.6931472, %v3612_v45  ;;  %v2679_v16 = vmul.f32 %v2678_v44, %v6135_v47  ;;  %vm2681_vm6 = vcmp.lt.f32.partialorder %v2680_v8, 0.0004427343  ;;  %v3614_v7 = vpop.eup %3613  ;;  %v2456_v36 = vmul.f32 %v6137_v30, %v2455_v28  ;;  %v6247_v8 = vpop.xlane.xlu0 %2237 }
 0x50f   : > { %v2379_v0 = vmax.f32 %v6197_v6, 1e-15  ;;  %vm6211_vm7 = vcmp.lt.f32.partialorder %v2457_v39, 0.0004427343  ;;  %3623 = vlog2.f32 %v2620_v21  ;;  %v2347_v22 = vmul.f32 %v3610_v12, %v6140_v43 }
 0x510   : > { %v3616_v11 = vpop.eup %3615  ;;  %v2522_v57 = vsel %vm6201_vm5, %v2519_v1, %v2516_v10  ;;  %v2682_v23 = vsel %vm2681_vm6, %v2679_v16, %v2676_v27  ;;  %v2615_v14 = vadd.f32 1.0, %v2614_v54  ;;  %vm6222_vm8 = vcmp.lt.f32.partialorder %v2617_v50, 0.0004427343 }
 0x511   : > { %v6218_v47 = vclamps-f32 %v2379_v0, 0.9999999  ;;  %v2730_v19 = vsub.f32 %v2522_v57, %v2682_v23  ;;  %v2463_v17 = vmul.f32 -0.5, %v6181_v52  ;;  %v2623_v33 = vmul.f32 -0.5, %v6193_v53 }
 0x512   : > { %v3618_v15 = vpop.eup %3617  ;;  %v2453_v49 = vmul.f32 0.6931472, %v3614_v7  ;;  %vm2348_vm9 = vcmp.eq.f32.partialorder %v6140_v43, inf  ;;  %v2466_v37 = vand.u32 2147483647, %v6181_v52  ;;  %3625 = vrsqrt.f32 %v6220_v40 }
 0x513   : > { %v2523_v41 = vadd.f32 1.0, %v6218_v47  ;;  %v6230_v51 = vsub.f32 0.0, %v6218_v47  ;;  %v3620_v38 = vpop.eup %3619  ;;  %v2746_v59 = vmul.f32 0.5, %v2730_v19  ;;  %v2349_v35 = vsel %vm2348_vm9, %v6140_v43, %v2347_v22 }
 0x514   : > { %v2613_v4 = vmul.f32 0.6931472, %v3620_v38  ;;  %v2616_v24 = vmul.f32 %v2615_v14, %v6166_v60  ;;  %v2351_v61 = vand.u32 2147483648, %v6140_v43  ;;  %v2464_v63 = vadd.f32 1.0, %v2463_v17  ;;  %v6292_v38 = vpop.xlane.xlu0 %2253 }
 0x515   : > { %3627 = vlog2.f32 %v2523_v41  ;;  %v2762_v62 = vmul.f32 %v2746_v59, %v5816_v18  ;;  %v2683_v9 = vadd.f32 1.0, %v6230_v51  ;;  %vm2350_vm10 = vcmp.eq.f32.partialorder %v6140_v43, 0.0 }
 0x516   : > { %v3622_v42 = vpop.eup %3621  ;;  %v2459_v48 = vsel %vm6211_vm7, %v2456_v36, %v2453_v49  ;;  %v2619_v26 = vsel %vm6222_vm8, %v2616_v24, %v2613_v4  ;;  %v2624_v44 = vadd.f32 1.0, %v2623_v33  ;;  %v6245_v60 = vsel %vm2350_vm10, %v2351_v61, %v2349_v35 }
 0x517   : > { %v2790_v20 = vmul.f32 %v3616_v11, %v2762_v62  ;;  %v2723_v18 = vsub.f32 %v2459_v48, %v2619_v26  ;;  %v2626_v28 = vand.u32 2147483647, %v6193_v53  ;;  %3629 = vlog2.f32 %v2683_v9 }
 0x518   : > { %v2462_v39 = vmul.f32 0.6931472, %v3622_v42  ;;  %3631 = vrcp.f32 %v2372_v29  ;;  %v2526_v43 = vmul.f32 -0.5, %v6218_v47  ;;  %v2380_v6 = vmax.f32 %v6245_v60, 1e-15 }
 0x519   : > { %v3624_v12 = vpop.eup %3623  ;;  %2810 = vst [vmem:[%s6009_s8 + $0x58] sm:$0xff] %v2790_v20  ;;  %v2739_v55 = vmul.f32 0.5, %v2723_v18  ;;  %v2465_v10 = vmul.f32 %v6181_v52, %v2464_v63  ;;  %vm6256_vm11 = vcmp.lt.f32.partialorder %v2466_v37, 0.0004427343  ;;  %3633 = vrsqrt.f32 %v6247_v8 }
 0x51a   : > { %v2622_v45 = vmul.f32 0.6931472, %v3624_v12  ;;  %v2625_v1 = vmul.f32 %v2624_v44, %v6193_v53  ;;  %v2686_v34 = vmul.f32 -0.5, %v6230_v51  ;;  %v6265_v29 = vclamps-f32 %v2380_v6, 0.9999999 }
 0x51b   : > { %v2755_v50 = vmul.f32 %v2739_v55, %v5831_v3  ;;  %vm2627_vm12 = vcmp.lt.f32.partialorder %v2626_v28, 0.0004427343  ;;  %v2529_v52 = vand.u32 2147483647, %v6218_v47  ;;  %3635 = vrcp.f32 %v2379_v0 }
 0x51c   : > { %v2468_v21 = vsel %vm6256_vm11, %v2465_v10, %v2462_v39  ;;  %v2628_v27 = vsel %vm2627_vm12, %v2625_v1, %v2622_v45  ;;  %v2527_v53 = vadd.f32 1.0, %v2526_v43  ;;  %v2532_v16 = vadd.f32 1.0, %v6265_v29  ;;  %v3626_v7 = vpop.eup %3625 }
 0x51d   : > { %v2776_v36 = vmul.f32 %v3618_v15, %v2755_v50  ;;  %v2724_v56 = vsub.f32 %v2468_v21, %v2628_v27  ;;  %v6275_v22 = vsub.f32 0.0, %v6265_v29  ;;  %3637 = vrsqrt.f32 %v6267_v46 }
 0x51e   : > { %v2687_v11 = vadd.f32 1.0, %v2686_v34  ;;  %3639 = vlog2.f32 %v2532_v16  ;;  %v2298_v0 = vmul.f32 %v3626_v7, %v6220_v40  ;;  %v2689_v23 = vand.u32 2147483647, %v6230_v51 }
 0x51f   : > { %v3628_v3 = vpop.eup %3627  ;;  %2803 = vst [vmem:[%s6009_s8 + $0x20] sm:$0xff] %v2776_v36  ;;  %v2740_v57 = vmul.f32 0.5, %v2724_v56  ;;  %v2692_v14 = vadd.f32 1.0, %v6275_v22  ;;  %vm2299_vm13 = vcmp.eq.f32.partialorder %v6220_v40, inf  ;;  %vm6283_vm14 = vcmp.lt.f32.partialorder %v2529_v52, 0.0004427343 }
 0x520   : > { %v2525_v19 = vmul.f32 0.6931472, %v3628_v3  ;;  %v2300_v17 = vsel %vm2299_vm13, %v6220_v40, %v2298_v0  ;;  %v2302_v33 = vand.u32 2147483648, %v6220_v40  ;;  %v2528_v41 = vmul.f32 %v6218_v47, %v2527_v53 }
 0x521   : > { %v3630_v15 = vpop.eup %3629  ;;  %v2756_v49 = vmul.f32 %v2740_v57, %v5857_v58  ;;  %3641 = vlog2.f32 %v2692_v14  ;;  %vm2301_vm15 = vcmp.eq.f32.partialorder %v6220_v40, 0.0  ;;  %v2688_v35 = vmul.f32 %v2687_v11, %v6230_v51 }
 0x522   : > { %v3632_v59 = vpop.eup %3631  ;;  %v2685_v37 = vmul.f32 0.6931472, %v3630_v15  ;;  %v2535_v4 = vmul.f32 -0.5, %v6265_v29  ;;  %v6296_v24 = vsel %vm2301_vm15, %v2302_v33, %v2300_v17  ;;  %vm2690_vm0 = vcmp.lt.f32.partialorder %v2689_v23, 0.0004427343 }
 0x523   : > { %v3634_v61 = vpop.eup %3633  ;;  %v2778_v62 = vmul.f32 %v3632_v59, %v2756_v49  ;;  %v2695_v58 = vmul.f32 -0.5, %v6275_v22  ;;  %v2373_v47 = vmax.f32 %v6296_v24, 1e-15  ;;  %v2531_v40 = vsel %vm6283_vm14, %v2528_v41, %v2525_v19 }
 0x524   : > { %v2691_v63 = vsel %vm2690_vm0, %v2688_v35, %v2685_v37  ;;  %v2305_v9 = vmul.f32 %v3634_v61, %v6247_v8  ;;  %3643 = vrsqrt.f32 %v6292_v38  ;;  %vm2306_vm1 = vcmp.eq.f32.partialorder %v6247_v8, inf }
 0x525   : > { %v3636_v51 = vpop.eup %3635  ;;  %2804 = vst [vmem:[%s6009_s8 + $0x28] sm:$0xff] %v2778_v62  ;;  %v2731_v42 = vsub.f32 %v2531_v40, %v2691_v63  ;;  %v6307_v48 = vclamps-f32 %v2373_v47, 0.9999999  ;;  %v2536_v26 = vadd.f32 1.0, %v2535_v4  ;;  %v2538_v44 = vand.u32 2147483647, %v6265_v29 }
 0x526   : > { %v2307_v20 = vsel %vm2306_vm1, %v6247_v8, %v2305_v9  ;;  %v2309_v18 = vand.u32 2147483648, %v6247_v8  ;;  %v2698_v43 = vand.u32 2147483647, %v6275_v22  ;;  %vm2308_vm2 = vcmp.eq.f32.partialorder %v6247_v8, 0.0 }
 0x527   : > { %v3638_v28 = vpop.eup %3637  ;;  %v2747_v39 = vmul.f32 0.5, %v2731_v42  ;;  %v2469_v12 = vadd.f32 1.0, %v6307_v48  ;;  %v2696_v10 = vadd.f32 1.0, %v2695_v58  ;;  %3645 = vrcp.f32 %v2380_v6 }
 0x528   : > { %v3640_v55 = vpop.eup %3639  ;;  %v6319_v54 = vsub.f32 0.0, %v6307_v48  ;;  %v6321_v45 = vsel %vm2308_vm2, %v2309_v18, %v2307_v20  ;;  %v2354_v34 = vmul.f32 %v3638_v28, %v6267_v46  ;;  %v2537_v52 = vmul.f32 %v6265_v29, %v2536_v26 }
 0x529   : > { %v2763_v1 = vmul.f32 %v2747_v39, %v5849_v25  ;;  %3647 = vlog2.f32 %v2469_v12  ;;  %v2534_v50 = vmul.f32 0.6931472, %v3640_v55  ;;  %vm6326_vm3 = vcmp.lt.f32.partialorder %v2538_v44, 0.0004427343 }
 0x52a   : > { %v2629_v60 = vadd.f32 1.0, %v6319_v54  ;;  %vm6331_vm4 = vcmp.lt.f32.partialorder %v2698_v43, 0.0004427343  ;;  %v2374_v25 = vmax.f32 %v6321_v45, 1e-15  ;;  %vm2355_vm5 = vcmp.eq.f32.partialorder %v6267_v46, inf }
 0x52b   : > { %v3642_v6 = vpop.eup %3641  ;;  %v2792_v21 = vmul.f32 %v3636_v51, %v2763_v1  ;;  %v2697_v16 = vmul.f32 %v2696_v10, %v6275_v22  ;;  %v2358_v29 = vand.u32 2147483648, %v6267_v46  ;;  %v2472_v7 = vmul.f32 -0.5, %v6307_v48 }
 0x52c   : > { %v2694_v53 = vmul.f32 0.6931472, %v3642_v6  ;;  %3649 = vlog2.f32 %v2629_v60  ;;  %v6343_v36 = vclamps-f32 %v2374_v25, 0.9999999  ;;  %v2356_v56 = vsel %vm2355_vm5, %v6267_v46, %v2354_v34 }
 0x52d   : > { %2811 = vst [vmem:[%s6009_s8 + $0x60] sm:$0xff] %v2792_v21  ;;  %vm2357_vm6 = vcmp.eq.f32.partialorder %v6267_v46, 0.0  ;;  %v2540_v11 = vsel %vm6326_vm3, %v2537_v52, %v2534_v50  ;;  %v2632_v0 = vmul.f32 -0.5, %v6319_v54  ;;  %v2475_v33 = vand.u32 2147483647, %v6307_v48 }
 0x52e   : > { %v3644_v3 = vpop.eup %3643  ;;  %v2700_v22 = vsel %vm6331_vm4, %v2697_v16, %v2694_v53  ;;  %v6352_v57 = vsel %vm2357_vm6, %v2358_v29, %v2356_v56  ;;  %v2478_v14 = vadd.f32 1.0, %v6343_v36  ;;  %v6356_v19 = vsub.f32 0.0, %v6343_v36 }
 0x52f   : > { %v2732_v23 = vsub.f32 %v2540_v11, %v2700_v22  ;;  %v2381_v30 = vmax.f32 %v6352_v57, 1e-15  ;;  %v2361_v46 = vmul.f32 %v3644_v3, %v6292_v38  ;;  %vm2362_vm7 = vcmp.eq.f32.partialorder %v6292_v38, inf }
 0x530   : > { %3651 = vlog2.f32 %v2478_v14  ;;  %v2473_v49 = vadd.f32 1.0, %v2472_v7  ;;  %v2633_v41 = vadd.f32 1.0, %v2632_v0  ;;  %v2638_v59 = vadd.f32 1.0, %v6356_v19 }
 0x531   : > { %v2748_v17 = vmul.f32 0.5, %v2732_v23  ;;  %v3646_v15 = vpop.eup %3645  ;;  %v6365_v37 = vclamps-f32 %v2381_v30, 0.9999999  ;;  %3653 = vrcp.f32 %v2373_v47  ;;  %v2363_v61 = vsel %vm2362_vm7, %v6292_v38, %v2361_v46 }
 0x532   : > { %v2635_v62 = vand.u32 2147483647, %v6319_v54  ;;  %3655 = vlog2.f32 %v2638_v59  ;;  %vm2364_vm8 = vcmp.eq.f32.partialorder %v6292_v38, 0.0  ;;  %v2365_v58 = vand.u32 2147483648, %v6292_v38 }
 0x533   : > { %v3648_v35 = vpop.eup %3647  ;;  %v2764_v4 = vmul.f32 %v2748_v17, %v5865_v5  ;;  %vm6374_vm9 = vcmp.lt.f32.partialorder %v2475_v33, 0.0004427343  ;;  %v2541_v5 = vadd.f32 1.0, %v6365_v37  ;;  %v2474_v47 = vmul.f32 %v6307_v48, %v2473_v49 }
 0x534   : > { %v2471_v63 = vmul.f32 0.6931472, %v3648_v35  ;;  %v2634_v51 = vmul.f32 %v2633_v41, %v6319_v54  ;;  %v2573_v42 = vsub.f32 0.0, %v6365_v37  ;;  %v6382_v26 = vsel %vm2364_vm8, %v2365_v58, %v2363_v61 }
 0x535   : > { %v2794_v40 = vmul.f32 %v3646_v15, %v2764_v4  ;;  %v2481_v38 = vmul.f32 -0.5, %v6343_v36  ;;  %v2641_v20 = vmul.f32 -0.5, %v6356_v19  ;;  %3657 = vlog2.f32 %v2541_v5 }
 0x536   : > { %v3650_v24 = vpop.eup %3649  ;;  %vm2636_vm10 = vcmp.lt.f32.partialorder %v2635_v62, 0.0004427343  ;;  %v2701_v18 = vadd.f32 1.0, %v2573_v42  ;;  %v2382_v28 = vmax.f32 %v6382_v26, 1e-15  ;;  %v2477_v48 = vsel %vm6374_vm9, %v2474_v47, %v2471_v63 }
 0x537   : > { %2812 = vst [vmem:[%s6009_s8 + $0x68] sm:$0xff] %v2794_v40  ;;  %v2631_v44 = vmul.f32 0.6931472, %v3650_v24  ;;  %v2484_v12 = vand.u32 2147483647, %v6343_v36  ;;  %v2482_v10 = vadd.f32 1.0, %v2481_v38 }
 0x538   : > { %3659 = vlog2.f32 %v2701_v18  ;;  %v2642_v54 = vadd.f32 1.0, %v2641_v20  ;;  %v6393_v1 = vclamps-f32 %v2382_v28, 0.9999999  ;;  %v2644_v50 = vand.u32 2147483647, %v6356_v19 }
 0x539   : > { %v2637_v39 = vsel %vm2636_vm10, %v2634_v51, %v2631_v44  ;;  %3661 = vrcp.f32 %v2374_v25  ;;  %v2544_v52 = vmul.f32 -0.5, %v6365_v37  ;;  %v2704_v6 = vmul.f32 -0.5, %v2573_v42 }
 0x53a   : > { %v2725_v43 = vsub.f32 %v2477_v48, %v2637_v39  ;;  %v3652_v55 = vpop.eup %3651  ;;  %v2550_v21 = vadd.f32 1.0, %v6393_v1  ;;  %v2574_v27 = vsub.f32 0.0, %v6393_v1  ;;  %vm2485_vm11 = vcmp.lt.f32.partialorder %v2484_v12, 0.0004427343 }
 0x53b   : > { %v3654_v8 = vpop.eup %3653  ;;  %v2480_v60 = vmul.f32 0.6931472, %v3652_v55  ;;  %v2483_v29 = vmul.f32 %v6343_v36, %v2482_v10  ;;  %v2643_v45 = vmul.f32 %v2642_v54, %v6356_v19  ;;  %vm2645_vm12 = vcmp.lt.f32.partialorder %v2644_v50, 0.0004427343 }
 0x53c   : > { %v2741_v34 = vmul.f32 0.5, %v2725_v43  ;;  %v3656_v53 = vpop.eup %3655  ;;  %3663 = vlog2.f32 %v2550_v21  ;;  %v2545_v56 = vadd.f32 1.0, %v2544_v52  ;;  %v2710_v3 = vadd.f32 1.0, %v2574_v27 }
 0x53d   : > { %v2640_v7 = vmul.f32 0.6931472, %v3656_v53  ;;  %v2486_v22 = vsel %vm2485_vm11, %v2483_v29, %v2480_v60  ;;  %v2705_v23 = vadd.f32 1.0, %v2704_v6  ;;  %v2547_v46 = vand.u32 2147483647, %v6365_v37 }
 0x53e   : > { %v2757_v16 = vmul.f32 %v2741_v34, %v5871_v13  ;;  %v2707_v13 = vand.u32 2147483647, %v2573_v42  ;;  %3665 = vlog2.f32 %v2710_v3  ;;  %v2546_v33 = vmul.f32 %v6365_v37, %v2545_v56 }
 0x53f   : > { %v3658_v11 = vpop.eup %3657  ;;  %v2646_v0 = vsel %vm2645_vm12, %v2643_v45, %v2640_v7  ;;  %3667 = vrcp.f32 %v2381_v30  ;;  %v2706_v49 = vmul.f32 %v2705_v23, %v2573_v42  ;;  %v2553_v41 = vmul.f32 -0.5, %v6393_v1 }
 0x540   : > { %v2780_v25 = vmul.f32 %v3654_v8, %v2757_v16  ;;  %v2726_v14 = vsub.f32 %v2486_v22, %v2646_v0  ;;  %v2543_v17 = vmul.f32 0.6931472, %v3658_v11  ;;  %v2713_v59 = vmul.f32 -0.5, %v2574_v27 }
 0x541   : > { %vm2548_vm13 = vcmp.lt.f32.partialorder %v2547_v46, 0.0004427343  ;;  %vm2708_vm14 = vcmp.lt.f32.partialorder %v2707_v13, 0.0004427343  ;;  %v2554_v40 = vadd.f32 1.0, %v2553_v41  ;;  %3669 = vrcp.f32 %v2382_v28 }
 0x542   : > { %2805 = vst [vmem:[%s6009_s8 + $0x30] sm:$0xff] %v2780_v25  ;;  %v3660_v36 = vpop.eup %3659  ;;  %v2742_v19 = vmul.f32 0.5, %v2726_v14  ;;  %v2549_v61 = vsel %vm2548_vm13, %v2546_v33, %v2543_v17  ;;  %v2714_v63 = vadd.f32 1.0, %v2713_v59  ;;  %v2556_v9 = vand.u32 2147483647, %v6393_v1 }
 0x543   : > { %v2703_v15 = vmul.f32 0.6931472, %v3660_v36  ;;  %v3662_v35 = vpop.eup %3661  ;;  %v2716_v5 = vand.u32 2147483647, %v2574_v27  ;;  %v2555_v42 = vmul.f32 %v6393_v1, %v2554_v40 }
 0x544   : > { %v2758_v4 = vmul.f32 %v2742_v19, %v5878_v32  ;;  %v2715_v38 = vmul.f32 %v2714_v63, %v2574_v27  ;;  %vm2557_vm15 = vcmp.lt.f32.partialorder %v2556_v9, 0.0004427343 }
 0x545   : > { %v2709_v62 = vsel %vm2708_vm14, %v2706_v49, %v2703_v15  ;;  %vm2717_vm0 = vcmp.lt.f32.partialorder %v2716_v5, 0.0004427343 }
 0x546   : > { %v2782_v58 = vmul.f32 %v3662_v35, %v2758_v4  ;;  %v2733_v57 = vsub.f32 %v2549_v61, %v2709_v62  ;;  %v3664_v30 = vpop.eup %3663 }
 0x547   : > { %v2552_v24 = vmul.f32 0.6931472, %v3664_v30 }
 0x548   : > { %2806 = vst [vmem:[%s6009_s8 + $0x38] sm:$0xff] %v2782_v58  ;;  %v2749_v37 = vmul.f32 0.5, %v2733_v57  ;;  %v3666_v32 = vpop.eup %3665 }
 0x549   : > { %v3668_v51 = vpop.eup %3667  ;;  %v2712_v44 = vmul.f32 0.6931472, %v3666_v32  ;;  %v2558_v18 = vsel %vm2557_vm15, %v2555_v42, %v2552_v24 }
 0x54a   : > { %v2765_v47 = vmul.f32 %v2749_v37, %v5883_v31 }
 0x54b   : > { %v2718_v48 = vsel %vm2717_vm0, %v2715_v38, %v2712_v44  ;;  %v3670_v39 = vpop.eup %3669 }
 0x54c   : > { %v2796_v20 = vmul.f32 %v3668_v51, %v2765_v47  ;;  %v2734_v26 = vsub.f32 %v2558_v18, %v2718_v48 }
 0x54e   : > { %2813 = vst [vmem:[%s6009_s8 + $0x70] sm:$0xff] %v2796_v20  ;;  %v2750_v28 = vmul.f32 0.5, %v2734_v26 }
 0x550   : > { %v2766_v31 = vmul.f32 %v2750_v28, %v5889_v2 }
 0x552   : > { %v2798_v43 = vmul.f32 %v3670_v39, %v2766_v31 }
 0x554   : > { %2814 = vst [vmem:[%s6009_s8 + $0x78] sm:$0xff] %v2798_v43 }
 0x555   : > { %3742 = shalt.err (!%p3739_p7)
}
 0x556   : > { %s3743_s30 = scalar_lea.hbm %s6424_s11, 2048  ;;  %s3747_s10 = scalar_lea.hbm %s6474_s3, 4096 }
 0x557   : > { %p3744_p9 = scmp.ne.s32.totalorder %s6424_s11, %s3743_s30  ;;  %p3748_p5 = scmp.lt.u32.totalorder %s6424_s11, %s6474_s3 }
 0x558   : > { %p3749_p11 = scmp.lt.u32.totalorder %s3747_s10, %s3743_s30  ;;  %p3751_p4 = scmp.lt.u32.totalorder %s3743_s30, %s6424_s11 }
 0x559   : > { %p3745_p1 = pnand %p3744_p9, %p3922_p12 }
 0x55a   : > { %p3750_p2 = por %p3749_p11, %p3748_p5 }
 0x55b   : > { %p3746_p0 = pneg %p3745_p1 }
 0x55c   : > { %p3752_p6 = por %p3751_p4, %p3750_p2 }
 0x55e   : > { %p3753_p8 = pnand %p3752_p6, %p3746_p0 }
 0x560   : > { %3756 = shalt.err (!%p3753_p8)
}
 0x561   : > { %s3806_s20 = smov 128   ;;  %s3807_s8 = smov 8  }
 0x562   : > { %3104 = dma.vmem_to_hbm [thread:$0]  (%p3922_p12), %s6426_s4, 2048, %s6424_s11, %s2816_s27, %s3806_s20, %s3806_s20, %s3807_s8  }
 0x563 PF: > { %s2844_s9 = sand.u32 1, %s3787_s12   ;;  %p6650_p10 = scmp.ne.s32.totalorder %s6493_s19, 0 }
 0x564   : > { %p6651_p13 = scmp.ge.s32.totalorder %s3799_s15, 2  ;;  %s2845_s25 = scalar_lea.sflag [#allocation4], %s2844_s9 }
 0x566   : > { %p3115_p3 = pnand %p6651_p13, %p6650_p10 }
 0x568   : > { %3782 = dma.done.wait (!%p3115_p3), %s2845_s25, 2048  }
 0x569   : > { %3784 = vsyncadd (!%p3115_p3), %s2845_s25, 4294965248  ;;  %p17_p7 = scmp.ge.s32.totalorder %s3884_s24, 4   ;;  %s6652_s12 = smov %s3791_s13 }
 0x56a   : > { %s6653_s13 = smov %s3795_s14  ;;  %s6654_s14 = smov %s3918_s17 }
 0x56b   : > { %s6655_s15 = smov %s3884_s24  ;;  %19 = sbr.rel (!%p17_p7) target bundleno = 6 (0x6), region = 81 }
 0x572   :  { %2850 = vsyncpa [#allocation3], 1 }
 0x573   :  { %2852 = vsyncpa [#allocation3 + $0x1], 1 }
 0x574   :  { %2853 = vsyncpa [#allocation6], 1 }
 0x575   :  { %2854 = vsyncpa [#allocation4], 1 }
 0x576   :  { %2856 = vsyncpa [#allocation4 + $0x1], 1 }

</bundles_post_ra>
